<compile_context>
chip_gen: v6e
topology: v6e:2x2x1
jax: 0.10.0
libtpu: 0.0.40
codegen_flags: <defaults>
</compile_context>

<pallas_src>
import functools

import jax
import jax.numpy as jnp
from jax.experimental import pallas as pl
from jax.experimental.pallas import tpu as pltpu

_VMEM_LIMIT = 32 * 1024 * 1024


def _round_up(x, m):
    return (x + m - 1) // m * m


# --------------------------------------------------------------------------
# GAT layer: stage 1 — per-head feature transform + attention logits
# --------------------------------------------------------------------------

def _gat_transform_kernel(x_ref, w_ref, asrc_w_ref, adst_w_ref,
                          xh_ref, lsrc_ref, ldst_ref):
    # (TILE_N, Fin) @ (Fin, Fout) on the MXU in bf16, f32 accumulation.
    xh = jnp.dot(x_ref[...].astype(jnp.bfloat16), w_ref[...],
                 preferred_element_type=jnp.float32)                 # (TILE_N, Fout)
    xh_b = xh.astype(jnp.bfloat16)
    lsrc_ref[...] = jnp.dot(xh_b, asrc_w_ref[...],
                            preferred_element_type=jnp.float32)      # (TILE_N, 1)
    ldst_ref[...] = jnp.dot(xh_b, adst_w_ref[...],
                            preferred_element_type=jnp.float32)      # (TILE_N, 1)
    xh_ref[...] = xh_b                                               # store bf16


# --------------------------------------------------------------------------
# GAT layer: stage 2 — row-tiled masked softmax + aggregation
# --------------------------------------------------------------------------

def _gat_attn_kernel(xh_ref, lsrc_ref, ldst_ref, adj_ref, b_ref, o_ref, acc_ref,
                     *, num_heads, apply_relu):
    h = pl.program_id(1)

    @pl.when(h == 0)
    def _():
        acc_ref[...] = jnp.zeros_like(acc_ref)

    # scores[i, j] = LeakyReLU(a_dst.xh_i + a_src.xh_j)  for edge j -> i
    scores = ldst_ref[...] + lsrc_ref[...]                 # (TILE_N,1)+(1,N_pad)
    scores = jnp.where(scores > 0, scores, 0.2 * scores)   # LeakyReLU(0.2)
    edge = adj_ref[...].astype(jnp.float32) > 0.0
    scores = jnp.where(edge, scores, jnp.float32(-1e30))

    m = jnp.max(scores, axis=-1, keepdims=True)
    p = jnp.exp(scores - m)                  # non-edges underflow to exactly 0
    rsum = jnp.sum(p, axis=-1, keepdims=True)
    # Deferred softmax normalisation: (p @ xh) scaled row-wise afterwards.
    agg = jnp.dot(p.astype(jnp.bfloat16), xh_ref[...],
                  preferred_element_type=jnp.float32)      # (TILE_N, Fout)
    acc_ref[...] += agg * pl.reciprocal(rsum + 1e-16, approx=True)

    @pl.when(h == num_heads - 1)
    def _():
        out = acc_ref[...] * (1.0 / num_heads) + b_ref[...]   # concat=False -> mean heads
        if apply_relu:
            out = jnp.maximum(out, 0.0)
        o_ref[...] = out.astype(o_ref.dtype)


def gat_conv(x_pad, w, att_src, att_dst, bias, adj, *, tile_n, apply_relu):
    """PyG GATConv(concat=False, dropout=0) over a dense (padded) adjacency mask."""
    n_pad, fin = x_pad.shape
    heads, _, fout = w.shape
    num_tiles = n_pad // tile_n

    w_b = w.astype(jnp.bfloat16)
    asrc_b = att_src.astype(jnp.bfloat16)
    adst_b = att_dst.astype(jnp.bfloat16)

    xh, l_src, l_dst = pl.pallas_call(
        _gat_transform_kernel,
        grid=(num_tiles, heads),
        in_specs=[
            pl.BlockSpec((tile_n, fin), lambda i, h: (i, 0)),
            pl.BlockSpec((None, fin, fout), lambda i, h: (h, 0, 0)),
            pl.BlockSpec((None, fout, 1), lambda i, h: (h, 0, 0)),
            pl.BlockSpec((None, fout, 1), lambda i, h: (h, 0, 0)),
        ],
        out_specs=[
            pl.BlockSpec((None, tile_n, fout), lambda i, h: (h, i, 0)),
            pl.BlockSpec((None, tile_n, 1), lambda i, h: (h, i, 0)),
            pl.BlockSpec((None, tile_n, 1), lambda i, h: (h, i, 0)),
        ],
        out_shape=[
            jax.ShapeDtypeStruct((heads, n_pad, fout), jnp.bfloat16),
            jax.ShapeDtypeStruct((heads, n_pad, 1), jnp.float32),
            jax.ShapeDtypeStruct((heads, n_pad, 1), jnp.float32),
        ],
        compiler_params=pltpu.CompilerParams(
            dimension_semantics=("parallel", "arbitrary"),
            vmem_limit_bytes=_VMEM_LIMIT),
    )(x_pad, w_b, asrc_b, adst_b)

    # Free relayout (last dim is 1): source logits as a row vector per head.
    l_src_row = l_src.reshape(heads, 1, n_pad)

    out = pl.pallas_call(
        functools.partial(_gat_attn_kernel, num_heads=heads, apply_relu=apply_relu),
        grid=(num_tiles, heads),
        in_specs=[
            pl.BlockSpec((None, n_pad, fout), lambda i, h: (h, 0, 0)),  # xh (all src)
            pl.BlockSpec((None, 1, n_pad), lambda i, h: (h, 0, 0)),      # a_src . xh_j
            pl.BlockSpec((None, tile_n, 1), lambda i, h: (h, i, 0)),     # a_dst . xh_i
            pl.BlockSpec((tile_n, n_pad), lambda i, h: (i, 0)),          # adj row block
            pl.BlockSpec((1, fout), lambda i, h: (0, 0)),                # bias
        ],
        out_specs=pl.BlockSpec((tile_n, fout), lambda i, h: (i, 0)),
        out_shape=jax.ShapeDtypeStruct((n_pad, fout), jnp.float32),
        scratch_shapes=[pltpu.VMEM((tile_n, fout), jnp.float32)],
        compiler_params=pltpu.CompilerParams(
            dimension_semantics=("parallel", "arbitrary"),
            vmem_limit_bytes=_VMEM_LIMIT),
    )(xh, l_src_row, l_dst, adj, bias.reshape(1, fout))
    return out


# --------------------------------------------------------------------------
# Fused VAE tail: dense_mean / dense_var / KL / decoder (Linear-ReLU-Linear)
# --------------------------------------------------------------------------

def _vae_tail_kernel(z_ref, wm_ref, bm_ref, wv_ref, bv_ref,
                     w1_ref, b1_ref, w2_ref, b2_ref,
                     recon_ref, kl_ref, *, kl_weights):
    z = z_ref[...].astype(jnp.bfloat16)
    z_mean = jnp.dot(z, wm_ref[...], preferred_element_type=jnp.float32) + bm_ref[...]
    lv = jnp.dot(z, wv_ref[...], preferred_element_type=jnp.float32) + bv_ref[...]
    z_var = jnp.clip(jnp.exp(lv), 1e-8, 100.0)      # torch.clamp(torch.exp(.), 1e-8, 100)

    # KL( N(mu, sqrt(var)) || N(0, 1) ) summed over features
    kl = -0.5 * jnp.log(z_var) + 0.5 * (z_var + z_mean * z_mean) - 0.5
    kl_ref[...] = (jnp.sum(kl, axis=-1, keepdims=True) * kl_weights).astype(kl_ref.dtype)

    h1 = jnp.dot(z, w1_ref[...], preferred_element_type=jnp.float32) + b1_ref[...]
    h1 = jnp.maximum(h1, 0.0)
    recon = jnp.dot(h1.astype(jnp.bfloat16), w2_ref[...],
                    preferred_element_type=jnp.float32) + b2_ref[...]
    recon_ref[...] = recon.astype(recon_ref.dtype)


def vae_decoder_kl(z_pad, params, *, kl_weights, tile_n):
    n_pad, latent = z_pad.shape
    inter = params["dec1_w"].shape[1]
    orig = params["dec2_w"].shape[1]
    num_tiles = n_pad // tile_n
    recon, kl = pl.pallas_call(
        functools.partial(_vae_tail_kernel, kl_weights=kl_weights),
        grid=(num_tiles,),
        in_specs=[
            pl.BlockSpec((tile_n, latent), lambda i: (i, 0)),
            pl.BlockSpec((latent, latent), lambda i: (0, 0)),
            pl.BlockSpec((1, latent), lambda i: (0, 0)),
            pl.BlockSpec((latent, latent), lambda i: (0, 0)),
            pl.BlockSpec((1, latent), lambda i: (0, 0)),
            pl.BlockSpec((latent, inter), lambda i: (0, 0)),
            pl.BlockSpec((1, inter), lambda i: (0, 0)),
            pl.BlockSpec((inter, orig), lambda i: (0, 0)),
            pl.BlockSpec((1, orig), lambda i: (0, 0)),
        ],
        out_specs=[
            pl.BlockSpec((tile_n, orig), lambda i: (i, 0)),
            pl.BlockSpec((tile_n, 1), lambda i: (i, 0)),
        ],
        out_shape=[
            jax.ShapeDtypeStruct((n_pad, orig), jnp.float32),
            jax.ShapeDtypeStruct((n_pad, 1), jnp.float32),
        ],
        compiler_params=pltpu.CompilerParams(
            dimension_semantics=("parallel",),
            vmem_limit_bytes=_VMEM_LIMIT),
    )(z_pad,
      params["mean_w"].astype(jnp.bfloat16), params["mean_b"].reshape(1, latent),
      params["var_w"].astype(jnp.bfloat16), params["var_b"].reshape(1, latent),
      params["dec1_w"].astype(jnp.bfloat16), params["dec1_b"].reshape(1, inter),
      params["dec2_w"].astype(jnp.bfloat16), params["dec2_b"].reshape(1, orig))
    return recon, kl


# --------------------------------------------------------------------------
# CNEncoder normalisation (single block; O(N*D), global min/max/mean)
# --------------------------------------------------------------------------

def _cn_norm_kernel(norm_x_ref, recon_ref, smooth_ref, nc_ref, reg_ref):
    recon = recon_ref[...]
    sac = recon * smooth_ref[...]                                   # (N, D) * (N, 1)
    copy_sum = jnp.sum(sac, axis=-1, keepdims=True)
    pseudo_sum = jnp.sum(norm_x_ref[...], axis=-1, keepdims=True)
    nc = sac * (pl.reciprocal(copy_sum + 1e-8, approx=True) * pseudo_sum)

    mn = jnp.min(nc, keepdims=True)                                 # (1, 1)
    mx = jnp.max(nc, keepdims=True)
    range_min = mn * 0.8
    range_max = mx * 1.2
    nc = (nc - mn) * pl.reciprocal(mx - mn + 1e-8, approx=True)
    nc = nc * (range_max - range_min) + range_min
    nc = nc * pl.reciprocal(jnp.mean(nc, keepdims=True), approx=True)

    nc_ref[...] = nc.astype(nc_ref.dtype)
    reg_ref[...] = (jnp.sum(recon * recon, keepdims=True) * 1e-4).astype(reg_ref.dtype)


def cn_encoder(norm_x, recon, edge_index, num_states=3):
    """CNEncoder.forward (HMM replaced by deterministic quantile state assignment)."""
    n = recon.shape[0]
    spot_mean = jnp.mean(recon, axis=1, keepdims=True)
    spot_mean = (spot_mean - jnp.mean(spot_mean)) / (jnp.std(spot_mean) + 1e-8)
    # TODO(synk): hmmlearn GaussianHMM EM fit/predict is host-side numpy with no Pallas
    # equivalent; states are assigned to the nearest quantile-initialised HMM mean instead.
    q = jnp.quantile(spot_mean, jnp.array([0.2, 0.5, 0.8], jnp.float32))
    states = jnp.argmin(jnp.abs(spot_mean - q.reshape(1, num_states)), axis=1)
    states = (states + 1).astype(jnp.float32)                       # (N,)

    row, col = edge_index[0], edge_index[1]
    sums = jnp.zeros((n,), jnp.float32).at[col].add(states[row])
    cnts = jnp.zeros((n,), jnp.float32).at[col].add(1.0)
    neighbor_avg = sums / jnp.maximum(cnts, 1.0)                     # scatter_mean
    smoothed = (0.5 * states + 0.5 * neighbor_avg).reshape(n, 1)

    norm_copy, reg = pl.pallas_call(
        _cn_norm_kernel,
        out_shape=(jax.ShapeDtypeStruct(recon.shape, jnp.float32),
                   jax.ShapeDtypeStruct((1, 1), jnp.float32)),
    )(norm_x, recon, smoothed)
    return norm_copy, reg[0, 0]


# --------------------------------------------------------------------------
# Parameters + full forward
# --------------------------------------------------------------------------

def init_params(key, original_dim, intermediate_dim, latent_dim, heads):
    def glorot(k, shape):
        fan_in, fan_out = shape[-2], shape[-1]
        limit = (6.0 / (fan_in + fan_out)) ** 0.5
        return jax.random.uniform(k, shape, jnp.float32, -limit, limit)

    ks = jax.random.split(key, 13)
    return {
        "conv1_w": glorot(ks[0], (heads, original_dim, intermediate_dim)),
        "conv1_asrc": glorot(ks[1], (heads, intermediate_dim, 1)),
        "conv1_adst": glorot(ks[2], (heads, intermediate_dim, 1)),
        "conv1_b": jnp.zeros((intermediate_dim,), jnp.float32),
        "conv2_w": glorot(ks[3], (heads, intermediate_dim, intermediate_dim)),
        "conv2_asrc": glorot(ks[4], (heads, intermediate_dim, 1)),
        "conv2_adst": glorot(ks[5], (heads, intermediate_dim, 1)),
        "conv2_b": jnp.zeros((intermediate_dim,), jnp.float32),
        "conv3_w": glorot(ks[6], (1, intermediate_dim, latent_dim)),
        "conv3_asrc": glorot(ks[7], (1, latent_dim, 1)),
        "conv3_adst": glorot(ks[8], (1, latent_dim, 1)),
        "conv3_b": jnp.zeros((latent_dim,), jnp.float32),
        "mean_w": glorot(ks[9], (latent_dim, latent_dim)),
        "mean_b": jnp.zeros((latent_dim,), jnp.float32),
        "var_w": glorot(ks[10], (latent_dim, latent_dim)),
        "var_b": jnp.zeros((latent_dim,), jnp.float32),
        "dec1_w": glorot(ks[11], (latent_dim, intermediate_dim)),
        "dec1_b": jnp.zeros((intermediate_dim,), jnp.float32),
        "dec2_w": glorot(ks[12], (intermediate_dim, original_dim)),
        "dec2_b": jnp.zeros((original_dim,), jnp.float32),
    }


def scoiget_forward(params, x, edge_index, edge_attr=None, kl_weights=0.5, tile_n=128):
    n, _ = x.shape
    # tile must be a multiple of 32 (covers bf16/f32 sublane tiling) and divide n_pad
    tile_n = _round_up(min(tile_n, _round_up(n, 32)), 32)
    n_pad = _round_up(n, tile_n)

    x_pad = jnp.pad(x, ((0, n_pad - n), (0, 0)))

    row, col = edge_index[0], edge_index[1]
    # Dense bf16 adjacency mask: adj[dst, src] = 1 for each edge plus self-loops
    # (self-loops on padded rows too, so every softmax row has >= 1 edge).
    # For very large graphs this would be replaced with CSR neighbour lists +
    # PrefetchScalarGridSpec; dense bf16 keeps it simple here.
    adj = jnp.zeros((n_pad, n_pad), jnp.bfloat16)
    adj = adj.at[col, row].set(1.0)
    diag = jnp.arange(n_pad)
    adj = adj.at[diag, diag].set(1.0)

    # Encoder: 3x GATConv (concat=False)
    h = gat_conv(x_pad, params["conv1_w"], params["conv1_asrc"], params["conv1_adst"],
                 params["conv1_b"], adj, tile_n=tile_n, apply_relu=True)
    h = gat_conv(h, params["conv2_w"], params["conv2_asrc"], params["conv2_adst"],
                 params["conv2_b"], adj, tile_n=tile_n, apply_relu=True)
    z = gat_conv(h, params["conv3_w"], params["conv3_asrc"], params["conv3_adst"],
                 params["conv3_b"], adj, tile_n=tile_n, apply_relu=False)

    # Fused dense_mean / dense_var / KL / decoder
    recon_pad, kl_pad = vae_decoder_kl(z, params, kl_weights=kl_weights, tile_n=tile_n)
    recon = recon_pad[:n]
    kl = kl_pad[:n, 0]

    # CNEncoder on the un-padded tensors (global min/max/mean must not see padding)
    norm_copy, reg_loss = cn_encoder(x, recon, edge_index)
    return norm_copy, recon, kl, reg_loss


# --------------------------------------------------------------------------

if __name__ == "__main__":
    N = 80
    original_dim, intermediate_dim, latent_dim, heads = 64, 32, 16, 4

    key = jax.random.PRNGKey(0)
    k_x, k_p = jax.random.split(key)
    x = jax.random.normal(k_x, (N, original_dim), jnp.float32)

    # bidirectional ring graph
    src = jnp.arange(N, dtype=jnp.int32)
    dst = (src + 1) % N
    edge_index = jnp.stack(
        [jnp.concatenate([src, dst]), jnp.concatenate([dst, src])], axis=0)
    edge_attr = jnp.ones((edge_index.shape[1], 1), jnp.float32)  # unused by forward

    params = init_params(k_p, original_dim, intermediate_dim, latent_dim, heads)

    fwd = jax.jit(functools.partial(scoiget_forward, kl_weights=0.5, tile_n=32))
    norm_copy, recon, kl_loss, reg_loss = fwd(params, x, edge_index, edge_attr)
    jax.block_until_ready((norm_copy, recon, kl_loss, reg_loss))

    assert norm_copy.shape == (N, original_dim)
    assert recon.shape == (N, original_dim)
    assert kl_loss.shape == (N,)
    assert reg_loss.shape == ()
    print("KERNEL_OK")
</pallas_src>

<mosaic_0001>
module attributes {stable_mosaic.version = 11 : i64} {
  func.func private @main(%arg0: i32) attributes {dimension_semantics = [#tpu.dimension_semantics<core_parallel>], iteration_bounds = array<i64: 2>, tpu.core_type = #tpu.core_type<sc_scalar_subcore>, window_params = []} {
    return
  }
}

module attributes {stable_mosaic.version = 11 : i64} {
  func.func private @main(%arg0: i32) attributes {dimension_semantics = [#tpu.dimension_semantics<core_parallel>], iteration_bounds = array<i64: 2>, tpu.core_type = #tpu.core_type<sc_scalar_subcore>, window_params = []} {
    return
  }
}

module attributes {stable_mosaic.version = 11 : i64} {
  func.func @_gat_transform_kernel(%arg0: i32, %arg1: i32, %arg2: memref<32x64xf32, #tpu.memory_space<vmem>>, %arg3: memref<1x64x32xbf16, #tpu.memory_space<vmem>>, %arg4: memref<1x32x1xbf16, #tpu.memory_space<vmem>>, %arg5: memref<1x32x1xbf16, #tpu.memory_space<vmem>>, %arg6: memref<1x32x32xbf16, #tpu.memory_space<vmem>>, %arg7: memref<1x32x1xf32, #tpu.memory_space<vmem>>, %arg8: memref<1x32x1xf32, #tpu.memory_space<vmem>>) attributes {dimension_semantics = [#tpu.dimension_semantics<parallel>, #tpu.dimension_semantics<arbitrary>], iteration_bounds = array<i64: 3, 4>, scalar_prefetch = 0 : i64, scratch_operands = 0 : i64, tpu.core_type = #tpu.core_type<tc>, window_params = [{transform_indices = @transform_0, window_bounds = array<i64: 32, 64>}, {transform_indices = @transform_1, window_bounds = array<i64: 1, 64, 32>}, {transform_indices = @transform_2, window_bounds = array<i64: 1, 32, 1>}, {transform_indices = @transform_3, window_bounds = array<i64: 1, 32, 1>}, {transform_indices = @transform_4, window_bounds = array<i64: 1, 32, 32>}, {transform_indices = @transform_5, window_bounds = array<i64: 1, 32, 1>}, {transform_indices = @transform_6, window_bounds = array<i64: 1, 32, 1>}]} {
    %c0 = arith.constant 0 : index
    %c0_0 = arith.constant 0 : index
    %0 = vector.load %arg2[%c0, %c0_0] : memref<32x64xf32, #tpu.memory_space<vmem>>, vector<32x64xf32>
    %1 = arith.truncf %0 : vector<32x64xf32> to vector<32x64xbf16>
    %c0_1 = arith.constant 0 : index
    %c0_2 = arith.constant 0 : index
    %c0_3 = arith.constant 0 : index
    %2 = vector.load %arg3[%c0_1, %c0_2, %c0_3] : memref<1x64x32xbf16, #tpu.memory_space<vmem>>, vector<1x64x32xbf16>
    %3 = vector.shape_cast %2 : vector<1x64x32xbf16> to vector<64x32xbf16>
    %cst = arith.constant dense<0.000000e+00> : vector<32x32xf32>
    %4 = tpu.matmul %1, %3, %cst {dimension_numbers = #tpu.dot_dimension_numbers<[1], [0], [0], [1], [0, 0, 1, 1], [], []>} : vector<32x64xbf16>, vector<64x32xbf16>, vector<32x32xf32> -> vector<32x32xf32>
    %5 = arith.truncf %4 : vector<32x32xf32> to vector<32x32xbf16>
    %c0_4 = arith.constant 0 : index
    %c0_5 = arith.constant 0 : index
    %c0_6 = arith.constant 0 : index
    %6 = vector.load %arg4[%c0_4, %c0_5, %c0_6] : memref<1x32x1xbf16, #tpu.memory_space<vmem>>, vector<1x32x1xbf16>
    %7 = vector.shape_cast %6 : vector<1x32x1xbf16> to vector<32x1xbf16>
    %cst_7 = arith.constant dense<0.000000e+00> : vector<32x1xf32>
    %8 = tpu.matmul %5, %7, %cst_7 {dimension_numbers = #tpu.dot_dimension_numbers<[1], [0], [0], [1], [0, 0, 1, 1], [], []>} : vector<32x32xbf16>, vector<32x1xbf16>, vector<32x1xf32> -> vector<32x1xf32>
    %c0_8 = arith.constant 0 : index
    %c0_9 = arith.constant 0 : index
    %c0_10 = arith.constant 0 : index
    %9 = vector.load %arg7[%c0_8, %c0_9, %c0_10] : memref<1x32x1xf32, #tpu.memory_space<vmem>>, vector<1x32x1xf32>
    %10 = vector.shape_cast %9 : vector<1x32x1xf32> to vector<32x1xf32>
    %11 = vector.shape_cast %8 : vector<32x1xf32> to vector<1x32x1xf32>
    tpu.vector_store %arg7[%c0_8, %c0_9, %c0_10], %11 {strides = array<i32>} : memref<1x32x1xf32, #tpu.memory_space<vmem>>, vector<1x32x1xf32>,
    %c0_11 = arith.constant 0 : index
    %c0_12 = arith.constant 0 : index
    %c0_13 = arith.constant 0 : index
    %12 = vector.load %arg5[%c0_11, %c0_12, %c0_13] : memref<1x32x1xbf16, #tpu.memory_space<vmem>>, vector<1x32x1xbf16>
    %13 = vector.shape_cast %12 : vector<1x32x1xbf16> to vector<32x1xbf16>
    %cst_14 = arith.constant dense<0.000000e+00> : vector<32x1xf32>
    %14 = tpu.matmul %5, %13, %cst_14 {dimension_numbers = #tpu.dot_dimension_numbers<[1], [0], [0], [1], [0, 0, 1, 1], [], []>} : vector<32x32xbf16>, vector<32x1xbf16>, vector<32x1xf32> -> vector<32x1xf32>
    %c0_15 = arith.constant 0 : index
    %c0_16 = arith.constant 0 : index
    %c0_17 = arith.constant 0 : index
    %15 = vector.load %arg8[%c0_15, %c0_16, %c0_17] : memref<1x32x1xf32, #tpu.memory_space<vmem>>, vector<1x32x1xf32>
    %16 = vector.shape_cast %15 : vector<1x32x1xf32> to vector<32x1xf32>
    %17 = vector.shape_cast %14 : vector<32x1xf32> to vector<1x32x1xf32>
    tpu.vector_store %arg8[%c0_15, %c0_16, %c0_17], %17 {strides = array<i32>} : memref<1x32x1xf32, #tpu.memory_space<vmem>>, vector<1x32x1xf32>,
    %c0_18 = arith.constant 0 : index
    %c0_19 = arith.constant 0 : index
    %c0_20 = arith.constant 0 : index
    %18 = vector.load %arg6[%c0_18, %c0_19, %c0_20] : memref<1x32x32xbf16, #tpu.memory_space<vmem>>, vector<1x32x32xbf16>
    %19 = vector.shape_cast %18 : vector<1x32x32xbf16> to vector<32x32xbf16>
    %20 = vector.shape_cast %5 : vector<32x32xbf16> to vector<1x32x32xbf16>
    tpu.vector_store %arg6[%c0_18, %c0_19, %c0_20], %20 {strides = array<i32>} : memref<1x32x32xbf16, #tpu.memory_space<vmem>>, vector<1x32x32xbf16>,
    return
  }
  func.func @transform_0(%arg0: i32, %arg1: i32) -> (i32, i32) {
    %c0_i32 = arith.constant 0 : i32
    %c0_i32_0 = arith.constant 0 : i32
    return %arg0, %c0_i32 : i32, i32
  }
  func.func @transform_1(%arg0: i32, %arg1: i32) -> (i32, i32, i32) {
    %c0_i32 = arith.constant 0 : i32
    %c0_i32_0 = arith.constant 0 : i32
    %c0_i32_1 = arith.constant 0 : i32
    return %arg1, %c0_i32, %c0_i32_0 : i32, i32, i32
  }
  func.func @transform_2(%arg0: i32, %arg1: i32) -> (i32, i32, i32) {
    %c0_i32 = arith.constant 0 : i32
    %c0_i32_0 = arith.constant 0 : i32
    %c0_i32_1 = arith.constant 0 : i32
    return %arg1, %c0_i32, %c0_i32_0 : i32, i32, i32
  }
  func.func @transform_3(%arg0: i32, %arg1: i32) -> (i32, i32, i32) {
    %c0_i32 = arith.constant 0 : i32
    %c0_i32_0 = arith.constant 0 : i32
    %c0_i32_1 = arith.constant 0 : i32
    return %arg1, %c0_i32, %c0_i32_0 : i32, i32, i32
  }
  func.func @transform_4(%arg0: i32, %arg1: i32) -> (i32, i32, i32) {
    %c0_i32 = arith.constant 0 : i32
    %c0_i32_0 = arith.constant 0 : i32
    return %arg1, %arg0, %c0_i32 : i32, i32, i32
  }
  func.func @transform_5(%arg0: i32, %arg1: i32) -> (i32, i32, i32) {
    %c0_i32 = arith.constant 0 : i32
    %c0_i32_0 = arith.constant 0 : i32
    return %arg1, %arg0, %c0_i32 : i32, i32, i32
  }
  func.func @transform_6(%arg0: i32, %arg1: i32) -> (i32, i32, i32) {
    %c0_i32 = arith.constant 0 : i32
    %c0_i32_0 = arith.constant 0 : i32
    return %arg1, %arg0, %c0_i32 : i32, i32, i32
  }
}

module attributes {stable_mosaic.version = 11 : i64} {
  func.func @_gat_attn_kernel(%arg0: i32, %arg1: i32, %arg2: memref<1x96x32xbf16, #tpu.memory_space<vmem>>, %arg3: memref<1x1x96xf32, #tpu.memory_space<vmem>>, %arg4: memref<1x32x1xf32, #tpu.memory_space<vmem>>, %arg5: memref<32x96xbf16, #tpu.memory_space<vmem>>, %arg6: memref<1x32xf32, #tpu.memory_space<vmem>>, %arg7: memref<32x32xf32, #tpu.memory_space<vmem>>, %arg8: memref<32x32xf32, #tpu.memory_space<vmem>>) attributes {dimension_semantics = [#tpu.dimension_semantics<parallel>, #tpu.dimension_semantics<arbitrary>], iteration_bounds = array<i64: 3, 4>, scalar_prefetch = 0 : i64, scratch_operands = 1 : i64, tpu.core_type = #tpu.core_type<tc>, window_params = [{transform_indices = @transform_0, window_bounds = array<i64: 1, 96, 32>}, {transform_indices = @transform_1, window_bounds = array<i64: 1, 1, 96>}, {transform_indices = @transform_2, window_bounds = array<i64: 1, 32, 1>}, {transform_indices = @transform_3, window_bounds = array<i64: 32, 96>}, {pipeline_mode = #tpu.pipeline_mode<synchronous>, transform_indices = @transform_4, window_bounds = array<i64: 1, 32>}, {transform_indices = @transform_5, window_bounds = array<i64: 32, 32>}]} {
    %c0_i32 = arith.constant 0 : i32
    %0 = arith.cmpi eq, %arg1, %c0_i32 : i32
    %1 = arith.extui %0 : i1 to i32
    %c0_i32_0 = arith.constant 0 : i32
    %2 = arith.cmpi ne, %1, %c0_i32_0 : i32
    scf.if %2 {
      %cst_23 = arith.constant 0.000000e+00 : f32
      %43 = vector.broadcast %cst_23 : f32 to vector<32x32xf32>
      %c0_24 = arith.constant 0 : index
      %c0_25 = arith.constant 0 : index
      %44 = vector.load %arg8[%c0_24, %c0_25] : memref<32x32xf32, #tpu.memory_space<vmem>>, vector<32x32xf32>
      tpu.vector_store %arg8[%c0_24, %c0_25], %43 {strides = array<i32>} : memref<32x32xf32, #tpu.memory_space<vmem>>, vector<32x32xf32>,
    } else {
    }
    %c0 = arith.constant 0 : index
    %c0_1 = arith.constant 0 : index
    %c0_2 = arith.constant 0 : index
    %3 = vector.load %arg4[%c0, %c0_1, %c0_2] : memref<1x32x1xf32, #tpu.memory_space<vmem>>, vector<1x32x1xf32>
    %4 = vector.shape_cast %3 : vector<1x32x1xf32> to vector<32x1xf32>
    %c0_3 = arith.constant 0 : index
    %c0_4 = arith.constant 0 : index
    %c0_5 = arith.constant 0 : index
    %5 = vector.load %arg3[%c0_3, %c0_4, %c0_5] : memref<1x1x96xf32, #tpu.memory_space<vmem>>, vector<1x1x96xf32>
    %6 = vector.shape_cast %5 : vector<1x1x96xf32> to vector<1x96xf32>
    %7 = vector.broadcast %4 : vector<32x1xf32> to vector<32x96xf32>
    %8 = vector.broadcast %6 : vector<1x96xf32> to vector<32x96xf32>
    %9 = arith.addf %7, %8 : vector<32x96xf32>
    %cst = arith.constant 0.000000e+00 : f32
    %10 = vector.broadcast %cst : f32 to vector<32x96xf32>
    %11 = arith.cmpf ogt, %9, %10 : vector<32x96xf32>
    %cst_6 = arith.constant 2.000000e-01 : f32
    %12 = vector.broadcast %cst_6 : f32 to vector<32x96xf32>
    %13 = arith.mulf %12, %9 : vector<32x96xf32>
    %14 = arith.select %11, %9, %13 : vector<32x96xi1>, vector<32x96xf32>
    %c0_7 = arith.constant 0 : index
    %c0_8 = arith.constant 0 : index
    %15 = vector.load %arg5[%c0_7, %c0_8] : memref<32x96xbf16, #tpu.memory_space<vmem>>, vector<32x96xbf16>
    %16 = arith.extf %15 : vector<32x96xbf16> to vector<32x96xf32>
    %cst_9 = arith.constant 0.000000e+00 : f32
    %17 = vector.broadcast %cst_9 : f32 to vector<32x96xf32>
    %18 = arith.cmpf ogt, %16, %17 : vector<32x96xf32>
    %cst_10 = arith.constant -1.000000e+30 : f32
    %19 = vector.broadcast %cst_10 : f32 to vector<32x96xf32>
    %20 = arith.select %18, %14, %19 : vector<32x96xi1>, vector<32x96xf32>
    %cst_11 = arith.constant dense<0xFF800000> : vector<32xf32>
    %21 = vector.multi_reduction <maximumf>, %20, %cst_11 [1] : vector<32x96xf32> to vector<32xf32>
    %22 = vector.shape_cast %21 : vector<32xf32> to vector<32x1xf32>
    %23 = vector.broadcast %22 : vector<32x1xf32> to vector<32x96xf32>
    %24 = arith.subf %20, %23 : vector<32x96xf32>
    %25 = math.exp %24 : vector<32x96xf32>
    %cst_12 = arith.constant dense<0.000000e+00> : vector<32xf32>
    %26 = vector.multi_reduction <add>, %25, %cst_12 [1] : vector<32x96xf32> to vector<32xf32>
    %27 = vector.shape_cast %26 : vector<32xf32> to vector<32x1xf32>
    %28 = arith.truncf %25 : vector<32x96xf32> to vector<32x96xbf16>
    %c0_13 = arith.constant 0 : index
    %c0_14 = arith.constant 0 : index
    %c0_15 = arith.constant 0 : index
    %29 = vector.load %arg2[%c0_13, %c0_14, %c0_15] : memref<1x96x32xbf16, #tpu.memory_space<vmem>>, vector<1x96x32xbf16>
    %30 = vector.shape_cast %29 : vector<1x96x32xbf16> to vector<96x32xbf16>
    %cst_16 = arith.constant dense<0.000000e+00> : vector<32x32xf32>
    %31 = tpu.matmul %28, %30, %cst_16 {dimension_numbers = #tpu.dot_dimension_numbers<[1], [0], [0], [1], [0, 0, 1, 1], [], []>} : vector<32x96xbf16>, vector<96x32xbf16>, vector<32x32xf32> -> vector<32x32xf32>
    %c0_17 = arith.constant 0 : index
    %c0_18 = arith.constant 0 : index
    %32 = vector.load %arg8[%c0_17, %c0_18] : memref<32x32xf32, #tpu.memory_space<vmem>>, vector<32x32xf32>
    %cst_19 = arith.constant 1.000000e-16 : f32
    %33 = vector.broadcast %cst_19 : f32 to vector<32x1xf32>
    %34 = arith.addf %27, %33 : vector<32x1xf32>
    %35 = tpu.reciprocal %34 {approx = true} : vector<32x1xf32> -> vector<32x1xf32>
    %36 = vector.broadcast %35 : vector<32x1xf32> to vector<32x32xf32>
    %37 = arith.mulf %31, %36 : vector<32x32xf32>
    %38 = arith.addf %32, %37 : vector<32x32xf32>
    %c0_20 = arith.constant 0 : index
    %c0_21 = arith.constant 0 : index
    %39 = vector.load %arg8[%c0_20, %c0_21] : memref<32x32xf32, #tpu.memory_space<vmem>>, vector<32x32xf32>
    tpu.vector_store %arg8[%c0_20, %c0_21], %38 {strides = array<i32>} : memref<32x32xf32, #tpu.memory_space<vmem>>, vector<32x32xf32>,
    %c3_i32 = arith.constant 3 : i32
    %40 = arith.cmpi eq, %arg1, %c3_i32 : i32
    %41 = arith.extui %40 : i1 to i32
    %c0_i32_22 = arith.constant 0 : i32
    %42 = arith.cmpi ne, %41, %c0_i32_22 : i32
    scf.if %42 {
      %c0_23 = arith.constant 0 : index
      %c0_24 = arith.constant 0 : index
      %43 = vector.load %arg8[%c0_23, %c0_24] : memref<32x32xf32, #tpu.memory_space<vmem>>, vector<32x32xf32>
      %cst_25 = arith.constant 2.500000e-01 : f32
      %44 = vector.broadcast %cst_25 : f32 to vector<32x32xf32>
      %45 = arith.mulf %43, %44 : vector<32x32xf32>
      %c0_26 = arith.constant 0 : index
      %c0_27 = arith.constant 0 : index
      %46 = vector.load %arg6[%c0_26, %c0_27] : memref<1x32xf32, #tpu.memory_space<vmem>>, vector<1x32xf32>
      %47 = vector.broadcast %46 : vector<1x32xf32> to vector<32x32xf32>
      %48 = arith.addf %45, %47 : vector<32x32xf32>
      %cst_28 = arith.constant 0.000000e+00 : f32
      %49 = vector.broadcast %cst_28 : f32 to vector<32x32xf32>
      %50 = arith.maximumf %48, %49 : vector<32x32xf32>
      %c0_29 = arith.constant 0 : index
      %c0_30 = arith.constant 0 : index
      %51 = vector.load %arg7[%c0_29, %c0_30] : memref<32x32xf32, #tpu.memory_space<vmem>>, vector<32x32xf32>
      tpu.vector_store %arg7[%c0_29, %c0_30], %50 {strides = array<i32>} : memref<32x32xf32, #tpu.memory_space<vmem>>, vector<32x32xf32>,
    } else {
    }
    return
  }
  func.func @transform_0(%arg0: i32, %arg1: i32) -> (i32, i32, i32) {
    %c0_i32 = arith.constant 0 : i32
    %c0_i32_0 = arith.constant 0 : i32
    %c0_i32_1 = arith.constant 0 : i32
    return %arg1, %c0_i32, %c0_i32_0 : i32, i32, i32
  }
  func.func @transform_1(%arg0: i32, %arg1: i32) -> (i32, i32, i32) {
    %c0_i32 = arith.constant 0 : i32
    %c0_i32_0 = arith.constant 0 : i32
    %c0_i32_1 = arith.constant 0 : i32
    return %arg1, %c0_i32, %c0_i32_0 : i32, i32, i32
  }
  func.func @transform_2(%arg0: i32, %arg1: i32) -> (i32, i32, i32) {
    %c0_i32 = arith.constant 0 : i32
    %c0_i32_0 = arith.constant 0 : i32
    return %arg1, %arg0, %c0_i32 : i32, i32, i32
  }
  func.func @transform_3(%arg0: i32, %arg1: i32) -> (i32, i32) {
    %c0_i32 = arith.constant 0 : i32
    %c0_i32_0 = arith.constant 0 : i32
    return %arg0, %c0_i32 : i32, i32
  }
  func.func @transform_4(%arg0: i32, %arg1: i32) -> (i32, i32) {
    %c0_i32 = arith.constant 0 : i32
    %c0_i32_0 = arith.constant 0 : i32
    %c0_i32_1 = arith.constant 0 : i32
    return %c0_i32, %c0_i32_0 : i32, i32
  }
  func.func @transform_5(%arg0: i32, %arg1: i32) -> (i32, i32) {
    %c0_i32 = arith.constant 0 : i32
    %c0_i32_0 = arith.constant 0 : i32
    return %arg0, %c0_i32 : i32, i32
  }
}

module attributes {stable_mosaic.version = 11 : i64} {
  func.func @_gat_transform_kernel(%arg0: i32, %arg1: i32, %arg2: memref<32x32xf32, #tpu.memory_space<vmem>>, %arg3: memref<1x32x32xbf16, #tpu.memory_space<vmem>>, %arg4: memref<1x32x1xbf16, #tpu.memory_space<vmem>>, %arg5: memref<1x32x1xbf16, #tpu.memory_space<vmem>>, %arg6: memref<1x32x32xbf16, #tpu.memory_space<vmem>>, %arg7: memref<1x32x1xf32, #tpu.memory_space<vmem>>, %arg8: memref<1x32x1xf32, #tpu.memory_space<vmem>>) attributes {dimension_semantics = [#tpu.dimension_semantics<parallel>, #tpu.dimension_semantics<arbitrary>], iteration_bounds = array<i64: 3, 4>, scalar_prefetch = 0 : i64, scratch_operands = 0 : i64, tpu.core_type = #tpu.core_type<tc>, window_params = [{transform_indices = @transform_0, window_bounds = array<i64: 32, 32>}, {transform_indices = @transform_1, window_bounds = array<i64: 1, 32, 32>}, {transform_indices = @transform_2, window_bounds = array<i64: 1, 32, 1>}, {transform_indices = @transform_3, window_bounds = array<i64: 1, 32, 1>}, {transform_indices = @transform_4, window_bounds = array<i64: 1, 32, 32>}, {transform_indices = @transform_5, window_bounds = array<i64: 1, 32, 1>}, {transform_indices = @transform_6, window_bounds = array<i64: 1, 32, 1>}]} {
    %c0 = arith.constant 0 : index
    %c0_0 = arith.constant 0 : index
    %0 = vector.load %arg2[%c0, %c0_0] : memref<32x32xf32, #tpu.memory_space<vmem>>, vector<32x32xf32>
    %1 = arith.truncf %0 : vector<32x32xf32> to vector<32x32xbf16>
    %c0_1 = arith.constant 0 : index
    %c0_2 = arith.constant 0 : index
    %c0_3 = arith.constant 0 : index
    %2 = vector.load %arg3[%c0_1, %c0_2, %c0_3] : memref<1x32x32xbf16, #tpu.memory_space<vmem>>, vector<1x32x32xbf16>
    %3 = vector.shape_cast %2 : vector<1x32x32xbf16> to vector<32x32xbf16>
    %cst = arith.constant dense<0.000000e+00> : vector<32x32xf32>
    %4 = tpu.matmul %1, %3, %cst {dimension_numbers = #tpu.dot_dimension_numbers<[1], [0], [0], [1], [0, 0, 1, 1], [], []>} : vector<32x32xbf16>, vector<32x32xbf16>, vector<32x32xf32> -> vector<32x32xf32>
    %5 = arith.truncf %4 : vector<32x32xf32> to vector<32x32xbf16>
    %c0_4 = arith.constant 0 : index
    %c0_5 = arith.constant 0 : index
    %c0_6 = arith.constant 0 : index
    %6 = vector.load %arg4[%c0_4, %c0_5, %c0_6] : memref<1x32x1xbf16, #tpu.memory_space<vmem>>, vector<1x32x1xbf16>
    %7 = vector.shape_cast %6 : vector<1x32x1xbf16> to vector<32x1xbf16>
    %cst_7 = arith.constant dense<0.000000e+00> : vector<32x1xf32>
    %8 = tpu.matmul %5, %7, %cst_7 {dimension_numbers = #tpu.dot_dimension_numbers<[1], [0], [0], [1], [0, 0, 1, 1], [], []>} : vector<32x32xbf16>, vector<32x1xbf16>, vector<32x1xf32> -> vector<32x1xf32>
    %c0_8 = arith.constant 0 : index
    %c0_9 = arith.constant 0 : index
    %c0_10 = arith.constant 0 : index
    %9 = vector.load %arg7[%c0_8, %c0_9, %c0_10] : memref<1x32x1xf32, #tpu.memory_space<vmem>>, vector<1x32x1xf32>
    %10 = vector.shape_cast %9 : vector<1x32x1xf32> to vector<32x1xf32>
    %11 = vector.shape_cast %8 : vector<32x1xf32> to vector<1x32x1xf32>
    tpu.vector_store %arg7[%c0_8, %c0_9, %c0_10], %11 {strides = array<i32>} : memref<1x32x1xf32, #tpu.memory_space<vmem>>, vector<1x32x1xf32>,
    %c0_11 = arith.constant 0 : index
    %c0_12 = arith.constant 0 : index
    %c0_13 = arith.constant 0 : index
    %12 = vector.load %arg5[%c0_11, %c0_12, %c0_13] : memref<1x32x1xbf16, #tpu.memory_space<vmem>>, vector<1x32x1xbf16>
    %13 = vector.shape_cast %12 : vector<1x32x1xbf16> to vector<32x1xbf16>
    %cst_14 = arith.constant dense<0.000000e+00> : vector<32x1xf32>
    %14 = tpu.matmul %5, %13, %cst_14 {dimension_numbers = #tpu.dot_dimension_numbers<[1], [0], [0], [1], [0, 0, 1, 1], [], []>} : vector<32x32xbf16>, vector<32x1xbf16>, vector<32x1xf32> -> vector<32x1xf32>
    %c0_15 = arith.constant 0 : index
    %c0_16 = arith.constant 0 : index
    %c0_17 = arith.constant 0 : index
    %15 = vector.load %arg8[%c0_15, %c0_16, %c0_17] : memref<1x32x1xf32, #tpu.memory_space<vmem>>, vector<1x32x1xf32>
    %16 = vector.shape_cast %15 : vector<1x32x1xf32> to vector<32x1xf32>
    %17 = vector.shape_cast %14 : vector<32x1xf32> to vector<1x32x1xf32>
    tpu.vector_store %arg8[%c0_15, %c0_16, %c0_17], %17 {strides = array<i32>} : memref<1x32x1xf32, #tpu.memory_space<vmem>>, vector<1x32x1xf32>,
    %c0_18 = arith.constant 0 : index
    %c0_19 = arith.constant 0 : index
    %c0_20 = arith.constant 0 : index
    %18 = vector.load %arg6[%c0_18, %c0_19, %c0_20] : memref<1x32x32xbf16, #tpu.memory_space<vmem>>, vector<1x32x32xbf16>
    %19 = vector.shape_cast %18 : vector<1x32x32xbf16> to vector<32x32xbf16>
    %20 = vector.shape_cast %5 : vector<32x32xbf16> to vector<1x32x32xbf16>
    tpu.vector_store %arg6[%c0_18, %c0_19, %c0_20], %20 {strides = array<i32>} : memref<1x32x32xbf16, #tpu.memory_space<vmem>>, vector<1x32x32xbf16>,
    return
  }
  func.func @transform_0(%arg0: i32, %arg1: i32) -> (i32, i32) {
    %c0_i32 = arith.constant 0 : i32
    %c0_i32_0 = arith.constant 0 : i32
    return %arg0, %c0_i32 : i32, i32
  }
  func.func @transform_1(%arg0: i32, %arg1: i32) -> (i32, i32, i32) {
    %c0_i32 = arith.constant 0 : i32
    %c0_i32_0 = arith.constant 0 : i32
    %c0_i32_1 = arith.constant 0 : i32
    return %arg1, %c0_i32, %c0_i32_0 : i32, i32, i32
  }
  func.func @transform_2(%arg0: i32, %arg1: i32) -> (i32, i32, i32) {
    %c0_i32 = arith.constant 0 : i32
    %c0_i32_0 = arith.constant 0 : i32
    %c0_i32_1 = arith.constant 0 : i32
    return %arg1, %c0_i32, %c0_i32_0 : i32, i32, i32
  }
  func.func @transform_3(%arg0: i32, %arg1: i32) -> (i32, i32, i32) {
    %c0_i32 = arith.constant 0 : i32
    %c0_i32_0 = arith.constant 0 : i32
    %c0_i32_1 = arith.constant 0 : i32
    return %arg1, %c0_i32, %c0_i32_0 : i32, i32, i32
  }
  func.func @transform_4(%arg0: i32, %arg1: i32) -> (i32, i32, i32) {
    %c0_i32 = arith.constant 0 : i32
    %c0_i32_0 = arith.constant 0 : i32
    return %arg1, %arg0, %c0_i32 : i32, i32, i32
  }
  func.func @transform_5(%arg0: i32, %arg1: i32) -> (i32, i32, i32) {
    %c0_i32 = arith.constant 0 : i32
    %c0_i32_0 = arith.constant 0 : i32
    return %arg1, %arg0, %c0_i32 : i32, i32, i32
  }
  func.func @transform_6(%arg0: i32, %arg1: i32) -> (i32, i32, i32) {
    %c0_i32 = arith.constant 0 : i32
    %c0_i32_0 = arith.constant 0 : i32
    return %arg1, %arg0, %c0_i32 : i32, i32, i32
  }
}

module attributes {stable_mosaic.version = 11 : i64} {
  func.func @_gat_transform_kernel(%arg0: i32, %arg1: i32, %arg2: memref<32x32xf32, #tpu.memory_space<vmem>>, %arg3: memref<1x32x16xbf16, #tpu.memory_space<vmem>>, %arg4: memref<1x16x1xbf16, #tpu.memory_space<vmem>>, %arg5: memref<1x16x1xbf16, #tpu.memory_space<vmem>>, %arg6: memref<1x32x16xbf16, #tpu.memory_space<vmem>>, %arg7: memref<1x32x1xf32, #tpu.memory_space<vmem>>, %arg8: memref<1x32x1xf32, #tpu.memory_space<vmem>>) attributes {dimension_semantics = [#tpu.dimension_semantics<parallel>, #tpu.dimension_semantics<arbitrary>], iteration_bounds = array<i64: 3, 1>, scalar_prefetch = 0 : i64, scratch_operands = 0 : i64, tpu.core_type = #tpu.core_type<tc>, window_params = [{transform_indices = @transform_0, window_bounds = array<i64: 32, 32>}, {transform_indices = @transform_1, window_bounds = array<i64: 1, 32, 16>}, {transform_indices = @transform_2, window_bounds = array<i64: 1, 16, 1>}, {transform_indices = @transform_3, window_bounds = array<i64: 1, 16, 1>}, {transform_indices = @transform_4, window_bounds = array<i64: 1, 32, 16>}, {transform_indices = @transform_5, window_bounds = array<i64: 1, 32, 1>}, {transform_indices = @transform_6, window_bounds = array<i64: 1, 32, 1>}]} {
    %c0 = arith.constant 0 : index
    %c0_0 = arith.constant 0 : index
    %0 = vector.load %arg2[%c0, %c0_0] : memref<32x32xf32, #tpu.memory_space<vmem>>, vector<32x32xf32>
    %1 = arith.truncf %0 : vector<32x32xf32> to vector<32x32xbf16>
    %c0_1 = arith.constant 0 : index
    %c0_2 = arith.constant 0 : index
    %c0_3 = arith.constant 0 : index
    %2 = vector.load %arg3[%c0_1, %c0_2, %c0_3] : memref<1x32x16xbf16, #tpu.memory_space<vmem>>, vector<1x32x16xbf16>
    %3 = vector.shape_cast %2 : vector<1x32x16xbf16> to vector<32x16xbf16>
    %cst = arith.constant dense<0.000000e+00> : vector<32x16xf32>
    %4 = tpu.matmul %1, %3, %cst {dimension_numbers = #tpu.dot_dimension_numbers<[1], [0], [0], [1], [0, 0, 1, 1], [], []>} : vector<32x32xbf16>, vector<32x16xbf16>, vector<32x16xf32> -> vector<32x16xf32>
    %5 = arith.truncf %4 : vector<32x16xf32> to vector<32x16xbf16>
    %c0_4 = arith.constant 0 : index
    %c0_5 = arith.constant 0 : index
    %c0_6 = arith.constant 0 : index
    %6 = vector.load %arg4[%c0_4, %c0_5, %c0_6] : memref<1x16x1xbf16, #tpu.memory_space<vmem>>, vector<1x16x1xbf16>
    %7 = vector.shape_cast %6 : vector<1x16x1xbf16> to vector<16x1xbf16>
    %cst_7 = arith.constant dense<0.000000e+00> : vector<32x1xf32>
    %8 = tpu.matmul %5, %7, %cst_7 {dimension_numbers = #tpu.dot_dimension_numbers<[1], [0], [0], [1], [0, 0, 1, 1], [], []>} : vector<32x16xbf16>, vector<16x1xbf16>, vector<32x1xf32> -> vector<32x1xf32>
    %c0_8 = arith.constant 0 : index
    %c0_9 = arith.constant 0 : index
    %c0_10 = arith.constant 0 : index
    %9 = vector.load %arg7[%c0_8, %c0_9, %c0_10] : memref<1x32x1xf32, #tpu.memory_space<vmem>>, vector<1x32x1xf32>
    %10 = vector.shape_cast %9 : vector<1x32x1xf32> to vector<32x1xf32>
    %11 = vector.shape_cast %8 : vector<32x1xf32> to vector<1x32x1xf32>
    tpu.vector_store %arg7[%c0_8, %c0_9, %c0_10], %11 {strides = array<i32>} : memref<1x32x1xf32, #tpu.memory_space<vmem>>, vector<1x32x1xf32>,
    %c0_11 = arith.constant 0 : index
    %c0_12 = arith.constant 0 : index
    %c0_13 = arith.constant 0 : index
    %12 = vector.load %arg5[%c0_11, %c0_12, %c0_13] : memref<1x16x1xbf16, #tpu.memory_space<vmem>>, vector<1x16x1xbf16>
    %13 = vector.shape_cast %12 : vector<1x16x1xbf16> to vector<16x1xbf16>
    %cst_14 = arith.constant dense<0.000000e+00> : vector<32x1xf32>
    %14 = tpu.matmul %5, %13, %cst_14 {dimension_numbers = #tpu.dot_dimension_numbers<[1], [0], [0], [1], [0, 0, 1, 1], [], []>} : vector<32x16xbf16>, vector<16x1xbf16>, vector<32x1xf32> -> vector<32x1xf32>
    %c0_15 = arith.constant 0 : index
    %c0_16 = arith.constant 0 : index
    %c0_17 = arith.constant 0 : index
    %15 = vector.load %arg8[%c0_15, %c0_16, %c0_17] : memref<1x32x1xf32, #tpu.memory_space<vmem>>, vector<1x32x1xf32>
    %16 = vector.shape_cast %15 : vector<1x32x1xf32> to vector<32x1xf32>
    %17 = vector.shape_cast %14 : vector<32x1xf32> to vector<1x32x1xf32>
    tpu.vector_store %arg8[%c0_15, %c0_16, %c0_17], %17 {strides = array<i32>} : memref<1x32x1xf32, #tpu.memory_space<vmem>>, vector<1x32x1xf32>,
    %c0_18 = arith.constant 0 : index
    %c0_19 = arith.constant 0 : index
    %c0_20 = arith.constant 0 : index
    %18 = vector.load %arg6[%c0_18, %c0_19, %c0_20] : memref<1x32x16xbf16, #tpu.memory_space<vmem>>, vector<1x32x16xbf16>
    %19 = vector.shape_cast %18 : vector<1x32x16xbf16> to vector<32x16xbf16>
    %20 = vector.shape_cast %5 : vector<32x16xbf16> to vector<1x32x16xbf16>
    tpu.vector_store %arg6[%c0_18, %c0_19, %c0_20], %20 {strides = array<i32>} : memref<1x32x16xbf16, #tpu.memory_space<vmem>>, vector<1x32x16xbf16>,
    return
  }
  func.func @transform_0(%arg0: i32, %arg1: i32) -> (i32, i32) {
    %c0_i32 = arith.constant 0 : i32
    %c0_i32_0 = arith.constant 0 : i32
    return %arg0, %c0_i32 : i32, i32
  }
  func.func @transform_1(%arg0: i32, %arg1: i32) -> (i32, i32, i32) {
    %c0_i32 = arith.constant 0 : i32
    %c0_i32_0 = arith.constant 0 : i32
    %c0_i32_1 = arith.constant 0 : i32
    return %arg1, %c0_i32, %c0_i32_0 : i32, i32, i32
  }
  func.func @transform_2(%arg0: i32, %arg1: i32) -> (i32, i32, i32) {
    %c0_i32 = arith.constant 0 : i32
    %c0_i32_0 = arith.constant 0 : i32
    %c0_i32_1 = arith.constant 0 : i32
    return %arg1, %c0_i32, %c0_i32_0 : i32, i32, i32
  }
  func.func @transform_3(%arg0: i32, %arg1: i32) -> (i32, i32, i32) {
    %c0_i32 = arith.constant 0 : i32
    %c0_i32_0 = arith.constant 0 : i32
    %c0_i32_1 = arith.constant 0 : i32
    return %arg1, %c0_i32, %c0_i32_0 : i32, i32, i32
  }
  func.func @transform_4(%arg0: i32, %arg1: i32) -> (i32, i32, i32) {
    %c0_i32 = arith.constant 0 : i32
    %c0_i32_0 = arith.constant 0 : i32
    return %arg1, %arg0, %c0_i32 : i32, i32, i32
  }
  func.func @transform_5(%arg0: i32, %arg1: i32) -> (i32, i32, i32) {
    %c0_i32 = arith.constant 0 : i32
    %c0_i32_0 = arith.constant 0 : i32
    return %arg1, %arg0, %c0_i32 : i32, i32, i32
  }
  func.func @transform_6(%arg0: i32, %arg1: i32) -> (i32, i32, i32) {
    %c0_i32 = arith.constant 0 : i32
    %c0_i32_0 = arith.constant 0 : i32
    return %arg1, %arg0, %c0_i32 : i32, i32, i32
  }
}

module attributes {stable_mosaic.version = 11 : i64} {
  func.func @_gat_attn_kernel(%arg0: i32, %arg1: i32, %arg2: memref<1x96x16xbf16, #tpu.memory_space<vmem>>, %arg3: memref<1x1x96xf32, #tpu.memory_space<vmem>>, %arg4: memref<1x32x1xf32, #tpu.memory_space<vmem>>, %arg5: memref<32x96xbf16, #tpu.memory_space<vmem>>, %arg6: memref<1x16xf32, #tpu.memory_space<vmem>>, %arg7: memref<32x16xf32, #tpu.memory_space<vmem>>, %arg8: memref<32x16xf32, #tpu.memory_space<vmem>>) attributes {dimension_semantics = [#tpu.dimension_semantics<parallel>, #tpu.dimension_semantics<arbitrary>], iteration_bounds = array<i64: 3, 1>, scalar_prefetch = 0 : i64, scratch_operands = 1 : i64, tpu.core_type = #tpu.core_type<tc>, window_params = [{transform_indices = @transform_0, window_bounds = array<i64: 1, 96, 16>}, {transform_indices = @transform_1, window_bounds = array<i64: 1, 1, 96>}, {transform_indices = @transform_2, window_bounds = array<i64: 1, 32, 1>}, {transform_indices = @transform_3, window_bounds = array<i64: 32, 96>}, {pipeline_mode = #tpu.pipeline_mode<synchronous>, transform_indices = @transform_4, window_bounds = array<i64: 1, 16>}, {transform_indices = @transform_5, window_bounds = array<i64: 32, 16>}]} {
    %c0_i32 = arith.constant 0 : i32
    %0 = arith.cmpi eq, %arg1, %c0_i32 : i32
    %1 = arith.extui %0 : i1 to i32
    %c0_i32_0 = arith.constant 0 : i32
    %2 = arith.cmpi ne, %1, %c0_i32_0 : i32
    scf.if %2 {
      %cst_24 = arith.constant 0.000000e+00 : f32
      %43 = vector.broadcast %cst_24 : f32 to vector<32x16xf32>
      %c0_25 = arith.constant 0 : index
      %c0_26 = arith.constant 0 : index
      %44 = vector.load %arg8[%c0_25, %c0_26] : memref<32x16xf32, #tpu.memory_space<vmem>>, vector<32x16xf32>
      tpu.vector_store %arg8[%c0_25, %c0_26], %43 {strides = array<i32>} : memref<32x16xf32, #tpu.memory_space<vmem>>, vector<32x16xf32>,
    } else {
    }
    %c0 = arith.constant 0 : index
    %c0_1 = arith.constant 0 : index
    %c0_2 = arith.constant 0 : index
    %3 = vector.load %arg4[%c0, %c0_1, %c0_2] : memref<1x32x1xf32, #tpu.memory_space<vmem>>, vector<1x32x1xf32>
    %4 = vector.shape_cast %3 : vector<1x32x1xf32> to vector<32x1xf32>
    %c0_3 = arith.constant 0 : index
    %c0_4 = arith.constant 0 : index
    %c0_5 = arith.constant 0 : index
    %5 = vector.load %arg3[%c0_3, %c0_4, %c0_5] : memref<1x1x96xf32, #tpu.memory_space<vmem>>, vector<1x1x96xf32>
    %6 = vector.shape_cast %5 : vector<1x1x96xf32> to vector<1x96xf32>
    %7 = vector.broadcast %4 : vector<32x1xf32> to vector<32x96xf32>
    %8 = vector.broadcast %6 : vector<1x96xf32> to vector<32x96xf32>
    %9 = arith.addf %7, %8 : vector<32x96xf32>
    %cst = arith.constant 0.000000e+00 : f32
    %10 = vector.broadcast %cst : f32 to vector<32x96xf32>
    %11 = arith.cmpf ogt, %9, %10 : vector<32x96xf32>
    %cst_6 = arith.constant 2.000000e-01 : f32
    %12 = vector.broadcast %cst_6 : f32 to vector<32x96xf32>
    %13 = arith.mulf %12, %9 : vector<32x96xf32>
    %14 = arith.select %11, %9, %13 : vector<32x96xi1>, vector<32x96xf32>
    %c0_7 = arith.constant 0 : index
    %c0_8 = arith.constant 0 : index
    %15 = vector.load %arg5[%c0_7, %c0_8] : memref<32x96xbf16, #tpu.memory_space<vmem>>, vector<32x96xbf16>
    %16 = arith.extf %15 : vector<32x96xbf16> to vector<32x96xf32>
    %cst_9 = arith.constant 0.000000e+00 : f32
    %17 = vector.broadcast %cst_9 : f32 to vector<32x96xf32>
    %18 = arith.cmpf ogt, %16, %17 : vector<32x96xf32>
    %cst_10 = arith.constant -1.000000e+30 : f32
    %19 = vector.broadcast %cst_10 : f32 to vector<32x96xf32>
    %20 = arith.select %18, %14, %19 : vector<32x96xi1>, vector<32x96xf32>
    %cst_11 = arith.constant dense<0xFF800000> : vector<32xf32>
    %21 = vector.multi_reduction <maximumf>, %20, %cst_11 [1] : vector<32x96xf32> to vector<32xf32>
    %22 = vector.shape_cast %21 : vector<32xf32> to vector<32x1xf32>
    %23 = vector.broadcast %22 : vector<32x1xf32> to vector<32x96xf32>
    %24 = arith.subf %20, %23 : vector<32x96xf32>
    %25 = math.exp %24 : vector<32x96xf32>
    %cst_12 = arith.constant dense<0.000000e+00> : vector<32xf32>
    %26 = vector.multi_reduction <add>, %25, %cst_12 [1] : vector<32x96xf32> to vector<32xf32>
    %27 = vector.shape_cast %26 : vector<32xf32> to vector<32x1xf32>
    %28 = arith.truncf %25 : vector<32x96xf32> to vector<32x96xbf16>
    %c0_13 = arith.constant 0 : index
    %c0_14 = arith.constant 0 : index
    %c0_15 = arith.constant 0 : index
    %29 = vector.load %arg2[%c0_13, %c0_14, %c0_15] : memref<1x96x16xbf16, #tpu.memory_space<vmem>>, vector<1x96x16xbf16>
    %30 = vector.shape_cast %29 : vector<1x96x16xbf16> to vector<96x16xbf16>
    %cst_16 = arith.constant dense<0.000000e+00> : vector<32x16xf32>
    %31 = tpu.matmul %28, %30, %cst_16 {dimension_numbers = #tpu.dot_dimension_numbers<[1], [0], [0], [1], [0, 0, 1, 1], [], []>} : vector<32x96xbf16>, vector<96x16xbf16>, vector<32x16xf32> -> vector<32x16xf32>
    %c0_17 = arith.constant 0 : index
    %c0_18 = arith.constant 0 : index
    %32 = vector.load %arg8[%c0_17, %c0_18] : memref<32x16xf32, #tpu.memory_space<vmem>>, vector<32x16xf32>
    %cst_19 = arith.constant 1.000000e-16 : f32
    %33 = vector.broadcast %cst_19 : f32 to vector<32x1xf32>
    %34 = arith.addf %27, %33 : vector<32x1xf32>
    %35 = tpu.reciprocal %34 {approx = true} : vector<32x1xf32> -> vector<32x1xf32>
    %36 = vector.broadcast %35 : vector<32x1xf32> to vector<32x16xf32>
    %37 = arith.mulf %31, %36 : vector<32x16xf32>
    %38 = arith.addf %32, %37 : vector<32x16xf32>
    %c0_20 = arith.constant 0 : index
    %c0_21 = arith.constant 0 : index
    %39 = vector.load %arg8[%c0_20, %c0_21] : memref<32x16xf32, #tpu.memory_space<vmem>>, vector<32x16xf32>
    tpu.vector_store %arg8[%c0_20, %c0_21], %38 {strides = array<i32>} : memref<32x16xf32, #tpu.memory_space<vmem>>, vector<32x16xf32>,
    %c0_i32_22 = arith.constant 0 : i32
    %40 = arith.cmpi eq, %arg1, %c0_i32_22 : i32
    %41 = arith.extui %40 : i1 to i32
    %c0_i32_23 = arith.constant 0 : i32
    %42 = arith.cmpi ne, %41, %c0_i32_23 : i32
    scf.if %42 {
      %c0_24 = arith.constant 0 : index
      %c0_25 = arith.constant 0 : index
      %43 = vector.load %arg8[%c0_24, %c0_25] : memref<32x16xf32, #tpu.memory_space<vmem>>, vector<32x16xf32>
      %cst_26 = arith.constant 1.000000e+00 : f32
      %44 = vector.broadcast %cst_26 : f32 to vector<32x16xf32>
      %45 = arith.mulf %43, %44 : vector<32x16xf32>
      %c0_27 = arith.constant 0 : index
      %c0_28 = arith.constant 0 : index
      %46 = vector.load %arg6[%c0_27, %c0_28] : memref<1x16xf32, #tpu.memory_space<vmem>>, vector<1x16xf32>
      %47 = vector.broadcast %46 : vector<1x16xf32> to vector<32x16xf32>
      %48 = arith.addf %45, %47 : vector<32x16xf32>
      %c0_29 = arith.constant 0 : index
      %c0_30 = arith.constant 0 : index
      %49 = vector.load %arg7[%c0_29, %c0_30] : memref<32x16xf32, #tpu.memory_space<vmem>>, vector<32x16xf32>
      tpu.vector_store %arg7[%c0_29, %c0_30], %48 {strides = array<i32>} : memref<32x16xf32, #tpu.memory_space<vmem>>, vector<32x16xf32>,
    } else {
    }
    return
  }
  func.func @transform_0(%arg0: i32, %arg1: i32) -> (i32, i32, i32) {
    %c0_i32 = arith.constant 0 : i32
    %c0_i32_0 = arith.constant 0 : i32
    %c0_i32_1 = arith.constant 0 : i32
    return %arg1, %c0_i32, %c0_i32_0 : i32, i32, i32
  }
  func.func @transform_1(%arg0: i32, %arg1: i32) -> (i32, i32, i32) {
    %c0_i32 = arith.constant 0 : i32
    %c0_i32_0 = arith.constant 0 : i32
    %c0_i32_1 = arith.constant 0 : i32
    return %arg1, %c0_i32, %c0_i32_0 : i32, i32, i32
  }
  func.func @transform_2(%arg0: i32, %arg1: i32) -> (i32, i32, i32) {
    %c0_i32 = arith.constant 0 : i32
    %c0_i32_0 = arith.constant 0 : i32
    return %arg1, %arg0, %c0_i32 : i32, i32, i32
  }
  func.func @transform_3(%arg0: i32, %arg1: i32) -> (i32, i32) {
    %c0_i32 = arith.constant 0 : i32
    %c0_i32_0 = arith.constant 0 : i32
    return %arg0, %c0_i32 : i32, i32
  }
  func.func @transform_4(%arg0: i32, %arg1: i32) -> (i32, i32) {
    %c0_i32 = arith.constant 0 : i32
    %c0_i32_0 = arith.constant 0 : i32
    %c0_i32_1 = arith.constant 0 : i32
    return %c0_i32, %c0_i32_0 : i32, i32
  }
  func.func @transform_5(%arg0: i32, %arg1: i32) -> (i32, i32) {
    %c0_i32 = arith.constant 0 : i32
    %c0_i32_0 = arith.constant 0 : i32
    return %arg0, %c0_i32 : i32, i32
  }
}

module attributes {stable_mosaic.version = 11 : i64} {
  func.func @_vae_tail_kernel(%arg0: i32, %arg1: memref<32x16xf32, #tpu.memory_space<vmem>>, %arg2: memref<16x16xbf16, #tpu.memory_space<vmem>>, %arg3: memref<1x16xf32, #tpu.memory_space<vmem>>, %arg4: memref<16x16xbf16, #tpu.memory_space<vmem>>, %arg5: memref<1x16xf32, #tpu.memory_space<vmem>>, %arg6: memref<16x32xbf16, #tpu.memory_space<vmem>>, %arg7: memref<1x32xf32, #tpu.memory_space<vmem>>, %arg8: memref<32x64xbf16, #tpu.memory_space<vmem>>, %arg9: memref<1x64xf32, #tpu.memory_space<vmem>>, %arg10: memref<32x64xf32, #tpu.memory_space<vmem>>, %arg11: memref<32x1xf32, #tpu.memory_space<vmem>>) attributes {dimension_semantics = [#tpu.dimension_semantics<parallel>], iteration_bounds = array<i64: 3>, scalar_prefetch = 0 : i64, scratch_operands = 0 : i64, tpu.core_type = #tpu.core_type<tc>, window_params = [{transform_indices = @transform_0, window_bounds = array<i64: 32, 16>}, {pipeline_mode = #tpu.pipeline_mode<synchronous>, transform_indices = @transform_1, window_bounds = array<i64: 16, 16>}, {pipeline_mode = #tpu.pipeline_mode<synchronous>, transform_indices = @transform_2, window_bounds = array<i64: 1, 16>}, {pipeline_mode = #tpu.pipeline_mode<synchronous>, transform_indices = @transform_3, window_bounds = array<i64: 16, 16>}, {pipeline_mode = #tpu.pipeline_mode<synchronous>, transform_indices = @transform_4, window_bounds = array<i64: 1, 16>}, {pipeline_mode = #tpu.pipeline_mode<synchronous>, transform_indices = @transform_5, window_bounds = array<i64: 16, 32>}, {pipeline_mode = #tpu.pipeline_mode<synchronous>, transform_indices = @transform_6, window_bounds = array<i64: 1, 32>}, {pipeline_mode = #tpu.pipeline_mode<synchronous>, transform_indices = @transform_7, window_bounds = array<i64: 32, 64>}, {pipeline_mode = #tpu.pipeline_mode<synchronous>, transform_indices = @transform_8, window_bounds = array<i64: 1, 64>}, {transform_indices = @transform_9, window_bounds = array<i64: 32, 64>}, {transform_indices = @transform_10, window_bounds = array<i64: 32, 1>}]} {
    %c0 = arith.constant 0 : index
    %c0_0 = arith.constant 0 : index
    %0 = vector.load %arg1[%c0, %c0_0] : memref<32x16xf32, #tpu.memory_space<vmem>>, vector<32x16xf32>
    %1 = arith.truncf %0 : vector<32x16xf32> to vector<32x16xbf16>
    %c0_1 = arith.constant 0 : index
    %c0_2 = arith.constant 0 : index
    %2 = vector.load %arg2[%c0_1, %c0_2] : memref<16x16xbf16, #tpu.memory_space<vmem>>, vector<16x16xbf16>
    %cst = arith.constant dense<0.000000e+00> : vector<32x16xf32>
    %3 = tpu.matmul %1, %2, %cst {dimension_numbers = #tpu.dot_dimension_numbers<[1], [0], [0], [1], [0, 0, 1, 1], [], []>} : vector<32x16xbf16>, vector<16x16xbf16>, vector<32x16xf32> -> vector<32x16xf32>
    %c0_3 = arith.constant 0 : index
    %c0_4 = arith.constant 0 : index
    %4 = vector.load %arg3[%c0_3, %c0_4] : memref<1x16xf32, #tpu.memory_space<vmem>>, vector<1x16xf32>
    %5 = vector.broadcast %4 : vector<1x16xf32> to vector<32x16xf32>
    %6 = arith.addf %3, %5 : vector<32x16xf32>
    %c0_5 = arith.constant 0 : index
    %c0_6 = arith.constant 0 : index
    %7 = vector.load %arg4[%c0_5, %c0_6] : memref<16x16xbf16, #tpu.memory_space<vmem>>, vector<16x16xbf16>
    %cst_7 = arith.constant dense<0.000000e+00> : vector<32x16xf32>
    %8 = tpu.matmul %1, %7, %cst_7 {dimension_numbers = #tpu.dot_dimension_numbers<[1], [0], [0], [1], [0, 0, 1, 1], [], []>} : vector<32x16xbf16>, vector<16x16xbf16>, vector<32x16xf32> -> vector<32x16xf32>
    %c0_8 = arith.constant 0 : index
    %c0_9 = arith.constant 0 : index
    %9 = vector.load %arg5[%c0_8, %c0_9] : memref<1x16xf32, #tpu.memory_space<vmem>>, vector<1x16xf32>
    %10 = vector.broadcast %9 : vector<1x16xf32> to vector<32x16xf32>
    %11 = arith.addf %8, %10 : vector<32x16xf32>
    %12 = math.exp %11 : vector<32x16xf32>
    %cst_10 = arith.constant 9.99999993E-9 : f32
    %cst_11 = arith.constant 1.000000e+02 : f32
    %13 = vector.broadcast %cst_10 : f32 to vector<32x16xf32>
    %14 = arith.maximumf %13, %12 : vector<32x16xf32>
    %15 = vector.broadcast %cst_11 : f32 to vector<32x16xf32>
    %16 = arith.minimumf %15, %14 : vector<32x16xf32>
    %17 = math.log %16 : vector<32x16xf32>
    %cst_12 = arith.constant -5.000000e-01 : f32
    %18 = vector.broadcast %cst_12 : f32 to vector<32x16xf32>
    %19 = arith.mulf %18, %17 : vector<32x16xf32>
    %20 = arith.mulf %6, %6 : vector<32x16xf32>
    %21 = arith.addf %16, %20 : vector<32x16xf32>
    %cst_13 = arith.constant 5.000000e-01 : f32
    %22 = vector.broadcast %cst_13 : f32 to vector<32x16xf32>
    %23 = arith.mulf %22, %21 : vector<32x16xf32>
    %24 = arith.addf %19, %23 : vector<32x16xf32>
    %cst_14 = arith.constant 5.000000e-01 : f32
    %25 = vector.broadcast %cst_14 : f32 to vector<32x16xf32>
    %26 = arith.subf %24, %25 : vector<32x16xf32>
    %cst_15 = arith.constant dense<0.000000e+00> : vector<32xf32>
    %27 = vector.multi_reduction <add>, %26, %cst_15 [1] : vector<32x16xf32> to vector<32xf32>
    %28 = vector.shape_cast %27 : vector<32xf32> to vector<32x1xf32>
    %cst_16 = arith.constant 5.000000e-01 : f32
    %29 = vector.broadcast %cst_16 : f32 to vector<32x1xf32>
    %30 = arith.mulf %28, %29 : vector<32x1xf32>
    %c0_17 = arith.constant 0 : index
    %c0_18 = arith.constant 0 : index
    %31 = vector.load %arg11[%c0_17, %c0_18] : memref<32x1xf32, #tpu.memory_space<vmem>>, vector<32x1xf32>
    tpu.vector_store %arg11[%c0_17, %c0_18], %30 {strides = array<i32>} : memref<32x1xf32, #tpu.memory_space<vmem>>, vector<32x1xf32>,
    %c0_19 = arith.constant 0 : index
    %c0_20 = arith.constant 0 : index
    %32 = vector.load %arg6[%c0_19, %c0_20] : memref<16x32xbf16, #tpu.memory_space<vmem>>, vector<16x32xbf16>
    %cst_21 = arith.constant dense<0.000000e+00> : vector<32x32xf32>
    %33 = tpu.matmul %1, %32, %cst_21 {dimension_numbers = #tpu.dot_dimension_numbers<[1], [0], [0], [1], [0, 0, 1, 1], [], []>} : vector<32x16xbf16>, vector<16x32xbf16>, vector<32x32xf32> -> vector<32x32xf32>
    %c0_22 = arith.constant 0 : index
    %c0_23 = arith.constant 0 : index
    %34 = vector.load %arg7[%c0_22, %c0_23] : memref<1x32xf32, #tpu.memory_space<vmem>>, vector<1x32xf32>
    %35 = vector.broadcast %34 : vector<1x32xf32> to vector<32x32xf32>
    %36 = arith.addf %33, %35 : vector<32x32xf32>
    %cst_24 = arith.constant 0.000000e+00 : f32
    %37 = vector.broadcast %cst_24 : f32 to vector<32x32xf32>
    %38 = arith.maximumf %36, %37 : vector<32x32xf32>
    %39 = arith.truncf %38 : vector<32x32xf32> to vector<32x32xbf16>
    %c0_25 = arith.constant 0 : index
    %c0_26 = arith.constant 0 : index
    %40 = vector.load %arg8[%c0_25, %c0_26] : memref<32x64xbf16, #tpu.memory_space<vmem>>, vector<32x64xbf16>
    %cst_27 = arith.constant dense<0.000000e+00> : vector<32x64xf32>
    %41 = tpu.matmul %39, %40, %cst_27 {dimension_numbers = #tpu.dot_dimension_numbers<[1], [0], [0], [1], [0, 0, 1, 1], [], []>} : vector<32x32xbf16>, vector<32x64xbf16>, vector<32x64xf32> -> vector<32x64xf32>
    %c0_28 = arith.constant 0 : index
    %c0_29 = arith.constant 0 : index
    %42 = vector.load %arg9[%c0_28, %c0_29] : memref<1x64xf32, #tpu.memory_space<vmem>>, vector<1x64xf32>
    %43 = vector.broadcast %42 : vector<1x64xf32> to vector<32x64xf32>
    %44 = arith.addf %41, %43 : vector<32x64xf32>
    %c0_30 = arith.constant 0 : index
    %c0_31 = arith.constant 0 : index
    %45 = vector.load %arg10[%c0_30, %c0_31] : memref<32x64xf32, #tpu.memory_space<vmem>>, vector<32x64xf32>
    tpu.vector_store %arg10[%c0_30, %c0_31], %44 {strides = array<i32>} : memref<32x64xf32, #tpu.memory_space<vmem>>, vector<32x64xf32>,
    return
  }
  func.func @transform_0(%arg0: i32) -> (i32, i32) {
    %c0_i32 = arith.constant 0 : i32
    %c0_i32_0 = arith.constant 0 : i32
    return %arg0, %c0_i32 : i32, i32
  }
  func.func @transform_1(%arg0: i32) -> (i32, i32) {
    %c0_i32 = arith.constant 0 : i32
    %c0_i32_0 = arith.constant 0 : i32
    %c0_i32_1 = arith.constant 0 : i32
    return %c0_i32, %c0_i32_0 : i32, i32
  }
  func.func @transform_2(%arg0: i32) -> (i32, i32) {
    %c0_i32 = arith.constant 0 : i32
    %c0_i32_0 = arith.constant 0 : i32
    %c0_i32_1 = arith.constant 0 : i32
    return %c0_i32, %c0_i32_0 : i32, i32
  }
  func.func @transform_3(%arg0: i32) -> (i32, i32) {
    %c0_i32 = arith.constant 0 : i32
    %c0_i32_0 = arith.constant 0 : i32
    %c0_i32_1 = arith.constant 0 : i32
    return %c0_i32, %c0_i32_0 : i32, i32
  }
  func.func @transform_4(%arg0: i32) -> (i32, i32) {
    %c0_i32 = arith.constant 0 : i32
    %c0_i32_0 = arith.constant 0 : i32
    %c0_i32_1 = arith.constant 0 : i32
    return %c0_i32, %c0_i32_0 : i32, i32
  }
  func.func @transform_5(%arg0: i32) -> (i32, i32) {
    %c0_i32 = arith.constant 0 : i32
    %c0_i32_0 = arith.constant 0 : i32
    %c0_i32_1 = arith.constant 0 : i32
    return %c0_i32, %c0_i32_0 : i32, i32
  }
  func.func @transform_6(%arg0: i32) -> (i32, i32) {
    %c0_i32 = arith.constant 0 : i32
    %c0_i32_0 = arith.constant 0 : i32
    %c0_i32_1 = arith.constant 0 : i32
    return %c0_i32, %c0_i32_0 : i32, i32
  }
  func.func @transform_7(%arg0: i32) -> (i32, i32) {
    %c0_i32 = arith.constant 0 : i32
    %c0_i32_0 = arith.constant 0 : i32
    %c0_i32_1 = arith.constant 0 : i32
    return %c0_i32, %c0_i32_0 : i32, i32
  }
  func.func @transform_8(%arg0: i32) -> (i32, i32) {
    %c0_i32 = arith.constant 0 : i32
    %c0_i32_0 = arith.constant 0 : i32
    %c0_i32_1 = arith.constant 0 : i32
    return %c0_i32, %c0_i32_0 : i32, i32
  }
  func.func @transform_9(%arg0: i32) -> (i32, i32) {
    %c0_i32 = arith.constant 0 : i32
    %c0_i32_0 = arith.constant 0 : i32
    return %arg0, %c0_i32 : i32, i32
  }
  func.func @transform_10(%arg0: i32) -> (i32, i32) {
    %c0_i32 = arith.constant 0 : i32
    %c0_i32_0 = arith.constant 0 : i32
    return %arg0, %c0_i32 : i32, i32
  }
}

module attributes {stable_mosaic.version = 11 : i64} {
  func.func @_cn_norm_kernel(%arg0: memref<80x64xf32, #tpu.memory_space<vmem>>, %arg1: memref<80x64xf32, #tpu.memory_space<vmem>>, %arg2: memref<80x1xf32, #tpu.memory_space<vmem>>, %arg3: memref<80x64xf32, #tpu.memory_space<vmem>>, %arg4: memref<1x1xf32, #tpu.memory_space<vmem>>) attributes {dimension_semantics = [], scalar_prefetch = 0 : i64, scratch_operands = 0 : i64, tpu.core_type = #tpu.core_type<tc>} {
    %c0 = arith.constant 0 : index
    %c0_0 = arith.constant 0 : index
    %0 = vector.load %arg1[%c0, %c0_0] : memref<80x64xf32, #tpu.memory_space<vmem>>, vector<80x64xf32>
    %c0_1 = arith.constant 0 : index
    %c0_2 = arith.constant 0 : index
    %1 = vector.load %arg2[%c0_1, %c0_2] : memref<80x1xf32, #tpu.memory_space<vmem>>, vector<80x1xf32>
    %2 = vector.broadcast %1 : vector<80x1xf32> to vector<80x64xf32>
    %3 = arith.mulf %0, %2 : vector<80x64xf32>
    %cst = arith.constant dense<0.000000e+00> : vector<80xf32>
    %4 = vector.multi_reduction <add>, %3, %cst [1] : vector<80x64xf32> to vector<80xf32>
    %5 = vector.shape_cast %4 : vector<80xf32> to vector<80x1xf32>
    %c0_3 = arith.constant 0 : index
    %c0_4 = arith.constant 0 : index
    %6 = vector.load %arg0[%c0_3, %c0_4] : memref<80x64xf32, #tpu.memory_space<vmem>>, vector<80x64xf32>
    %cst_5 = arith.constant dense<0.000000e+00> : vector<80xf32>
    %7 = vector.multi_reduction <add>, %6, %cst_5 [1] : vector<80x64xf32> to vector<80xf32>
    %8 = vector.shape_cast %7 : vector<80xf32> to vector<80x1xf32>
    %cst_6 = arith.constant 9.99999993E-9 : f32
    %9 = vector.broadcast %cst_6 : f32 to vector<80x1xf32>
    %10 = arith.addf %5, %9 : vector<80x1xf32>
    %11 = tpu.reciprocal %10 {approx = true} : vector<80x1xf32> -> vector<80x1xf32>
    %12 = arith.mulf %11, %8 : vector<80x1xf32>
    %13 = vector.broadcast %12 : vector<80x1xf32> to vector<80x64xf32>
    %14 = arith.mulf %3, %13 : vector<80x64xf32>
    %15 = vector.shape_cast %14 : vector<80x64xf32> to vector<1x80x64xf32>
    %cst_7 = arith.constant dense<0x7F800000> : vector<1xf32>
    %16 = vector.multi_reduction <minimumf>, %15, %cst_7 [1, 2] : vector<1x80x64xf32> to vector<1xf32>
    %17 = vector.shape_cast %16 : vector<1xf32> to vector<1x1x1xf32>
    %18 = vector.extract %17[0, 0, 0] : f32 from vector<1x1x1xf32>
    %19 = vector.broadcast %18 : f32 to vector<1x1xf32>
    %20 = vector.shape_cast %14 : vector<80x64xf32> to vector<1x80x64xf32>
    %cst_8 = arith.constant dense<0xFF800000> : vector<1xf32>
    %21 = vector.multi_reduction <maximumf>, %20, %cst_8 [1, 2] : vector<1x80x64xf32> to vector<1xf32>
    %22 = vector.shape_cast %21 : vector<1xf32> to vector<1x1x1xf32>
    %23 = vector.extract %22[0, 0, 0] : f32 from vector<1x1x1xf32>
    %24 = vector.broadcast %23 : f32 to vector<1x1xf32>
    %cst_9 = arith.constant 8.000000e-01 : f32
    %25 = vector.broadcast %cst_9 : f32 to vector<1x1xf32>
    %26 = arith.mulf %19, %25 : vector<1x1xf32>
    %cst_10 = arith.constant 1.200000e+00 : f32
    %27 = vector.broadcast %cst_10 : f32 to vector<1x1xf32>
    %28 = arith.mulf %24, %27 : vector<1x1xf32>
    %29 = vector.broadcast %19 : vector<1x1xf32> to vector<80x64xf32>
    %30 = arith.subf %14, %29 : vector<80x64xf32>
    %31 = arith.subf %24, %19 : vector<1x1xf32>
    %cst_11 = arith.constant 9.99999993E-9 : f32
    %32 = vector.broadcast %cst_11 : f32 to vector<1x1xf32>
    %33 = arith.addf %31, %32 : vector<1x1xf32>
    %34 = tpu.reciprocal %33 {approx = true} : vector<1x1xf32> -> vector<1x1xf32>
    %35 = vector.broadcast %34 : vector<1x1xf32> to vector<80x64xf32>
    %36 = arith.mulf %30, %35 : vector<80x64xf32>
    %37 = arith.subf %28, %26 : vector<1x1xf32>
    %38 = vector.broadcast %37 : vector<1x1xf32> to vector<80x64xf32>
    %39 = arith.mulf %36, %38 : vector<80x64xf32>
    %40 = vector.broadcast %26 : vector<1x1xf32> to vector<80x64xf32>
    %41 = arith.addf %39, %40 : vector<80x64xf32>
    %42 = vector.shape_cast %41 : vector<80x64xf32> to vector<1x80x64xf32>
    %cst_12 = arith.constant dense<0.000000e+00> : vector<1xf32>
    %43 = vector.multi_reduction <add>, %42, %cst_12 [1, 2] : vector<1x80x64xf32> to vector<1xf32>
    %44 = vector.shape_cast %43 : vector<1xf32> to vector<1x1x1xf32>
    %45 = vector.extract %44[0, 0, 0] : f32 from vector<1x1x1xf32>
    %46 = vector.broadcast %45 : f32 to vector<1x1xf32>
    %cst_13 = arith.constant 5.120000e+03 : f32
    %47 = vector.broadcast %cst_13 : f32 to vector<1x1xf32>
    %48 = arith.divf %46, %47 : vector<1x1xf32>
    %49 = tpu.reciprocal %48 {approx = true} : vector<1x1xf32> -> vector<1x1xf32>
    %50 = vector.broadcast %49 : vector<1x1xf32> to vector<80x64xf32>
    %51 = arith.mulf %41, %50 : vector<80x64xf32>
    %c0_14 = arith.constant 0 : index
    %c0_15 = arith.constant 0 : index
    %52 = vector.load %arg3[%c0_14, %c0_15] : memref<80x64xf32, #tpu.memory_space<vmem>>, vector<80x64xf32>
    tpu.vector_store %arg3[%c0_14, %c0_15], %51 {strides = array<i32>} : memref<80x64xf32, #tpu.memory_space<vmem>>, vector<80x64xf32>,
    %53 = arith.mulf %0, %0 : vector<80x64xf32>
    %54 = vector.shape_cast %53 : vector<80x64xf32> to vector<1x80x64xf32>
    %cst_16 = arith.constant dense<0.000000e+00> : vector<1xf32>
    %55 = vector.multi_reduction <add>, %54, %cst_16 [1, 2] : vector<1x80x64xf32> to vector<1xf32>
    %56 = vector.shape_cast %55 : vector<1xf32> to vector<1x1x1xf32>
    %57 = vector.extract %56[0, 0, 0] : f32 from vector<1x1x1xf32>
    %58 = vector.broadcast %57 : f32 to vector<1x1xf32>
    %cst_17 = arith.constant 9.99999974E-5 : f32
    %59 = vector.broadcast %cst_17 : f32 to vector<1x1xf32>
    %60 = arith.mulf %58, %59 : vector<1x1xf32>
    %c0_18 = arith.constant 0 : index
    %c0_19 = arith.constant 0 : index
    %61 = vector.load %arg4[%c0_18, %c0_19] : memref<1x1xf32, #tpu.memory_space<vmem>>, vector<1x1xf32>
    tpu.vector_store %arg4[%c0_18, %c0_19], %60 {strides = array<i32>} : memref<1x1xf32, #tpu.memory_space<vmem>>, vector<1x1xf32>,
    return
  }
}

</mosaic_0001>

<bundles_post_ra>
// kernel: scoiget_forward.8
= control target key start
LH: loop header
LB: loop body
LE: loop exit
PB: predicated region body
PF: predicated region fallthrough
CT: control target
= control target key end

     0   :  { %s1078_s21 = smov 0   ;;  %s1080_s22 = smov 0   ;;  %s1165_s0 = inlined_call_operand.vmem [shape: f32[96,64], index: 0, kind: input, shape index: {}]   ;;  %s1166_s1 = inlined_call_operand.vmem [shape: bf16[4,64,32], index: 1, kind: input, shape index: {}]   ;;  %s1167_s2 = inlined_call_operand.vmem [shape: bf16[4,32,1], index: 2, kind: input, shape index: {}]   ;;  %s1168_s3 = inlined_call_operand.vmem [shape: bf16[4,32,1], index: 3, kind: input, shape index: {}]   ;;  %s1169_s4 = inlined_call_operand.vmem [shape: bf16[4,96,32], index: 4, kind: output, shape index: {0}]   ;;  %s1170_s5 = inlined_call_operand.vmem [shape: f32[4,96,1], index: 5, kind: output, shape index: {1}]   ;;  %s1171_s6 = inlined_call_operand.vmem [shape: f32[4,96,1], index: 6, kind: output, shape index: {2}]  }
   0x1   :  { %s1082_s23 = smov 0   ;;  %s1084_s24 = smov 0  }
   0x2   :  { %s1086_s25 = smov 0  }
   0x3 LB: > { %s26_s26 = sadd.s32 1, %s1033_s23  ;;  %s29_s27 = sadd.s32 1, %s1037_s24  ;;  %s1041_s25 = sphi %s1086_s25, %s17_s25   ;;  %s1037_s24 = sphi %s1084_s24, %s1175_s24   ;;  %s1033_s23 = sphi %s1082_s23, %s1174_s23   ;;  %s1029_s22 = sphi %s1080_s22, %s1173_s22   ;;  %s1025_s21 = sphi %s1078_s21, %s1172_s21  }
   0x4   : > { %p27_p0 = scmp.ge.s32.totalorder %s26_s26, 4  ;;  %p870_p1 = scmp.ge.s32.totalorder %s1041_s25, 1 }
   0x5   : > { %p266_p2 = scmp.lt.s32.totalorder %s1041_s25, 13 }
   0x6   : > { %s1177_s26 = smov (%p27_p0, %s26_s26), 0  ;;  %s1179_s27 = smov (!%p27_p0, %s29_s27), %s1037_s24 }
   0x7   : > { %p267_p3 = pnand %p870_p1, %p266_p2  ;;  %p31_p4 = scmp.ge.s32.totalorder %s1179_s27, 3 }
   0x8   : > { %p339_p5 = scmp.lt.s32.totalorder (!%p267_p3), %s1025_s21, 3  ;;  %s871_s28 = sshll.u32 (!%p267_p3), %s1029_s22, 2 }
   0x9   : > { %s1181_s27 = smov (%p31_p4, %s1179_s27), 0  ;;  %270 = sbr.rel (%p267_p3) target bundleno = 444 (0x1bc), region = 36 }
   0xa   : > { %p334_p6 = scmp.lt.s32.totalorder (!%p267_p3), %s871_s28, 11 }
   0xe   : > { %s1183_s21 = smov (!%p339_p5, %s1025_s21), 3  ;;  %s1185_s28 = smov (!%p334_p6, %s871_s28), 11  ;;  %vm423_vm0 = vcmask 523264   ;;  %vm641_vm1 = vcmask 257024   ;;  %vm497_vm2 = vcmask 261120   ;;  %vm553_vm3 = vcmask 7168  }
   0xf   : > { %s905_s29 = sshll.u32 %s1183_s21, 5  ;;  %s872_s9 = sshll.u32 %s1185_s28, 3 }
  0x10   : > { %s343_s8 = scalar_lea.vmem %s1166_s1, %s905_s29  ;;  %s337_s12 = scalar_lea.vmem %s1165_s0, %s872_s9 }
  0x11   : > { %v995_v0 = vld [vmem:[%s343_s8 + $0x18] sm:$0xff]   ;;  %v996_v1 = vld [vmem:[%s343_s8 + $0x10] sm:$0xff]   ;;  %v997_v2 = vld [vmem:[%s343_s8 + $0x8] sm:$0xff]   ;;  %s906_s13 = sshll.u32 %s1183_s21, 4  ;;  %s954_s20 = smul.u32 12, %s1183_s21 }
  0x12   : > { %926 = vmatprep.subr.bf16.mxu0 %v995_v0  ;;  %v385_v3 = vld [vmem:[%s337_s12] sm:$0xff]  ;;  %v386_v4 = vld [vmem:[%s337_s12 + $0x8] sm:$0xff]  ;;  %v387_v7 = vld [vmem:[%s337_s12 + $0x10] sm:$0xff]  ;;  %s348_s16 = scalar_lea.vmem %s1167_s2, %s906_s13  ;;  %s353_s19 = scalar_lea.vmem %s1168_s3, %s906_s13 }
  0x13   : > { %927 = vmatpush3.bf16.msra.mxu0 %v995_v0  ;;  %v389_v5 = vpack.c.bf16 %v386_v4, %v385_v3  ;;  %v998_v6 = vld [vmem:[%s343_s8] sm:$0xff]   ;;  %v388_v8 = vld [vmem:[%s337_s12 + $0x18] sm:$0xff]  ;;  %v999_v10 = vld [vmem:[%s348_s16 + $0x8] sm:$0xff]   ;;  %s1129_s22 = sadd.s32 %s954_s20, %s1185_s28 }
  0x14   : > { %928 = vmatprep.subr.bf16.mxu0 %v996_v1  ;;  %v390_v9 = vpack.c.bf16 %v388_v8, %v387_v7  ;;  %938 = vmatprep.subr.bf16.mxu1 %v999_v10  ;;  %v1000_v11 = vld [vmem:[%s348_s16] sm:$0xff]   ;;  %v1001_v12 = vld [vmem:[%s353_s19 + $0x8] sm:$0xff]   ;;  %s880_s29 = sshll.u32 %s1129_s22, 2  ;;  %s882_s21 = sshll.u32 %s1129_s22, 3 }
  0x15   : > { %934 = vmatprep.mubr.msk.bf16.mxu0 %vm423_vm0, %v389_v5  ;;  %939 = vmatpush3.bf16.msra.mxu1 %v999_v10  ;;  %s362_s8 = scalar_lea.vmem %s1169_s4, %s880_s29  ;;  %v1002_v23 = vld [vmem:[%s353_s19] sm:$0xff]   ;;  %s372_s10 = scalar_lea.vmem %s1170_s5, %s882_s21 }
  0x16   : > { %940 = vmatprep.subr.bf16.mxu1 %v1000_v11  ;;  %s382_s13 = scalar_lea.vmem %s1171_s6, %s882_s21 }
  0x17   : > { %929 = vmatpush3.bf16.msra.mxu0 %v996_v1 }
  0x18   : > { %930 = vmatprep.subr.bf16.mxu0 %v997_v2 }
  0x19   : > { %941 = vmatpush3.bf16.msra.mxu1 %v1000_v11 }
  0x1a   : > { %946 = vmatprep.subr.bf16.mxu1 %v1001_v12 }
  0x1b   : > { %931 = vmatpush3.bf16.msra.mxu0 %v997_v2 }
  0x1c   : > { %932 = vmatprep.subr.bf16.mxu0 %v998_v6 }
  0x1f   : > { %933 = vmatpush3.bf16.msra.mxu0 %v998_v6 }
  0x22   : > { %935 = vmatmul.mubr.msk.bf16.vlgmr.msra.gmra.mxu0 %vm423_vm0, %v390_v9 }
  0xe2   : > { %v936_v13 = vpop.f32.mrf.mxu0 }
  0xe3   : > { %v910_v14 = vpack.c.bf16 %v936_v13, %v936_v13 }
  0xe4   : > { %v464_v15 = vpop.f32.mrf.mxu0 }
  0xe5   : > { %644 = vst.msk [vmem:[%s362_s8 + $0x8] sm:$0xf] %vm641_vm1, %v910_v14  ;;  %v908_v16 = vpack.c.bf16 %v464_v15, %v464_v15 }
  0xe6   : > { %v937_v17 = vpop.f32.mrf.mxu0 }
  0xe7   : > { %642 = vst.msk [vmem:[%s362_s8] sm:$0xf] %vm641_vm1, %v908_v16  ;;  %v911_v18 = vpack.c.bf16 %v937_v17, %v937_v17  ;;  %v480_v22 = vpack.c.bf16 %v937_v17, %v936_v13 }
  0xe8   : > { %v467_v19 = vpop.f32.mrf.mxu0 }
  0xe9   : > { %645 = vst.msk [vmem:[%s362_s8 + $0xc] sm:$0xf] %vm641_vm1, %v911_v18  ;;  %v479_v20 = vpack.c.bf16 %v467_v19, %v464_v15  ;;  %v909_v21 = vpack.c.bf16 %v467_v19, %v467_v19 }
  0xeb   : > { %643 = vst.msk [vmem:[%s362_s8 + $0x4] sm:$0xf] %vm641_vm1, %v909_v21  ;;  %942 = vmatprep.mubr.msk.bf16.mxu1 %vm497_vm2, %v479_v20 }
  0xec   : > { %943 = vmatmul.mubr.msk.bf16.vlgmr.msra.gmra.mxu1 %vm497_vm2, %v480_v22 }
  0xed   : > { %947 = vmatpush3.bf16.msra.mxu1 %v1001_v12  ;;  %950 = vmatprep.mubr.msk.bf16.mxu1 %vm497_vm2, %v479_v20 }
  0xee   : > { %948 = vmatprep.subr.bf16.mxu1 %v1002_v23 }
  0xf1   : > { %949 = vmatpush3.bf16.msra.mxu1 %v1002_v23 }
  0xf4   : > { %951 = vmatmul.mubr.msk.bf16.vlgmr.msra.gmra.mxu1 %vm497_vm2, %v480_v22 }
 0x1ac   : > { %v944_v24 = vpop.f32.mrf.mxu1 }
 0x1ad   : > { %556 = vst.msk [vmem:[%s372_s10 + $0x10] sm:$0xff] %vm553_vm3, %v944_v24 }
 0x1ae   : > { %v538_v25 = vpop.f32.mrf.mxu1 }
 0x1af   : > { %554 = vst.msk [vmem:[%s372_s10] sm:$0xff] %vm553_vm3, %v538_v25 }
 0x1b0   : > { %v945_v26 = vpop.f32.mrf.mxu1 }
 0x1b1   : > { %557 = vst.msk [vmem:[%s372_s10 + $0x18] sm:$0xff] %vm553_vm3, %v945_v26 }
 0x1b2   : > { %v541_v27 = vpop.f32.mrf.mxu1 }
 0x1b3   : > { %555 = vst.msk [vmem:[%s372_s10 + $0x8] sm:$0xff] %vm553_vm3, %v541_v27 }
 0x1b4   : > { %v952_v28 = vpop.f32.mrf.mxu1 }
 0x1b5   : > { %625 = vst.msk [vmem:[%s382_s13 + $0x10] sm:$0xff] %vm553_vm3, %v952_v28 }
 0x1b6   : > { %v608_v29 = vpop.f32.mrf.mxu1 }
 0x1b7   : > { %623 = vst.msk [vmem:[%s382_s13] sm:$0xff] %vm553_vm3, %v608_v29 }
 0x1b8   : > { %v953_v30 = vpop.f32.mrf.mxu1 }
 0x1b9   : > { %626 = vst.msk [vmem:[%s382_s13 + $0x18] sm:$0xff] %vm553_vm3, %v953_v30 }
 0x1ba   : > { %v611_v31 = vpop.f32.mrf.mxu1 }
 0x1bb   : > { %624 = vst.msk [vmem:[%s382_s13 + $0x8] sm:$0xff] %vm553_vm3, %v611_v31 }
 0x1bc PF: > { %s17_s25 = sadd.s32 1, %s1041_s25   ;;  %s1172_s21 = smov %s1033_s23 }
 0x1bd   : > { %p14_p7 = scmp.ge.s32.totalorder %s17_s25, 14   ;;  %s1173_s22 = smov %s1037_s24 }
 0x1be   : > { %s1174_s23 = smov %s1177_s26  ;;  %s1175_s24 = smov %s1181_s27 }
 0x1bf   :  { %16 = sbr.rel (!%p14_p7) target bundleno = 3 (0x3), region = 99 }

// kernel: scoiget_forward.9
= control target key start
LH: loop header
LB: loop body
LE: loop exit
PB: predicated region body
PF: predicated region fallthrough
CT: control target
= control target key end

     0   :  { %s887_s18 = smov 0   ;;  %s889_s19 = smov 0   ;;  %s998_s0 = inlined_call_operand.vmem [shape: bf16[4,96,32], index: 0, kind: input, shape index: {}]   ;;  %s999_s1 = inlined_call_operand.vmem [shape: f32[4,1,96], index: 1, kind: input, shape index: {}]   ;;  %s1000_s2 = inlined_call_operand.vmem [shape: f32[4,96,1], index: 2, kind: input, shape index: {}]   ;;  %s1001_s3 = inlined_call_operand.vmem [shape: bf16[96,96], index: 3, kind: input, shape index: {}]   ;;  %s1002_s4 = inlined_call_operand.vmem [shape: f32[1,32], index: 4, kind: input, shape index: {}]   ;;  %s1003_s5 = inlined_call_operand.vmem [shape: f32[96,32], index: 5, kind: output, shape index: {}]  }
   0x1   :  { %s891_s20 = smov 0   ;;  %s893_s21 = smov 0  }
   0x2   :  { %s895_s22 = smov 0  }
   0x3 LB: > { %s24_s23 = sadd.s32 1, %s845_s20  ;;  %s27_s24 = sadd.s32 1, %s849_s21  ;;  %s853_s22 = sphi %s895_s22, %s15_s22   ;;  %s849_s21 = sphi %s893_s21, %s1010_s21   ;;  %s845_s20 = sphi %s891_s20, %s1009_s20   ;;  %s841_s19 = sphi %s889_s19, %s1008_s19   ;;  %s837_s18 = sphi %s887_s18, %s1007_s18  }
   0x4   : > { %p25_p0 = scmp.ge.s32.totalorder %s24_s23, 4  ;;  %p692_p1 = scmp.ge.s32.totalorder %s853_s22, 1 }
   0x5   : > { %p235_p2 = scmp.lt.s32.totalorder %s853_s22, 13 }
   0x6   : > { %s1012_s23 = smov (%p25_p0, %s24_s23), 0  ;;  %s1014_s24 = smov (!%p25_p0, %s27_s24), %s849_s21 }
   0x7   : > { %p236_p3 = pnand %p692_p1, %p235_p2  ;;  %p29_p4 = scmp.ge.s32.totalorder %s1014_s24, 3 }
   0x8   : > { %p280_p5 = scmp.lt.s32.totalorder (!%p236_p3), %s837_s18, 3  ;;  %s694_s25 = sshll.u32 (!%p236_p3), %s841_s19, 2 }
   0x9   : > { %s1016_s24 = smov (%p29_p4, %s1014_s24), 0  ;;  %239 = sbr.rel (%p236_p3) target bundleno = 545 (0x221), region = 40 }
   0xa   : > { %1004 = sst [smem:[#allocation3_spill]] %s1016_s24  ;;  %p291_p6 = scmp.lt.s32.totalorder (!%p236_p3), %s694_s25, 11 }
   0xb   : > { %p700_p7 = scmp.ne.s32.totalorder (!%p236_p3), %s837_s18, 0 }
   0xe   : > { %s921_s26 = scalar_select %p280_p5, %s837_s18, 3 }
   0xf   : > { %s1018_s25 = smov (!%p291_p6, %s694_s25), 11 }
  0x10   : > { %s747_s27 = smul.u32 48, %s921_s26  ;;  %s697_s7 = sshll.u32 %s1018_s25, 2 }
  0x11   : > { %s748_s6 = smul.u32 12, %s921_s26  ;;  %s302_s13 = scalar_lea.vmem %s1001_s3, %s697_s7 }
  0x12   : > { %s932_s10 = scalar_lea.vmem %s998_s0, %s747_s27  ;;  %s699_s15 = sshll.u32 %s1018_s25, 3 }
  0x13   : > { %s294_s14 = sadd.s32 %s748_s6, %s1018_s25  ;;  %s940_s24 = scalar_lea.vmem %s1003_s5, %s699_s15 }
  0x14   : > { %s695_s16 = sshll.u32 %s294_s14, 3  ;;  %314 = sbr.rel (%p700_p7) target bundleno = 28 (0x1c), region = 44 }
  0x15   : > { %s296_s30 = scalar_lea.vmem %s1000_s2, %s695_s16 }
  0x19   : > { %vm315_vm0 = vcmask 261120   ;;  %v855_v0 = vmov 0.0  }
  0x1a   : > { %316 = vst.msk [vmem:[#allocation2] sm:$0xff] %vm315_vm0, %v855_v0  ;;  %317 = vst.msk [vmem:[#allocation2 + $0x8] sm:$0xff] %vm315_vm0, %v855_v0 }
  0x1b   : > { %318 = vst.msk [vmem:[#allocation2 + $0x10] sm:$0xff] %vm315_vm0, %v855_v0  ;;  %319 = vst.msk [vmem:[#allocation2 + $0x18] sm:$0xff] %vm315_vm0, %v855_v0 }
  0x1c PF: > { %v322_v1 = vld [vmem:[%s296_s30 + $0x10] sm:$0xff]  ;;  %v320_v2 = vld [vmem:[%s296_s30] sm:$0xff]  ;;  %v856_v3 = vmov 0   ;;  %v323_v4 = vld [vmem:[%s296_s30 + $0x18] sm:$0xff]  ;;  %s1005_s6 = scalar_lea.vmem %s999_s1, %s921_s26  ;;  %vm383_vm4 = vcmask 785408   ;;  %vm545_vm10 = vcmask 261120  }
  0x1d   : > { %792 = vset.pattern.permute.xlu1 %v856_v3  ;;  %791 = vset.pattern.permute.xlu0 %v856_v3  ;;  %v321_v5 = vld [vmem:[%s296_s30 + $0x8] sm:$0xff]  ;;  %v715_v6 = vld [vmem:[%s302_s13] sm:$0xff]   ;;  %v795_v39 = vld [vmem:[%s932_s10 + $0x18] sm:$0xff]   ;;  %p710_p8 = scmp.ne.s32.totalorder %s837_s18, 3 }
  0x1e   : > { %337 = vperm.xlu1 %792, %v322_v1   ;;  %327 = vperm.xlu0 %791, %v320_v2   ;;  %v722_v7 = vld [vmem:[%s302_s13 + $0x8] sm:$0xff]   ;;  %v701_v8 = vld [vmem:[%s1005_s6] ss:$0 sm:$0xff]  ;;  %v716_v9 = vunpack.c.l.bf16 %v715_v6  ;;  %v717_v15 = vunpack.c.h.bf16 %v715_v6  ;;  %v796_v40 = vld [vmem:[%s932_s10 + $0x10] sm:$0xff]  }
  0x1f   : > { %v720_v12 = vunpack.c.l.bf16 %v722_v7  ;;  %v721_v20 = vunpack.c.h.bf16 %v722_v7  ;;  %v793_v37 = vld [vmem:[%s932_s10 + $0x28] sm:$0xff]   ;;  %v794_v38 = vld [vmem:[%s932_s10 + $0x20] sm:$0xff]  }
  0x20   : > { %vm375_vm1 = vcmp.gt.f32.partialorder %v716_v9, 0.0  ;;  %vm376_vm6 = vcmp.gt.f32.partialorder %v717_v15, 0.0  ;;  %731 = vmatprep.subr.bf16.mxu0 %v793_v37  ;;  %v797_v41 = vld [vmem:[%s932_s10 + $0x8] sm:$0xff]   ;;  %v798_v42 = vld [vmem:[%s932_s10] sm:$0xff]  }
  0x21   : > { %vm377_vm5 = vcmp.gt.f32.partialorder %v720_v12, 0.0  ;;  %vm378_vm9 = vcmp.gt.f32.partialorder %v721_v20, 0.0  ;;  %732 = vmatpush3.bf16.msra.mxu0 %v793_v37  ;;  %v525_v15 = vld [vmem:[#allocation2] sm:$0xff] }
  0x22   : > { %342 = vperm.xlu1 %792, %v323_v4   ;;  %332 = vperm.xlu0 %791, %v321_v5   ;;  %v528_v20 = vld [vmem:[#allocation2 + $0x18] sm:$0xff] }
  0x23   : > { %733 = vmatprep.subr.bf16.mxu0 %v794_v38 }
  0x25   : > { %734 = vmatpush3.bf16.msra.mxu0 %v794_v38 }
  0x26   : > { %735 = vmatprep.subr.bf16.mxu0 %v795_v39 }
  0x29   : > { %736 = vmatpush3.bf16.msra.mxu0 %v795_v39 }
  0x2a   : > { %737 = vmatprep.subr.bf16.mxu0 %v796_v40 }
  0x2d   : > { %738 = vmatpush3.bf16.msra.mxu0 %v796_v40 }
  0x2e   : > { %739 = vmatprep.subr.bf16.mxu0 %v797_v41 }
  0x31   : > { %740 = vmatpush3.bf16.msra.mxu0 %v797_v41 }
  0x32   : > { %741 = vmatprep.subr.bf16.mxu0 %v798_v42 }
  0x35   : > { %742 = vmatpush3.bf16.msra.mxu0 %v798_v42 }
  0x99   : > { %v338_v10 = vpop.permute.xlu1 %337  ;;  %v328_v11 = vpop.permute.xlu0 %327 }
  0x9a   : > { %v353_v13 = vadd.f32 %v701_v8, %v338_v10  ;;  %v351_v14 = vadd.f32 %v701_v8, %v328_v11  ;;  %v527_v11 = vld [vmem:[#allocation2 + $0x10] sm:$0xff] }
  0x9c   : > { %v361_v16 = vmul.f32 0.2, %v353_v13  ;;  %v359_v17 = vmul.f32 0.2, %v351_v14  ;;  %vm355_vm2 = vcmp.gt.f32.partialorder %v351_v14, 0.0  ;;  %vm357_vm3 = vcmp.gt.f32.partialorder %v353_v13, 0.0 }
  0x9d   : > { %v343_v18 = vpop.permute.xlu1 %342  ;;  %v333_v19 = vpop.permute.xlu0 %332 }
  0x9e   : > { %v354_v21 = vadd.f32 %v701_v8, %v343_v18  ;;  %v352_v22 = vadd.f32 %v701_v8, %v333_v19  ;;  %v363_v23 = vsel %vm355_vm2, %v351_v14, %v359_v17  ;;  %v365_v24 = vsel %vm357_vm3, %v353_v13, %v361_v16 }
  0x9f   : > { %v379_v25 = vsel %vm375_vm1, %v363_v23, -1e+30  ;;  %v381_v29 = vsel %vm377_vm5, %v365_v24, -1e+30 }
  0xa0   : > { %v362_v26 = vmul.f32 0.2, %v354_v21  ;;  %v360_v27 = vmul.f32 0.2, %v352_v22  ;;  %v384_v28 = vsel %vm383_vm4, %v379_v25, -inf  ;;  %vm356_vm7 = vcmp.gt.f32.partialorder %v352_v22, 0.0 }
  0xa1   : > { %385 = vmax.xlane.f32.xlu0 %v384_v28  ;;  %vm358_vm8 = vcmp.gt.f32.partialorder %v354_v21, 0.0  ;;  %v390_v33 = vsel %vm383_vm4, %v381_v29, -inf }
  0xa2   : > { %v364_v30 = vsel %vm356_vm7, %v352_v22, %v360_v27  ;;  %v366_v31 = vsel %vm358_vm8, %v354_v21, %v362_v26 }
  0xa3   : > { %v380_v32 = vsel %vm376_vm6, %v364_v30, -1e+30  ;;  %v382_v35 = vsel %vm378_vm9, %v366_v31, -1e+30 }
  0xa4   : > { %v387_v34 = vsel %vm383_vm4, %v380_v32, -inf  ;;  %v393_v36 = vsel %vm383_vm4, %v382_v35, -inf }
  0xa5   : > { %391 = vmax.xlane.f32.xlu0 %v390_v33  ;;  %388 = vmax.xlane.f32.xlu1 %v387_v34 }
  0xa9   : > { %394 = vmax.xlane.f32.xlu0 %v393_v36 }
 0x12a   : > { %v386_v43 = vpop.xlane.xlu0 %385 }
 0x12b   : > { %v396_v44 = vsub.f32 %v379_v25, %v386_v43  ;;  %v526_v25 = vld [vmem:[#allocation2 + $0x8] sm:$0xff] }
 0x12d   : > { %v400_v45 = vmul.f32 1.442695, %v396_v44 }
 0x12e   : > { %v389_v46 = vpop.xlane.xlu1 %388  ;;  %v392_v47 = vpop.xlane.xlu0 %391 }
 0x12f   : > { %799 = vpow2.f32 %v400_v45  ;;  %v397_v48 = vsub.f32 %v380_v32, %v389_v46  ;;  %v398_v49 = vsub.f32 %v381_v29, %v392_v47 }
 0x131   : > { %v402_v50 = vmul.f32 1.442695, %v397_v48  ;;  %v404_v51 = vmul.f32 1.442695, %v398_v49 }
 0x132   : > { %v395_v52 = vpop.xlane.xlu0 %394 }
 0x133   : > { %801 = vpow2.f32 %v402_v50  ;;  %v399_v53 = vsub.f32 %v382_v35, %v395_v52 }
 0x134   : > { %803 = vpow2.f32 %v404_v51 }
 0x135   : > { %v406_v54 = vmul.f32 1.442695, %v399_v53 }
 0x137   : > { %805 = vpow2.f32 %v406_v54 }
 0x13c   : > { %v800_v55 = vpop.eup %799 }
 0x13d   : > { %v408_v56 = vsel %vm383_vm4, %v800_v55, 0.0 }
 0x13e   : > { %409 = vadd.xlane.f32.xlu1 %v408_v56 }
 0x140   : > { %v802_v57 = vpop.eup %801 }
 0x141   : > { %v804_v58 = vpop.eup %803  ;;  %v411_v59 = vsel %vm383_vm4, %v802_v57, 0.0  ;;  %v420_v60 = vpack.c.bf16 %v802_v57, %v800_v55 }
 0x142   : > { %412 = vadd.xlane.f32.xlu0 %v411_v59  ;;  %v414_v61 = vsel %vm383_vm4, %v804_v58, 0.0 }
 0x143   : > { %415 = vadd.xlane.f32.xlu1 %v414_v61  ;;  %743 = vmatprep.mubr.msk.bf16.mxu0 %vm383_vm4, %v420_v60 }
 0x144   : > { %v806_v62 = vpop.eup %805 }
 0x145   : > { %v417_v63 = vsel %vm383_vm4, %v806_v62, 0.0  ;;  %v421_v0 = vpack.c.bf16 %v806_v62, %v804_v58 }
 0x146   : > { %418 = vadd.xlane.f32.xlu0 %v417_v63 }
 0x147   : > { %744 = vmatmul.mubr.msk.bf16.vlgmr.msra.gmra.mxu0 %vm383_vm4, %v421_v0 }
 0x1c7   : > { %v410_v1 = vpop.xlane.xlu1 %409 }
 0x1c8   : > { %v529_v6 = vadd.f32 1e-16, %v410_v1 }
 0x1cb   : > { %v413_v2 = vpop.xlane.xlu0 %412 }
 0x1cc   : > { %v416_v3 = vpop.xlane.xlu1 %415  ;;  %v530_v8 = vadd.f32 1e-16, %v413_v2 }
 0x1cd   : > { %v531_v4 = vadd.f32 1e-16, %v416_v3 }
 0x1cf   : > { %v419_v5 = vpop.xlane.xlu0 %418  ;;  %807 = vrcp.f32 %v531_v4 }
 0x1d0   : > { %v532_v7 = vadd.f32 1e-16, %v419_v5  ;;  %809 = vrcp.f32 %v529_v6 }
 0x1d2   : > { %811 = vrcp.f32 %v532_v7 }
 0x1d3   : > { %813 = vrcp.f32 %v530_v8 }
 0x1dc   : > { %v808_v9 = vpop.eup %807 }
 0x1dd   : > { %v810_v13 = vpop.eup %809 }
 0x1df   : > { %v812_v18 = vpop.eup %811 }
 0x1e0   : > { %v814_v23 = vpop.eup %813 }
 0x207   : > { %v745_v10 = vpop.f32.mrf.mxu0 }
 0x208   : > { %v539_v12 = vmul.f32 %v808_v9, %v745_v10 }
 0x209   : > { %v510_v14 = vpop.f32.mrf.mxu0 }
 0x20a   : > { %v543_v16 = vadd.f32 %v539_v12, %v527_v11  ;;  %v537_v17 = vmul.f32 %v810_v13, %v510_v14 }
 0x20b   : > { %v746_v19 = vpop.f32.mrf.mxu0 }
 0x20c   : > { %548 = vst.msk [vmem:[#allocation2 + $0x10] sm:$0xff] %vm545_vm10, %v543_v16  ;;  %v541_v21 = vadd.f32 %v537_v17, %v525_v15  ;;  %v540_v22 = vmul.f32 %v812_v18, %v746_v19 }
 0x20d   : > { %v513_v24 = vpop.f32.mrf.mxu0 }
 0x20e   : > { %546 = vst.msk [vmem:[#allocation2] sm:$0xff] %vm545_vm10, %v541_v21  ;;  %v544_v26 = vadd.f32 %v540_v22, %v528_v20  ;;  %v538_v27 = vmul.f32 %v814_v23, %v513_v24  ;;  %553 = sbr.rel (%p710_p8) target bundleno = 545 (0x221), region = 48 }
 0x210   : > { %549 = vst.msk [vmem:[#allocation2 + $0x18] sm:$0xff] %vm545_vm10, %v544_v26  ;;  %v542_v28 = vadd.f32 %v538_v27, %v526_v25 }
 0x212   : > { %547 = vst.msk [vmem:[#allocation2 + $0x8] sm:$0xff] %vm545_vm10, %v542_v28 }
 0x213   : > { %v711_v30 = vld [vmem:[%s1002_s4] ss:$0 sm:$0xff]  ;;  %v556_v34 = vld [vmem:[#allocation2 + $0x10] sm:$0xff] }
 0x214   : > { %v560_v36 = vmul.f32 0.25, %v556_v34 }
 0x215   : > { %v554_v29 = vld [vmem:[#allocation2] sm:$0xff] }
 0x216   : > { %v558_v32 = vmul.f32 0.25, %v554_v29  ;;  %v571_v40 = vadd.f32 %v711_v30, %v560_v36 }
 0x217   : > { %v557_v35 = vld [vmem:[#allocation2 + $0x18] sm:$0xff] }
 0x218   : > { %v561_v37 = vmul.f32 0.25, %v557_v35  ;;  %v569_v38 = vadd.f32 %v711_v30, %v558_v32  ;;  %v575_v44 = vmax.f32 %v571_v40, 0.0 }
 0x219   : > { %v555_v31 = vld [vmem:[#allocation2 + $0x8] sm:$0xff] }
 0x21a   : > { %v559_v33 = vmul.f32 0.25, %v555_v31  ;;  %v572_v41 = vadd.f32 %v711_v30, %v561_v37  ;;  %v573_v42 = vmax.f32 %v569_v38, 0.0  ;;  %579 = vst.msk [vmem:[%s940_s24 + $0x10] sm:$0xff] %vm545_vm10, %v575_v44 }
 0x21c   : > { %v570_v39 = vadd.f32 %v711_v30, %v559_v33  ;;  %v576_v45 = vmax.f32 %v572_v41, 0.0  ;;  %577 = vst.msk [vmem:[%s940_s24] sm:$0xff] %vm545_vm10, %v573_v42 }
 0x21e   : > { %v574_v43 = vmax.f32 %v570_v39, 0.0  ;;  %580 = vst.msk [vmem:[%s940_s24 + $0x18] sm:$0xff] %vm545_vm10, %v576_v45 }
 0x220   : > { %578 = vst.msk [vmem:[%s940_s24 + $0x8] sm:$0xff] %vm545_vm10, %v574_v43 }
 0x221 PF: > { %s15_s22 = sadd.s32 1, %s853_s22   ;;  %s1006_s7 = sld [smem:[#allocation3_spill]] }
 0x222   : > { %p12_p9 = scmp.ge.s32.totalorder %s15_s22, 14   ;;  %s1007_s18 = smov %s845_s20 }
 0x223   : > { %s1008_s19 = smov %s849_s21  ;;  %s1009_s20 = smov %s1012_s23 }
 0x224   :  { %14 = sbr.rel (!%p12_p9) target bundleno = 3 (0x3), region = 87 }
 0x227   : > { %s1010_s21 = smov %s1006_s7 }

// kernel: scoiget_forward.10
= control target key start
LH: loop header
LB: loop body
LE: loop exit
PB: predicated region body
PF: predicated region fallthrough
CT: control target
= control target key end

     0   :  { %s1051_s21 = smov 0   ;;  %s1053_s22 = smov 0   ;;  %s1135_s0 = inlined_call_operand.vmem [shape: f32[96,32], index: 0, kind: input, shape index: {}]   ;;  %s1136_s1 = inlined_call_operand.vmem [shape: bf16[4,32,32], index: 1, kind: input, shape index: {}]   ;;  %s1137_s2 = inlined_call_operand.vmem [shape: bf16[4,32,1], index: 2, kind: input, shape index: {}]   ;;  %s1138_s3 = inlined_call_operand.vmem [shape: bf16[4,32,1], index: 3, kind: input, shape index: {}]   ;;  %s1139_s4 = inlined_call_operand.vmem [shape: bf16[4,96,32], index: 4, kind: output, shape index: {0}]   ;;  %s1140_s5 = inlined_call_operand.vmem [shape: f32[4,96,1], index: 5, kind: output, shape index: {1}]   ;;  %s1141_s6 = inlined_call_operand.vmem [shape: f32[4,96,1], index: 6, kind: output, shape index: {2}]  }
   0x1   :  { %s1055_s23 = smov 0   ;;  %s1057_s24 = smov 0  }
   0x2   :  { %s1059_s25 = smov 0  }
   0x3 LB: > { %s26_s26 = sadd.s32 1, %s1006_s23  ;;  %s29_s27 = sadd.s32 1, %s1010_s24  ;;  %s1014_s25 = sphi %s1059_s25, %s17_s25   ;;  %s1010_s24 = sphi %s1057_s24, %s1145_s24   ;;  %s1006_s23 = sphi %s1055_s23, %s1144_s23   ;;  %s1002_s22 = sphi %s1053_s22, %s1143_s22   ;;  %s998_s21 = sphi %s1051_s21, %s1142_s21  }
   0x4   : > { %p27_p0 = scmp.ge.s32.totalorder %s26_s26, 4  ;;  %p853_p1 = scmp.ge.s32.totalorder %s1014_s25, 1 }
   0x5   : > { %p266_p2 = scmp.lt.s32.totalorder %s1014_s25, 13 }
   0x6   : > { %s1147_s26 = smov (%p27_p0, %s26_s26), 0  ;;  %s1149_s27 = smov (!%p27_p0, %s29_s27), %s1010_s24 }
   0x7   : > { %p267_p3 = pnand %p853_p1, %p266_p2  ;;  %p31_p4 = scmp.ge.s32.totalorder %s1149_s27, 3 }
   0x8   : > { %p339_p5 = scmp.lt.s32.totalorder (!%p267_p3), %s998_s21, 3  ;;  %s854_s28 = sshll.u32 (!%p267_p3), %s1002_s22, 2 }
   0x9   : > { %s1151_s27 = smov (%p31_p4, %s1149_s27), 0  ;;  %270 = sbr.rel (%p267_p3) target bundleno = 428 (0x1ac), region = 36 }
   0xa   : > { %p334_p6 = scmp.lt.s32.totalorder (!%p267_p3), %s854_s28, 11 }
   0xe   : > { %s1153_s21 = smov (!%p339_p5, %s998_s21), 3  ;;  %s1155_s28 = smov (!%p334_p6, %s854_s28), 11  ;;  %vm407_vm0 = vcmask 261120   ;;  %vm624_vm1 = vcmask 257024   ;;  %vm536_vm2 = vcmask 7168  }
   0xf   : > { %s886_s29 = sshll.u32 %s1153_s21, 4  ;;  %s929_s30 = smul.u32 12, %s1153_s21 }
  0x10   : > { %s343_s9 = scalar_lea.vmem %s1136_s1, %s886_s29  ;;  %s855_s10 = sshll.u32 %s1155_s28, 3 }
  0x11   : > { %v970_v0 = vld [vmem:[%s343_s9 + $0x8] sm:$0xff]   ;;  %s337_s13 = scalar_lea.vmem %s1135_s0, %s855_s10  ;;  %s1087_s14 = sadd.s32 %s929_s30, %s1155_s28  ;;  %v971_v1 = vld [vmem:[%s343_s9] sm:$0xff]  }
  0x12   : > { %905 = vmatprep.subr.bf16.mxu0 %v970_v0  ;;  %v385_v2 = vld [vmem:[%s337_s13] sm:$0xff]  ;;  %v386_v3 = vld [vmem:[%s337_s13 + $0x8] sm:$0xff]  ;;  %v387_v5 = vld [vmem:[%s337_s13 + $0x10] sm:$0xff]  ;;  %s353_s17 = scalar_lea.vmem %s1138_s3, %s886_s29  ;;  %s348_s20 = scalar_lea.vmem %s1137_s2, %s886_s29 }
  0x13   : > { %906 = vmatpush3.bf16.msra.mxu0 %v970_v0  ;;  %v389_v4 = vpack.c.bf16 %v386_v3, %v385_v2  ;;  %v388_v6 = vld [vmem:[%s337_s13 + $0x18] sm:$0xff]  ;;  %v972_v8 = vld [vmem:[%s353_s17 + $0x8] sm:$0xff]   ;;  %v974_v10 = vld [vmem:[%s353_s17] sm:$0xff]   ;;  %s863_s21 = sshll.u32 %s1087_s14, 2  ;;  %s865_s29 = sshll.u32 %s1087_s14, 3 }
  0x14   : > { %907 = vmatprep.subr.bf16.mxu0 %v971_v1  ;;  %v390_v7 = vpack.c.bf16 %v388_v6, %v387_v5  ;;  %v973_v9 = vld [vmem:[%s348_s20 + $0x8] sm:$0xff]   ;;  %v975_v11 = vld [vmem:[%s348_s20] sm:$0xff]   ;;  %s362_s30 = scalar_lea.vmem %s1139_s4, %s863_s21  ;;  %s372_s9 = scalar_lea.vmem %s1140_s5, %s865_s29 }
  0x15   : > { %909 = vmatprep.mubr.msk.bf16.mxu0 %vm407_vm0, %v389_v4  ;;  %913 = vmatprep.subr.bf16.mxu1 %v973_v9  ;;  %s382_s12 = scalar_lea.vmem %s1141_s6, %s865_s29 }
  0x16   : > { %914 = vmatpush3.bf16.msra.mxu1 %v973_v9 }
  0x17   : > { %908 = vmatpush3.bf16.msra.mxu0 %v971_v1  ;;  %915 = vmatprep.subr.bf16.mxu1 %v975_v11 }
  0x18   : > { %921 = vmatprep.subr.bf16.mxu0 %v972_v8 }
  0x1a   : > { %910 = vmatmul.mubr.msk.bf16.vlgmr.msra.gmra.mxu0 %vm407_vm0, %v390_v7  ;;  %916 = vmatpush3.bf16.msra.mxu1 %v975_v11 }
  0x1b   : > { %922 = vmatpush3.bf16.msra.mxu0 %v972_v8 }
  0x1c   : > { %923 = vmatprep.subr.bf16.mxu0 %v974_v10 }
  0x1f   : > { %924 = vmatpush3.bf16.msra.mxu0 %v974_v10 }
  0xda   : > { %v911_v12 = vpop.f32.mrf.mxu0 }
  0xdb   : > { %v891_v13 = vpack.c.bf16 %v911_v12, %v911_v12 }
  0xdc   : > { %v448_v14 = vpop.f32.mrf.mxu0 }
  0xdd   : > { %627 = vst.msk [vmem:[%s362_s30 + $0x8] sm:$0xf] %vm624_vm1, %v891_v13  ;;  %v889_v15 = vpack.c.bf16 %v448_v14, %v448_v14 }
  0xde   : > { %v912_v16 = vpop.f32.mrf.mxu0 }
  0xdf   : > { %625 = vst.msk [vmem:[%s362_s30] sm:$0xf] %vm624_vm1, %v889_v15  ;;  %v892_v17 = vpack.c.bf16 %v912_v16, %v912_v16  ;;  %v464_v21 = vpack.c.bf16 %v912_v16, %v911_v12 }
  0xe0   : > { %v451_v18 = vpop.f32.mrf.mxu0 }
  0xe1   : > { %628 = vst.msk [vmem:[%s362_s30 + $0xc] sm:$0xf] %vm624_vm1, %v892_v17  ;;  %v890_v19 = vpack.c.bf16 %v451_v18, %v451_v18  ;;  %v463_v20 = vpack.c.bf16 %v451_v18, %v448_v14 }
  0xe3   : > { %626 = vst.msk [vmem:[%s362_s30 + $0x4] sm:$0xf] %vm624_vm1, %v890_v19  ;;  %917 = vmatprep.mubr.msk.bf16.mxu1 %vm407_vm0, %v463_v20  ;;  %925 = vmatprep.mubr.msk.bf16.mxu0 %vm407_vm0, %v463_v20 }
  0xe4   : > { %918 = vmatmul.mubr.msk.bf16.vlgmr.msra.gmra.mxu1 %vm407_vm0, %v464_v21  ;;  %926 = vmatmul.mubr.msk.bf16.vlgmr.msra.gmra.mxu0 %vm407_vm0, %v464_v21 }
 0x1a4   : > { %v919_v22 = vpop.f32.mrf.mxu1  ;;  %v927_v23 = vpop.f32.mrf.mxu0 }
 0x1a5   : > { %539 = vst.msk [vmem:[%s372_s9 + $0x10] sm:$0xff] %vm536_vm2, %v919_v22  ;;  %608 = vst.msk [vmem:[%s382_s12 + $0x10] sm:$0xff] %vm536_vm2, %v927_v23 }
 0x1a6   : > { %v521_v24 = vpop.f32.mrf.mxu1  ;;  %v591_v25 = vpop.f32.mrf.mxu0 }
 0x1a7   : > { %537 = vst.msk [vmem:[%s372_s9] sm:$0xff] %vm536_vm2, %v521_v24  ;;  %606 = vst.msk [vmem:[%s382_s12] sm:$0xff] %vm536_vm2, %v591_v25 }
 0x1a8   : > { %v920_v26 = vpop.f32.mrf.mxu1  ;;  %v928_v27 = vpop.f32.mrf.mxu0 }
 0x1a9   : > { %540 = vst.msk [vmem:[%s372_s9 + $0x18] sm:$0xff] %vm536_vm2, %v920_v26  ;;  %609 = vst.msk [vmem:[%s382_s12 + $0x18] sm:$0xff] %vm536_vm2, %v928_v27 }
 0x1aa   : > { %v524_v28 = vpop.f32.mrf.mxu1  ;;  %v594_v29 = vpop.f32.mrf.mxu0 }
 0x1ab   : > { %538 = vst.msk [vmem:[%s372_s9 + $0x8] sm:$0xff] %vm536_vm2, %v524_v28  ;;  %607 = vst.msk [vmem:[%s382_s12 + $0x8] sm:$0xff] %vm536_vm2, %v594_v29 }
 0x1ac PF: > { %s17_s25 = sadd.s32 1, %s1014_s25   ;;  %s1142_s21 = smov %s1006_s23 }
 0x1ad   : > { %p14_p7 = scmp.ge.s32.totalorder %s17_s25, 14   ;;  %s1143_s22 = smov %s1010_s24 }
 0x1ae   : > { %s1144_s23 = smov %s1147_s26  ;;  %s1145_s24 = smov %s1151_s27 }
 0x1af   :  { %16 = sbr.rel (!%p14_p7) target bundleno = 3 (0x3), region = 99 }

// kernel: scoiget_forward.12
= control target key start
LH: loop header
LB: loop body
LE: loop exit
PB: predicated region body
PF: predicated region fallthrough
CT: control target
= control target key end

     0   :  { %s993_s21 = smov 0   ;;  %s995_s22 = smov 0   ;;  %s1057_s0 = inlined_call_operand.vmem [shape: f32[96,32], index: 0, kind: input, shape index: {}]   ;;  %s1058_s1 = inlined_call_operand.vmem [shape: bf16[1,32,16], index: 1, kind: input, shape index: {}]   ;;  %s1059_s2 = inlined_call_operand.vmem [shape: bf16[1,16,1], index: 2, kind: input, shape index: {}]   ;;  %s1060_s3 = inlined_call_operand.vmem [shape: bf16[1,16,1], index: 3, kind: input, shape index: {}]   ;;  %s1061_s4 = inlined_call_operand.vmem [shape: bf16[1,96,16], index: 4, kind: output, shape index: {0}]   ;;  %s1062_s5 = inlined_call_operand.vmem [shape: f32[1,96,1], index: 5, kind: output, shape index: {1}]   ;;  %s1063_s6 = inlined_call_operand.vmem [shape: f32[1,96,1], index: 6, kind: output, shape index: {2}]  }
   0x1   :  { %s997_s23 = smov 0  }
   0x2 LB: > { %s29_s24 = sadd.s32 1, %s952_s22  ;;  %p847_p0 = scmp.ge.s32.totalorder %s956_s23, 1  ;;  %s956_s23 = sphi %s997_s23, %s17_s23   ;;  %s952_s22 = sphi %s995_s22, %s1065_s22   ;;  %s948_s21 = sphi %s993_s21, %s1064_s21  }
   0x3   : > { %p31_p1 = scmp.ge.s32.totalorder %s29_s24, 3  ;;  %p266_p2 = scmp.lt.s32.totalorder %s956_s23, 4 }
   0x5   : > { %s1067_s24 = smov (%p31_p1, %s29_s24), 0  ;;  %p267_p3 = pnand %p847_p0, %p266_p2 }
   0x6   : > { %s848_s27 = sshll.u32 (!%p267_p3), %s948_s21, 2 }
   0x7   : > { %270 = sbr.rel (%p267_p3) target bundleno = 431 (0x1af), region = 36  ;;  %p334_p4 = scmp.lt.s32.totalorder (!%p267_p3), %s848_s27, 11 }
   0xc   : > { %v930_v0 = vld [vmem:[%s1058_s1 + $0x8] sm:$0xff]   ;;  %v931_v1 = vld [vmem:[%s1058_s1] sm:$0xff]   ;;  %s1069_s27 = smov (!%p334_p4, %s848_s27), 11  ;;  %vm407_vm0 = vcmask 261120   ;;  %vm609_vm1 = vcmask 125952   ;;  %vm473_vm2 = vcmask 130048  }
   0xd   : > { %886 = vmatprep.subr.bf16.mxu0 %v930_v0  ;;  %s1017_s30 = sshll.u32 %s1069_s27, 3  ;;  %v932_v8 = vld [vmem:[%s1059_s2] sm:$0xff]   ;;  %s851_s14 = sshll.u32 %s1069_s27, 2  ;;  %vm529_vm3 = vcmask 7168  }
   0xe   : > { %887 = vmatpush3.bf16.msra.mxu0 %v930_v0  ;;  %s337_s9 = scalar_lea.vmem %s1057_s0, %s1017_s30  ;;  %894 = vmatprep.subr.bf16.mxu1 %v932_v8  ;;  %v933_v9 = vld [vmem:[%s1060_s3] sm:$0xff]   ;;  %s362_s17 = scalar_lea.vmem %s1061_s4, %s851_s14 }
   0xf   : > { %888 = vmatprep.subr.bf16.mxu0 %v931_v1  ;;  %v385_v2 = vld [vmem:[%s337_s9] sm:$0xff]  ;;  %v386_v3 = vld [vmem:[%s337_s9 + $0x8] sm:$0xff]  ;;  %v387_v4 = vld [vmem:[%s337_s9 + $0x10] sm:$0xff]  ;;  %895 = vmatpush3.bf16.msra.mxu1 %v932_v8  ;;  %s372_s20 = scalar_lea.vmem %s1062_s5, %s1017_s30  ;;  %s382_s26 = scalar_lea.vmem %s1063_s6, %s1017_s30 }
  0x10   : > { %v389_v5 = vpack.c.bf16 %v386_v3, %v385_v2  ;;  %v388_v6 = vld [vmem:[%s337_s9 + $0x18] sm:$0xff]  ;;  %900 = vmatprep.subr.bf16.mxu1 %v933_v9 }
  0x11   : > { %v390_v7 = vpack.c.bf16 %v388_v6, %v387_v4 }
  0x12   : > { %889 = vmatpush3.bf16.msra.mxu0 %v931_v1  ;;  %890 = vmatprep.mubr.msk.bf16.mxu0 %vm407_vm0, %v389_v5 }
  0x15   : > { %891 = vmatmul.mubr.msk.bf16.vlgmr.msra.gmra.mxu0 %vm407_vm0, %v390_v7 }
  0xd5   : > { %v892_v10 = vpop.f32.mrf.mxu0 }
  0xd6   : > { %v874_v11 = vpack.c.bf16 %v892_v10, %v892_v10 }
  0xd7   : > { %v448_v12 = vpop.f32.mrf.mxu0 }
  0xd8   : > { %612 = vst.msk [vmem:[%s362_s17 + $0x8] sm:$0xf] %vm609_vm1, %v874_v11  ;;  %v872_v13 = vpack.c.bf16 %v448_v12, %v448_v12 }
  0xd9   : > { %v893_v14 = vpop.f32.mrf.mxu0 }
  0xda   : > { %610 = vst.msk [vmem:[%s362_s17] sm:$0xf] %vm609_vm1, %v872_v13  ;;  %v875_v15 = vpack.c.bf16 %v893_v14, %v893_v14  ;;  %v464_v19 = vpack.c.bf16 %v893_v14, %v892_v10 }
  0xdb   : > { %v451_v16 = vpop.f32.mrf.mxu0 }
  0xdc   : > { %613 = vst.msk [vmem:[%s362_s17 + $0xc] sm:$0xf] %vm609_vm1, %v875_v15  ;;  %v463_v17 = vpack.c.bf16 %v451_v16, %v448_v12  ;;  %v873_v18 = vpack.c.bf16 %v451_v16, %v451_v16 }
  0xde   : > { %611 = vst.msk [vmem:[%s362_s17 + $0x4] sm:$0xf] %vm609_vm1, %v873_v18  ;;  %896 = vmatprep.mubr.msk.bf16.mxu1 %vm473_vm2, %v463_v17 }
  0xdf   : > { %897 = vmatmul.mubr.msk.bf16.vlgmr.msra.gmra.mxu1 %vm473_vm2, %v464_v19 }
  0xe0   : > { %901 = vmatpush3.bf16.msra.mxu1 %v933_v9  ;;  %902 = vmatprep.mubr.msk.bf16.mxu1 %vm473_vm2, %v463_v17 }
  0xe7   : > { %903 = vmatmul.mubr.msk.bf16.vlgmr.msra.gmra.mxu1 %vm473_vm2, %v464_v19 }
 0x19f   : > { %v898_v20 = vpop.f32.mrf.mxu1 }
 0x1a0   : > { %532 = vst.msk [vmem:[%s372_s20 + $0x10] sm:$0xff] %vm529_vm3, %v898_v20 }
 0x1a1   : > { %v514_v21 = vpop.f32.mrf.mxu1 }
 0x1a2   : > { %530 = vst.msk [vmem:[%s372_s20] sm:$0xff] %vm529_vm3, %v514_v21 }
 0x1a3   : > { %v899_v22 = vpop.f32.mrf.mxu1 }
 0x1a4   : > { %533 = vst.msk [vmem:[%s372_s20 + $0x18] sm:$0xff] %vm529_vm3, %v899_v22 }
 0x1a5   : > { %v517_v23 = vpop.f32.mrf.mxu1 }
 0x1a6   : > { %531 = vst.msk [vmem:[%s372_s20 + $0x8] sm:$0xff] %vm529_vm3, %v517_v23 }
 0x1a7   : > { %v904_v24 = vpop.f32.mrf.mxu1 }
 0x1a8   : > { %593 = vst.msk [vmem:[%s382_s26 + $0x10] sm:$0xff] %vm529_vm3, %v904_v24 }
 0x1a9   : > { %v576_v25 = vpop.f32.mrf.mxu1 }
 0x1aa   : > { %591 = vst.msk [vmem:[%s382_s26] sm:$0xff] %vm529_vm3, %v576_v25 }
 0x1ab   : > { %v905_v26 = vpop.f32.mrf.mxu1 }
 0x1ac   : > { %594 = vst.msk [vmem:[%s382_s26 + $0x18] sm:$0xff] %vm529_vm3, %v905_v26 }
 0x1ad   : > { %v579_v27 = vpop.f32.mrf.mxu1 }
 0x1ae   : > { %592 = vst.msk [vmem:[%s382_s26 + $0x8] sm:$0xff] %vm529_vm3, %v579_v27 }
 0x1af PF: > { %s17_s23 = sadd.s32 1, %s956_s23   ;;  %s1064_s21 = smov %s952_s22 }
 0x1b0   : > { %p14_p5 = scmp.ge.s32.totalorder %s17_s23, 5   ;;  %s1065_s22 = smov %s1067_s24 }
 0x1b2   :  { %16 = sbr.rel (!%p14_p5) target bundleno = 2 (0x2), region = 99 }

// kernel: scoiget_forward.13
= control target key start
LH: loop header
LB: loop body
LE: loop exit
PB: predicated region body
PF: predicated region fallthrough
CT: control target
= control target key end

     0   :  { %s846_s18 = smov 0   ;;  %s848_s19 = smov 0   ;;  %s936_s0 = inlined_call_operand.vmem [shape: bf16[1,96,16], index: 0, kind: input, shape index: {}]   ;;  %s937_s1 = inlined_call_operand.vmem [shape: f32[1,1,96], index: 1, kind: input, shape index: {}]   ;;  %s938_s2 = inlined_call_operand.vmem [shape: f32[1,96,1], index: 2, kind: input, shape index: {}]   ;;  %s939_s3 = inlined_call_operand.vmem [shape: bf16[96,96], index: 3, kind: input, shape index: {}]   ;;  %s940_s4 = inlined_call_operand.vmem [shape: f32[1,16], index: 4, kind: input, shape index: {}]   ;;  %s941_s5 = inlined_call_operand.vmem [shape: f32[96,16], index: 5, kind: output, shape index: {}]  }
   0x1   :  { %s850_s20 = smov 0  }
   0x2 LB: > { %s27_s21 = sadd.s32 1, %s808_s19  ;;  %p688_p0 = scmp.ge.s32.totalorder %s812_s20, 1  ;;  %s812_s20 = sphi %s850_s20, %s15_s20   ;;  %s808_s19 = sphi %s848_s19, %s943_s19   ;;  %s804_s18 = sphi %s846_s18, %s942_s18  }
   0x3   : > { %p29_p1 = scmp.ge.s32.totalorder %s27_s21, 3  ;;  %p235_p2 = scmp.lt.s32.totalorder %s812_s20, 4 }
   0x5   : > { %s945_s21 = smov (%p29_p1, %s27_s21), 0  ;;  %p236_p3 = pnand %p688_p0, %p235_p2 }
   0x6   : > { %s689_s22 = sshll.u32 (!%p236_p3), %s804_s18, 2 }
   0x7   : > { %239 = sbr.rel (%p236_p3) target bundleno = 527 (0x20f), region = 40  ;;  %p291_p4 = scmp.lt.s32.totalorder (!%p236_p3), %s689_s22, 11 }
   0xc   : > { %v814_v0 = vmov 0   ;;  %s947_s22 = smov (!%p291_p4, %s689_s22), 11  ;;  %v695_v7 = vld [vmem:[%s937_s1] ss:$0 sm:$0xff]  ;;  %vm383_vm3 = vcmask 785408   ;;  %v768_v36 = vld [vmem:[%s936_s0 + $0x28] sm:$0xff]  }
   0xd   : > { %767 = vset.pattern.permute.xlu1 %v814_v0  ;;  %766 = vset.pattern.permute.xlu0 %v814_v0  ;;  %s690_s23 = sshll.u32 %s947_s22, 3  ;;  %s692_s27 = sshll.u32 %s947_s22, 2  ;;  %v769_v37 = vld [vmem:[%s936_s0 + $0x20] sm:$0xff]   ;;  %v770_v38 = vld [vmem:[%s936_s0 + $0x18] sm:$0xff]   ;;  %v771_v39 = vld [vmem:[%s936_s0 + $0x10] sm:$0xff]   ;;  %vm315_vm9 = vcmask 130048  }
   0xe   : > { %s296_s26 = scalar_lea.vmem %s938_s2, %s690_s23  ;;  %s302_s30 = scalar_lea.vmem %s939_s3, %s692_s27  ;;  %724 = vmatprep.subr.bf16.mxu0 %v768_v36  ;;  %v772_v40 = vld [vmem:[%s936_s0 + $0x8] sm:$0xff]   ;;  %v773_v41 = vld [vmem:[%s936_s0] sm:$0xff]   ;;  %v815_v0 = vmov 0.0  }
   0xf   : > { %v322_v1 = vld [vmem:[%s296_s26 + $0x10] sm:$0xff]  ;;  %v320_v2 = vld [vmem:[%s296_s26] sm:$0xff]  ;;  %v323_v3 = vld [vmem:[%s296_s26 + $0x18] sm:$0xff]  ;;  %725 = vmatpush3.bf16.msra.mxu0 %v768_v36  ;;  %318 = vst.msk [vmem:[#allocation2 + $0x10] sm:$0xff] %vm315_vm9, %v815_v0  ;;  %s308_s29 = scalar_lea.vmem %s941_s5, %s690_s23 }
  0x10   : > { %337 = vperm.xlu1 %767, %v322_v1   ;;  %327 = vperm.xlu0 %766, %v320_v2   ;;  %v321_v4 = vld [vmem:[%s296_s26 + $0x8] sm:$0xff]  ;;  %v708_v5 = vld [vmem:[%s302_s30] sm:$0xff]   ;;  %316 = vst.msk [vmem:[#allocation2] sm:$0xff] %vm315_vm9, %v815_v0  ;;  %317 = vst.msk [vmem:[#allocation2 + $0x8] sm:$0xff] %vm315_vm9, %v815_v0 }
  0x11   : > { %v715_v6 = vld [vmem:[%s302_s30 + $0x8] sm:$0xff]   ;;  %v709_v8 = vunpack.c.l.bf16 %v708_v5  ;;  %v710_v14 = vunpack.c.h.bf16 %v708_v5  ;;  %726 = vmatprep.subr.bf16.mxu0 %v769_v37  ;;  %319 = vst.msk [vmem:[#allocation2 + $0x18] sm:$0xff] %vm315_vm9, %v815_v0 }
  0x12   : > { %v713_v11 = vunpack.c.l.bf16 %v715_v6  ;;  %v714_v19 = vunpack.c.h.bf16 %v715_v6 }
  0x13   : > { %vm375_vm0 = vcmp.gt.f32.partialorder %v709_v8, 0.0  ;;  %vm376_vm5 = vcmp.gt.f32.partialorder %v710_v14, 0.0  ;;  %727 = vmatpush3.bf16.msra.mxu0 %v769_v37 }
  0x14   : > { %342 = vperm.xlu1 %767, %v323_v3   ;;  %332 = vperm.xlu0 %766, %v321_v4   ;;  %vm377_vm4 = vcmp.gt.f32.partialorder %v713_v11, 0.0  ;;  %vm378_vm8 = vcmp.gt.f32.partialorder %v714_v19, 0.0 }
  0x15   : > { %728 = vmatprep.subr.bf16.mxu0 %v770_v38 }
  0x16   : > { %v527_v11 = vld [vmem:[#allocation2 + $0x10] sm:$0xff] }
  0x17   : > { %729 = vmatpush3.bf16.msra.mxu0 %v770_v38 }
  0x18   : > { %730 = vmatprep.subr.bf16.mxu0 %v771_v39 }
  0x1b   : > { %731 = vmatpush3.bf16.msra.mxu0 %v771_v39 }
  0x1c   : > { %732 = vmatprep.subr.bf16.mxu0 %v772_v40 }
  0x1f   : > { %733 = vmatpush3.bf16.msra.mxu0 %v772_v40 }
  0x20   : > { %734 = vmatprep.subr.bf16.mxu0 %v773_v41 }
  0x23   : > { %735 = vmatpush3.bf16.msra.mxu0 %v773_v41 }
  0x8b   : > { %v338_v9 = vpop.permute.xlu1 %337  ;;  %v328_v10 = vpop.permute.xlu0 %327 }
  0x8c   : > { %v353_v12 = vadd.f32 %v695_v7, %v338_v9  ;;  %v351_v13 = vadd.f32 %v695_v7, %v328_v10 }
  0x8e   : > { %v361_v15 = vmul.f32 0.2, %v353_v12  ;;  %v359_v16 = vmul.f32 0.2, %v351_v13  ;;  %vm355_vm1 = vcmp.gt.f32.partialorder %v351_v13, 0.0  ;;  %vm357_vm2 = vcmp.gt.f32.partialorder %v353_v12, 0.0 }
  0x8f   : > { %v343_v17 = vpop.permute.xlu1 %342  ;;  %v333_v18 = vpop.permute.xlu0 %332 }
  0x90   : > { %v354_v20 = vadd.f32 %v695_v7, %v343_v17  ;;  %v352_v21 = vadd.f32 %v695_v7, %v333_v18  ;;  %v363_v22 = vsel %vm355_vm1, %v351_v13, %v359_v16  ;;  %v365_v23 = vsel %vm357_vm2, %v353_v12, %v361_v15  ;;  %v525_v15 = vld [vmem:[#allocation2] sm:$0xff] }
  0x91   : > { %v379_v24 = vsel %vm375_vm0, %v363_v22, -1e+30  ;;  %v381_v28 = vsel %vm377_vm4, %v365_v23, -1e+30 }
  0x92   : > { %v362_v25 = vmul.f32 0.2, %v354_v20  ;;  %v360_v26 = vmul.f32 0.2, %v352_v21  ;;  %v384_v27 = vsel %vm383_vm3, %v379_v24, -inf  ;;  %vm356_vm6 = vcmp.gt.f32.partialorder %v352_v21, 0.0 }
  0x93   : > { %385 = vmax.xlane.f32.xlu0 %v384_v27  ;;  %vm358_vm7 = vcmp.gt.f32.partialorder %v354_v20, 0.0  ;;  %v390_v32 = vsel %vm383_vm3, %v381_v28, -inf }
  0x94   : > { %v364_v29 = vsel %vm356_vm6, %v352_v21, %v360_v26  ;;  %v366_v30 = vsel %vm358_vm7, %v354_v20, %v362_v25  ;;  %v528_v20 = vld [vmem:[#allocation2 + $0x18] sm:$0xff]  ;;  %v526_v25 = vld [vmem:[#allocation2 + $0x8] sm:$0xff] }
  0x95   : > { %v380_v31 = vsel %vm376_vm5, %v364_v29, -1e+30  ;;  %v382_v34 = vsel %vm378_vm8, %v366_v30, -1e+30  ;;  %v704_v29 = vld [vmem:[%s940_s4] ss:$0 sm:$0xff] }
  0x96   : > { %v387_v33 = vsel %vm383_vm3, %v380_v31, -inf  ;;  %v393_v35 = vsel %vm383_vm3, %v382_v34, -inf }
  0x97   : > { %391 = vmax.xlane.f32.xlu0 %v390_v32  ;;  %388 = vmax.xlane.f32.xlu1 %v387_v33 }
  0x9b   : > { %394 = vmax.xlane.f32.xlu0 %v393_v35 }
 0x11c   : > { %v386_v42 = vpop.xlane.xlu0 %385 }
 0x11d   : > { %v396_v43 = vsub.f32 %v379_v24, %v386_v42 }
 0x11f   : > { %v400_v44 = vmul.f32 1.442695, %v396_v43 }
 0x120   : > { %v389_v45 = vpop.xlane.xlu1 %388  ;;  %v392_v46 = vpop.xlane.xlu0 %391 }
 0x121   : > { %774 = vpow2.f32 %v400_v44  ;;  %v397_v47 = vsub.f32 %v380_v31, %v389_v45  ;;  %v398_v48 = vsub.f32 %v381_v28, %v392_v46 }
 0x123   : > { %v402_v49 = vmul.f32 1.442695, %v397_v47  ;;  %v404_v50 = vmul.f32 1.442695, %v398_v48 }
 0x124   : > { %v395_v51 = vpop.xlane.xlu0 %394 }
 0x125   : > { %776 = vpow2.f32 %v402_v49  ;;  %v399_v52 = vsub.f32 %v382_v34, %v395_v51 }
 0x126   : > { %778 = vpow2.f32 %v404_v50 }
 0x127   : > { %v406_v53 = vmul.f32 1.442695, %v399_v52 }
 0x129   : > { %780 = vpow2.f32 %v406_v53 }
 0x12e   : > { %v775_v54 = vpop.eup %774 }
 0x12f   : > { %v408_v55 = vsel %vm383_vm3, %v775_v54, 0.0 }
 0x130   : > { %409 = vadd.xlane.f32.xlu1 %v408_v55 }
 0x132   : > { %v777_v56 = vpop.eup %776 }
 0x133   : > { %v779_v57 = vpop.eup %778  ;;  %v411_v58 = vsel %vm383_vm3, %v777_v56, 0.0  ;;  %v420_v59 = vpack.c.bf16 %v777_v56, %v775_v54 }
 0x134   : > { %412 = vadd.xlane.f32.xlu0 %v411_v58  ;;  %v414_v60 = vsel %vm383_vm3, %v779_v57, 0.0 }
 0x135   : > { %415 = vadd.xlane.f32.xlu1 %v414_v60  ;;  %736 = vmatprep.mubr.msk.bf16.mxu0 %vm383_vm3, %v420_v59 }
 0x136   : > { %v781_v61 = vpop.eup %780 }
 0x137   : > { %v417_v62 = vsel %vm383_vm3, %v781_v61, 0.0  ;;  %v421_v63 = vpack.c.bf16 %v781_v61, %v779_v57 }
 0x138   : > { %418 = vadd.xlane.f32.xlu0 %v417_v62 }
 0x139   : > { %737 = vmatmul.mubr.msk.bf16.vlgmr.msra.gmra.mxu0 %vm383_vm3, %v421_v63 }
 0x1b9   : > { %v410_v1 = vpop.xlane.xlu1 %409 }
 0x1ba   : > { %v529_v6 = vadd.f32 1e-16, %v410_v1 }
 0x1bd   : > { %v413_v2 = vpop.xlane.xlu0 %412 }
 0x1be   : > { %v416_v3 = vpop.xlane.xlu1 %415  ;;  %v530_v8 = vadd.f32 1e-16, %v413_v2 }
 0x1bf   : > { %v531_v4 = vadd.f32 1e-16, %v416_v3 }
 0x1c1   : > { %v419_v5 = vpop.xlane.xlu0 %418  ;;  %782 = vrcp.f32 %v531_v4 }
 0x1c2   : > { %v532_v7 = vadd.f32 1e-16, %v419_v5  ;;  %784 = vrcp.f32 %v529_v6 }
 0x1c4   : > { %786 = vrcp.f32 %v532_v7 }
 0x1c5   : > { %788 = vrcp.f32 %v530_v8 }
 0x1ce   : > { %v783_v9 = vpop.eup %782 }
 0x1cf   : > { %v785_v13 = vpop.eup %784 }
 0x1d1   : > { %v787_v18 = vpop.eup %786 }
 0x1d2   : > { %v789_v23 = vpop.eup %788 }
 0x1f9   : > { %v738_v10 = vpop.f32.mrf.mxu0 }
 0x1fa   : > { %v539_v12 = vmul.f32 %v783_v9, %v738_v10 }
 0x1fb   : > { %v510_v14 = vpop.f32.mrf.mxu0 }
 0x1fc   : > { %v543_v16 = vadd.f32 %v539_v12, %v527_v11  ;;  %v537_v17 = vmul.f32 %v785_v13, %v510_v14 }
 0x1fd   : > { %v739_v19 = vpop.f32.mrf.mxu0 }
 0x1fe   : > { %548 = vst.msk [vmem:[#allocation2 + $0x10] sm:$0xff] %vm315_vm9, %v543_v16  ;;  %v541_v21 = vadd.f32 %v537_v17, %v525_v15  ;;  %v540_v22 = vmul.f32 %v787_v18, %v739_v19 }
 0x1ff   : > { %v513_v24 = vpop.f32.mrf.mxu0 }
 0x200   : > { %546 = vst.msk [vmem:[#allocation2] sm:$0xff] %vm315_vm9, %v541_v21  ;;  %v544_v26 = vadd.f32 %v540_v22, %v528_v20  ;;  %v538_v27 = vmul.f32 %v789_v23, %v513_v24 }
 0x202   : > { %549 = vst.msk [vmem:[#allocation2 + $0x18] sm:$0xff] %vm315_vm9, %v544_v26  ;;  %v542_v28 = vadd.f32 %v538_v27, %v526_v25 }
 0x204   : > { %547 = vst.msk [vmem:[#allocation2 + $0x8] sm:$0xff] %vm315_vm9, %v542_v28 }
 0x205   : > { %v555_v30 = vld [vmem:[#allocation2 + $0x10] sm:$0xff] }
 0x206   : > { %v566_v31 = vadd.f32 %v704_v29, %v555_v30 }
 0x207   : > { %v553_v32 = vld [vmem:[#allocation2] sm:$0xff] }
 0x208   : > { %570 = vst.msk [vmem:[%s308_s29 + $0x10] sm:$0xff] %vm315_vm9, %v566_v31  ;;  %v564_v33 = vadd.f32 %v704_v29, %v553_v32 }
 0x209   : > { %v556_v34 = vld [vmem:[#allocation2 + $0x18] sm:$0xff] }
 0x20a   : > { %568 = vst.msk [vmem:[%s308_s29] sm:$0xff] %vm315_vm9, %v564_v33  ;;  %v567_v35 = vadd.f32 %v704_v29, %v556_v34 }
 0x20b   : > { %v554_v36 = vld [vmem:[#allocation2 + $0x8] sm:$0xff] }
 0x20c   : > { %571 = vst.msk [vmem:[%s308_s29 + $0x18] sm:$0xff] %vm315_vm9, %v567_v35  ;;  %v565_v37 = vadd.f32 %v704_v29, %v554_v36 }
 0x20e   : > { %569 = vst.msk [vmem:[%s308_s29 + $0x8] sm:$0xff] %vm315_vm9, %v565_v37 }
 0x20f PF: > { %s15_s20 = sadd.s32 1, %s812_s20   ;;  %s942_s18 = smov %s808_s19 }
 0x210   : > { %p12_p5 = scmp.ge.s32.totalorder %s15_s20, 5   ;;  %s943_s19 = smov %s945_s21 }
 0x212   :  { %14 = sbr.rel (!%p12_p5) target bundleno = 2 (0x2), region = 87 }

// kernel: scoiget_forward.14
= control target key start
LH: loop header
LB: loop body
LE: loop exit
PB: predicated region body
PF: predicated region fallthrough
CT: control target
= control target key end

     0   :  { %s997_s13 = smov 0   ;;  %s1059_s0 = inlined_call_operand.vmem [shape: f32[96,16], index: 0, kind: input, shape index: {}]   ;;  %s1060_s1 = inlined_call_operand.vmem [shape: bf16[16,16], index: 1, kind: input, shape index: {}]   ;;  %s1061_s2 = inlined_call_operand.vmem [shape: f32[1,16], index: 2, kind: input, shape index: {}]   ;;  %s1062_s3 = inlined_call_operand.vmem [shape: bf16[16,16], index: 3, kind: input, shape index: {}]   ;;  %s1063_s4 = inlined_call_operand.vmem [shape: f32[1,16], index: 4, kind: input, shape index: {}]   ;;  %s1064_s5 = inlined_call_operand.vmem [shape: bf16[16,32], index: 5, kind: input, shape index: {}]   ;;  %s1065_s6 = inlined_call_operand.vmem [shape: f32[1,32], index: 6, kind: input, shape index: {}]   ;;  %s1066_s7 = inlined_call_operand.vmem [shape: bf16[32,64], index: 7, kind: input, shape index: {}]   ;;  %s1067_s8 = inlined_call_operand.vmem [shape: f32[1,64], index: 8, kind: input, shape index: {}]   ;;  %s1068_s9 = inlined_call_operand.vmem [shape: f32[96,64], index: 9, kind: output, shape index: {0}]   ;;  %s1069_s10 = inlined_call_operand.vmem [shape: f32[96,1], index: 10, kind: output, shape index: {1}]  }
   0x1 LB: > { %s832_s14 = sadd.s32 4294967295, %s940_s13   ;;  %p836_p0 = scmp.ge.s32.totalorder %s940_s13, 1  ;;  %s940_s13 = sphi %s997_s13, %s21_s13  }
   0x2   : > { %p316_p1 = scmp.lt.s32.totalorder %s940_s13, 4 }
   0x4   : > { %p317_p2 = pnand %p836_p0, %p316_p1 }
   0x5   : > { %s837_s17 = sshll.u32 (!%p317_p2), %s832_s14, 2 }
   0x6   : > { %320 = sbr.rel (%p317_p2) target bundleno = 434 (0x1b2), region = 56  ;;  %p360_p3 = scmp.lt.s32.totalorder (!%p317_p2), %s837_s17, 11 }
   0xb   : > { %v913_v0 = vld [vmem:[%s1060_s1] sm:$0xff]   ;;  %s1071_s17 = smov (!%p360_p3, %s837_s17), 11  ;;  %vm399_vm0 = vcmask 130048   ;;  %v916_v9 = vld [vmem:[%s1066_s7 + $0x8] sm:$0xff]   ;;  %vm681_vm1 = vcmask 261120   ;;  %vm583_vm2 = vcmask 7168  }
   0xc   : > { %v914_v1 = vld [vmem:[%s1062_s3] sm:$0xff]   ;;  %879 = vmatprep.subr.bf16.mxu0 %v913_v0  ;;  %s1014_s22 = sshll.u32 %s1071_s17, 3  ;;  %vm737_vm3 = vcmask 523264  }
   0xd   : > { %v915_v2 = vld [vmem:[%s1064_s5] sm:$0xff]   ;;  %880 = vmatpush3.bf16.msra.mxu0 %v913_v0  ;;  %885 = vmatprep.subr.bf16.mxu1 %v914_v1  ;;  %s363_s25 = scalar_lea.vmem %s1059_s0, %s1014_s22  ;;  %s375_s19 = scalar_lea.vmem %s1069_s10, %s1014_s22 }
   0xe   : > { %886 = vmatpush3.bf16.msra.mxu1 %v914_v1  ;;  %891 = vmatprep.subr.bf16.mxu0 %v915_v2  ;;  %v378_v3 = vld [vmem:[%s363_s25] sm:$0xff]  ;;  %v379_v4 = vld [vmem:[%s363_s25 + $0x8] sm:$0xff]  ;;  %v380_v5 = vld [vmem:[%s363_s25 + $0x10] sm:$0xff] }
   0xf   : > { %v382_v6 = vpack.c.bf16 %v379_v4, %v378_v3  ;;  %v381_v7 = vld [vmem:[%s363_s25 + $0x18] sm:$0xff]  ;;  %897 = vmatprep.subr.bf16.mxu1 %v916_v9  ;;  %v917_v10 = vld [vmem:[%s1066_s7] sm:$0xff]   ;;  %s369_s25 = scalar_lea.vmem %s1068_s9, %s1014_s22 }
  0x10   : > { %v383_v8 = vpack.c.bf16 %v381_v7, %v380_v5  ;;  %v847_v11 = vld [vmem:[%s1063_s4] ss:$0 sm:$0xff] }
  0x11   : > { %881 = vmatprep.mubr.msk.bf16.mxu0 %vm399_vm0, %v382_v6  ;;  %887 = vmatprep.mubr.msk.bf16.mxu1 %vm399_vm0, %v382_v6  ;;  %v855_v30 = vld [vmem:[%s1065_s6] ss:$0 sm:$0xff] }
  0x12   : > { %882 = vmatmul.mubr.msk.bf16.vlgmr.msra.gmra.mxu0 %vm399_vm0, %v383_v8  ;;  %888 = vmatmul.mubr.msk.bf16.vlgmr.msra.gmra.mxu1 %vm399_vm0, %v383_v8  ;;  %v843_v53 = vld [vmem:[%s1061_s2] ss:$0 sm:$0xff] }
  0x13   : > { %892 = vmatpush3.bf16.msra.mxu0 %v915_v2  ;;  %893 = vmatprep.mubr.msk.bf16.mxu0 %vm399_vm0, %v382_v6 }
  0x14   : > { %898 = vmatpush3.bf16.msra.mxu1 %v916_v9 }
  0x15   : > { %899 = vmatprep.subr.bf16.mxu1 %v917_v10 }
  0x18   : > { %900 = vmatpush3.bf16.msra.mxu1 %v917_v10 }
  0x1a   : > { %894 = vmatmul.mubr.msk.bf16.vlgmr.msra.gmra.mxu0 %vm399_vm0, %v383_v8 }
  0xd2   : > { %v883_v12 = vpop.f32.mrf.mxu0  ;;  %v889_v13 = vpop.f32.mrf.mxu1 }
  0xd3   : > { %v513_v14 = vadd.f32 %v889_v13, %v847_v11  ;;  %v449_v56 = vadd.f32 %v883_v12, %v843_v53 }
  0xd4   : > { %v440_v15 = vpop.f32.mrf.mxu0  ;;  %v504_v16 = vpop.f32.mrf.mxu1 }
  0xd5   : > { %v523_v17 = vmul.f32 1.442695, %v513_v14  ;;  %v505_v18 = vadd.f32 %v847_v11, %v504_v16  ;;  %v441_v57 = vadd.f32 %v843_v53, %v440_v15  ;;  %v549_v58 = vmul.f32 %v449_v56, %v449_v56 }
  0xd6   : > { %v884_v19 = vpop.f32.mrf.mxu0  ;;  %v890_v20 = vpop.f32.mrf.mxu1 }
  0xd7   : > { %918 = vpow2.f32 %v523_v17  ;;  %v519_v21 = vmul.f32 1.442695, %v505_v18  ;;  %v516_v22 = vadd.f32 %v890_v20, %v847_v11  ;;  %v452_v59 = vadd.f32 %v884_v19, %v843_v53 }
  0xd8   : > { %v443_v23 = vpop.f32.mrf.mxu0  ;;  %v507_v24 = vpop.f32.mrf.mxu1  ;;  %v547_v60 = vmul.f32 %v441_v57, %v441_v57 }
  0xd9   : > { %920 = vpow2.f32 %v519_v21  ;;  %v508_v25 = vadd.f32 %v847_v11, %v507_v24  ;;  %v525_v26 = vmul.f32 1.442695, %v516_v22  ;;  %v444_v61 = vadd.f32 %v843_v53, %v443_v23 }
  0xda   : > { %v895_v27 = vpop.f32.mrf.mxu0  ;;  %v550_v3 = vmul.f32 %v452_v59, %v452_v59 }
  0xdb   : > { %v521_v28 = vmul.f32 1.442695, %v508_v25  ;;  %922 = vpow2.f32 %v525_v26  ;;  %v646_v34 = vadd.f32 %v895_v27, %v855_v30  ;;  %v548_v4 = vmul.f32 %v444_v61, %v444_v61 }
  0xdc   : > { %v637_v29 = vpop.f32.mrf.mxu0 }
  0xdd   : > { %924 = vpow2.f32 %v521_v28  ;;  %v638_v32 = vadd.f32 %v855_v30, %v637_v29  ;;  %v654_v41 = vmax.f32 %v646_v34, 0.0 }
  0xde   : > { %v896_v31 = vpop.f32.mrf.mxu0 }
  0xdf   : > { %v649_v33 = vadd.f32 %v896_v31, %v855_v30  ;;  %v652_v38 = vmax.f32 %v638_v32, 0.0 }
  0xe0   : > { %v640_v35 = vpop.f32.mrf.mxu0 }
  0xe1   : > { %v641_v36 = vadd.f32 %v855_v30, %v640_v35  ;;  %v655_v37 = vmax.f32 %v649_v33, 0.0 }
  0xe3   : > { %v653_v39 = vmax.f32 %v641_v36, 0.0  ;;  %v657_v45 = vpack.c.bf16 %v655_v37, %v654_v41 }
  0xe4   : > { %v919_v40 = vpop.eup %918 }
  0xe5   : > { %v529_v42 = vmax.f32 %v919_v40, 1e-08  ;;  %v656_v43 = vpack.c.bf16 %v653_v39, %v652_v38  ;;  %v859_v40 = vld [vmem:[%s1067_s8] ss:$0 sm:$0xff] }
  0xe6   : > { %v921_v44 = vpop.eup %920 }
  0xe7   : > { %v533_v46 = vmin.f32 %v529_v42, 100.0  ;;  %v527_v47 = vmax.f32 %v921_v44, 1e-08  ;;  %901 = vmatprep.mubr.msk.bf16.mxu1 %vm681_vm1, %v656_v43 }
  0xe8   : > { %902 = vmatmul.mubr.msk.bf16.vlgmr.msra.gmra.mxu1 %vm681_vm1, %v657_v45  ;;  %v923_v48 = vpop.eup %922 }
  0xe9   : > { %926 = vlog2.f32 %v533_v46  ;;  %v531_v49 = vmin.f32 %v527_v47, 100.0  ;;  %v530_v51 = vmax.f32 %v923_v48, 1e-08  ;;  %v553_v62 = vadd.f32 %v549_v58, %v533_v46 }
  0xea   : > { %v925_v50 = vpop.eup %924 }
  0xeb   : > { %928 = vlog2.f32 %v531_v49  ;;  %v528_v52 = vmax.f32 %v925_v50, 1e-08  ;;  %v534_v54 = vmin.f32 %v530_v51, 100.0  ;;  %v551_v1 = vadd.f32 %v547_v60, %v531_v49 }
  0xec   : > { %v557_v6 = vmul.f32 0.5, %v553_v62 }
  0xed   : > { %v532_v55 = vmin.f32 %v528_v52, 100.0  ;;  %930 = vlog2.f32 %v534_v54  ;;  %v554_v8 = vadd.f32 %v550_v3, %v534_v54  ;;  %v555_v12 = vmul.f32 0.5, %v551_v1 }
  0xef   : > { %932 = vlog2.f32 %v532_v55  ;;  %v552_v13 = vadd.f32 %v548_v4, %v532_v55  ;;  %v558_v20 = vmul.f32 0.5, %v554_v8 }
  0xf1   : > { %v556_v24 = vmul.f32 0.5, %v552_v13 }
  0xf6   : > { %v927_v63 = vpop.eup %926 }
  0xf7   : > { %v540_v0 = vmul.f32 0.6931472, %v927_v63 }
  0xf8   : > { %v929_v2 = vpop.eup %928 }
  0xf9   : > { %v545_v5 = vmul.f32 -0.5, %v540_v0  ;;  %v536_v7 = vmul.f32 0.6931472, %v929_v2 }
  0xfa   : > { %v931_v9 = vpop.eup %930 }
  0xfb   : > { %v561_v10 = vadd.f32 %v557_v6, %v545_v5  ;;  %v543_v11 = vmul.f32 -0.5, %v536_v7  ;;  %v542_v15 = vmul.f32 0.6931472, %v931_v9 }
  0xfc   : > { %v933_v14 = vpop.eup %932 }
  0xfd   : > { %v853_v16 = vadd.f32 -0.5, %v561_v10  ;;  %v559_v17 = vadd.f32 %v555_v12, %v543_v11  ;;  %v538_v18 = vmul.f32 0.6931472, %v933_v14  ;;  %v546_v19 = vmul.f32 -0.5, %v542_v15 }
  0xff   : > { %v573_v21 = vsel %vm399_vm0, %v853_v16, 0.0  ;;  %v851_v22 = vadd.f32 -0.5, %v559_v17  ;;  %v544_v23 = vmul.f32 -0.5, %v538_v18  ;;  %v562_v25 = vadd.f32 %v558_v20, %v546_v19 }
 0x100   : > { %574 = vadd.xlane.f32.xlu1 %v573_v21 }
 0x101   : > { %v567_v26 = vsel %vm399_vm0, %v851_v22, 0.0  ;;  %v560_v27 = vadd.f32 %v556_v24, %v544_v23  ;;  %v854_v28 = vadd.f32 -0.5, %v562_v25 }
 0x102   : > { %568 = vadd.xlane.f32.xlu0 %v567_v26 }
 0x103   : > { %v852_v29 = vadd.f32 -0.5, %v560_v27  ;;  %v576_v30 = vsel %vm399_vm0, %v854_v28, 0.0 }
 0x104   : > { %577 = vadd.xlane.f32.xlu1 %v576_v30 }
 0x105   : > { %v570_v31 = vsel %vm399_vm0, %v852_v29, 0.0 }
 0x106   : > { %571 = vadd.xlane.f32.xlu0 %v570_v31 }
 0x189   : > { %v575_v32 = vpop.xlane.xlu1 %574 }
 0x18a   : > { %v581_v33 = vmul.f32 0.5, %v575_v32 }
 0x18b   : > { %v569_v34 = vpop.xlane.xlu0 %568 }
 0x18c   : > { %586 = vst.msk [vmem:[%s375_s19 + $0x10] sm:$0xff] %vm583_vm2, %v581_v33  ;;  %v579_v35 = vmul.f32 0.5, %v569_v34 }
 0x18d   : > { %v578_v36 = vpop.xlane.xlu1 %577 }
 0x18e   : > { %584 = vst.msk [vmem:[%s375_s19] sm:$0xff] %vm583_vm2, %v579_v35  ;;  %v582_v37 = vmul.f32 0.5, %v578_v36 }
 0x18f   : > { %v572_v38 = vpop.xlane.xlu0 %571 }
 0x190   : > { %v580_v39 = vmul.f32 0.5, %v572_v38  ;;  %587 = vst.msk [vmem:[%s375_s19 + $0x18] sm:$0xff] %vm583_vm2, %v582_v37 }
 0x192   : > { %585 = vst.msk [vmem:[%s375_s19 + $0x8] sm:$0xff] %vm583_vm2, %v580_v39 }
 0x1a8   : > { %v903_v41 = vpop.f32.mrf.mxu1 }
 0x1a9   : > { %v731_v42 = vadd.f32 %v903_v41, %v859_v40 }
 0x1aa   : > { %v722_v43 = vpop.f32.mrf.mxu1 }
 0x1ab   : > { %740 = vst.msk [vmem:[%s369_s25 + $0x10] sm:$0xff] %vm737_vm3, %v731_v42  ;;  %v723_v44 = vadd.f32 %v859_v40, %v722_v43 }
 0x1ac   : > { %v904_v45 = vpop.f32.mrf.mxu1 }
 0x1ad   : > { %738 = vst.msk [vmem:[%s369_s25] sm:$0xff] %vm737_vm3, %v723_v44  ;;  %v734_v46 = vadd.f32 %v904_v45, %v859_v40 }
 0x1ae   : > { %v725_v47 = vpop.f32.mrf.mxu1 }
 0x1af   : > { %741 = vst.msk [vmem:[%s369_s25 + $0x18] sm:$0xff] %vm737_vm3, %v734_v46  ;;  %v726_v48 = vadd.f32 %v859_v40, %v725_v47 }
 0x1b1   : > { %739 = vst.msk [vmem:[%s369_s25 + $0x8] sm:$0xff] %vm737_vm3, %v726_v48 }
 0x1b2 PF: > { %s21_s13 = sadd.s32 1, %s940_s13  }
 0x1b3   : > { %p18_p4 = scmp.ge.s32.totalorder %s21_s13, 5  }
 0x1b5   :  { %20 = sbr.rel (!%p18_p4) target bundleno = 1 (0x1), region = 98 }

// kernel: scoiget_forward.15
= control target key start
LH: loop header
LB: loop body
LE: loop exit
PB: predicated region body
PF: predicated region fallthrough
CT: control target
= control target key end

     0   :  { %v482_v2 = vmov 0   ;;  %s866_s0 = inlined_call_operand.vmem [shape: f32[80,64], index: 0, kind: input, shape index: {}]   ;;  %s867_s1 = inlined_call_operand.vmem [shape: f32[80,64], index: 1, kind: input, shape index: {}]   ;;  %s868_s2 = inlined_call_operand.vmem [shape: f32[80,1], index: 2, kind: input, shape index: {}]   ;;  %s869_s3 = inlined_call_operand.vmem [shape: f32[80,64], index: 3, kind: output, shape index: {0}]   ;;  %s870_s4 = inlined_call_operand.hbm [shape: f32[1,1], index: 4, kind: output, shape index: {1}]  }
   0x1   :  { %v31_v0 = vld [vmem:[%s868_s2 + $0x20] sm:$0xff]  ;;  %435 = vset.pattern.permute.xlu1 %v482_v2  ;;  %434 = vset.pattern.permute.xlu0 %v482_v2  ;;  %v32_v3 = vld [vmem:[%s868_s2 + $0x28] sm:$0xff] }
   0x2   :  { %v27_v1 = vld [vmem:[%s868_s2] sm:$0xff]  ;;  %59 = vperm.xlu1 %435, %v31_v0   ;;  %v28_v4 = vld [vmem:[%s868_s2 + $0x8] sm:$0xff] }
   0x3   :  { %39 = vperm.xlu0 %434, %v27_v1  }
   0x6   :  { %64 = vperm.xlu1 %435, %v32_v3  }
   0x7   :  { %44 = vperm.xlu0 %434, %v28_v4  }
   0x8   :  { %10 = vsyncpa [#allocation3], 0  ;;  %v30_v5 = vld [vmem:[%s868_s2 + $0x18] sm:$0xff]  ;;  %v29_v6 = vld [vmem:[%s868_s2 + $0x10] sm:$0xff]  ;;  %vm97_vm0 = vcmask 523264   ;;  %s483_s22 = smov [#allocation2]  }
   0x9   :  { %v34_v7 = vld [vmem:[%s868_s2 + $0x38] sm:$0xff]  ;;  %v33_v8 = vld [vmem:[%s868_s2 + $0x30] sm:$0xff]  ;;  %v36_v9 = vld [vmem:[%s868_s2 + $0x48] sm:$0xff]  ;;  %s414_s23 = sshll.u32 %s483_s22, 4  ;;  %vm404_vm1 = vcmask 0   ;;  %s415_s23 = int_to_ptr.vmem [resolvable:$true] %s414_s23 }
   0xa   :  { %54 = vperm.xlu1 %435, %v30_v5   ;;  %v35_v10 = vld [vmem:[%s868_s2 + $0x40] sm:$0xff]  ;;  %v129_v11 = vld [vmem:[%s866_s0 + $0x8] sm:$0xff]  ;;  %v583_v28 = vld [vmem:[%s867_s1 + $0x10] sm:$0xff]  ;;  %s460_s25 = scalar_lea.vmem %s415_s23, 16  ;;  %s464_s26 = scalar_lea.vmem %s415_s23, 32 }
   0xb   :  { %49 = vperm.xlu0 %434, %v29_v6   ;;  %v141_v12 = vsel %vm97_vm0, %v129_v11, 0.0  ;;  %v128_v13 = vld [vmem:[%s866_s0] sm:$0xff]  ;;  %v566_v21 = vld [vmem:[%s867_s1 + $0x8] sm:$0xff]  ;;  %v593_v32 = vld [vmem:[%s867_s1 + $0x18] sm:$0xff]  ;;  %p461_p0 = scmp.ne.s32.totalorder %s415_s23, %s460_s25  ;;  %p465_p1 = scmp.lt.s32.totalorder %s415_s23, %s415_s23 }
   0xc   :  { %v138_v14 = vsel %vm97_vm0, %v128_v13, 0.0  ;;  %v550_v15 = vld [vmem:[%s867_s1 + $0x20] sm:$0xff]  ;;  %v573_v24 = vld [vmem:[%s867_s1 + $0x28] sm:$0xff]  ;;  %v601_v35 = vld [vmem:[%s867_s1 + $0x30] sm:$0xff]  ;;  %p466_p2 = scmp.lt.s32.totalorder %s464_s26, %s460_s25 }
   0xd   :  { %v555_v16 = vld [vmem:[%s867_s1] sm:$0xff]  ;;  %v613_v40 = vld [vmem:[%s867_s1 + $0x38] sm:$0xff]  ;;  %v633_v48 = vld [vmem:[%s867_s1 + $0x48] sm:$0xff] }
   0xe   :  { %74 = vperm.xlu1 %435, %v34_v7   ;;  %v621_v43 = vld [vmem:[%s867_s1 + $0x40] sm:$0xff]  ;;  %v130_v56 = vld [vmem:[%s866_s0 + $0x10] sm:$0xff]  ;;  %v133_v57 = vld [vmem:[%s866_s0 + $0x28] sm:$0xff]  ;;  %p467_p3 = por %p466_p2, %p465_p1 }
   0xf   :  { %69 = vperm.xlu0 %434, %v33_v8   ;;  %v132_v51 = vld [vmem:[%s866_s0 + $0x20] sm:$0xff]  ;;  %v144_v59 = vsel %vm97_vm0, %v130_v56, 0.0  ;;  %v153_v60 = vsel %vm97_vm0, %v133_v57, 0.0  ;;  %v134_v61 = vld [vmem:[%s866_s0 + $0x30] sm:$0xff]  ;;  %v131_v62 = vld [vmem:[%s866_s0 + $0x18] sm:$0xff] }
  0x10   :  { %v150_v55 = vsel %vm97_vm0, %v132_v51, 0.0  ;;  %v156_v63 = vsel %vm97_vm0, %v134_v61, 0.0  ;;  %v147_v0 = vsel %vm97_vm0, %v131_v62, 0.0  ;;  %v136_v1 = vld [vmem:[%s866_s0 + $0x40] sm:$0xff]  ;;  %v135_v2 = vld [vmem:[%s866_s0 + $0x38] sm:$0xff]  ;;  %v137_v5 = vld [vmem:[%s866_s0 + $0x48] sm:$0xff]  ;;  %p468_p4 = pnand %p467_p3, %p461_p0 }
  0x11   :  { %v162_v3 = vsel %vm97_vm0, %v136_v1, 0.0  ;;  %v159_v4 = vsel %vm97_vm0, %v135_v2, 0.0  ;;  %v165_v6 = vsel %vm97_vm0, %v137_v5, 0.0 }
  0x12   :  { %84 = vperm.xlu1 %435, %v36_v9  }
  0x13   :  { %79 = vperm.xlu0 %434, %v35_v10  }
  0x32   :  { %142 = vadd.xlane.f32.xlu0 %v141_v12 }
  0x36   :  { %139 = vadd.xlane.f32.xlu1 %v138_v14 }
  0x7d   :  { %v60_v17 = vpop.permute.xlu1 %59 }
  0x7e   :  { %v40_v18 = vpop.permute.xlu0 %39  ;;  %v558_v19 = vmul.f32 %v60_v17, %v550_v15 }
  0x7f   :  { %v561_v20 = vmul.f32 %v40_v18, %v555_v16 }
  0x80   :  { %v110_v27 = vsel %vm97_vm0, %v558_v19, 0.0 }
  0x81   :  { %v98_v22 = vsel %vm97_vm0, %v561_v20, 0.0  ;;  %v65_v23 = vpop.permute.xlu1 %64 }
  0x82   :  { %v45_v25 = vpop.permute.xlu0 %44  ;;  %99 = vadd.xlane.f32.xlu0 %v98_v22  ;;  %v586_v29 = vmul.f32 %v65_v23, %v573_v24 }
  0x83   :  { %v576_v26 = vmul.f32 %v45_v25, %v566_v21 }
  0x84   :  { %v113_v38 = vsel %vm97_vm0, %v586_v29, 0.0 }
  0x85   :  { %v101_v30 = vsel %vm97_vm0, %v576_v26, 0.0  ;;  %v55_v31 = vpop.permute.xlu1 %54 }
  0x86   :  { %v50_v33 = vpop.permute.xlu0 %49  ;;  %102 = vadd.xlane.f32.xlu1 %v101_v30  ;;  %111 = vadd.xlane.f32.xlu0 %v110_v27  ;;  %v604_v36 = vmul.f32 %v55_v31, %v593_v32 }
  0x87   :  { %v596_v34 = vmul.f32 %v50_v33, %v583_v28 }
  0x88   :  { %v107_v46 = vsel %vm97_vm0, %v604_v36, 0.0 }
  0x89   :  { %v104_v37 = vsel %vm97_vm0, %v596_v34, 0.0  ;;  %v75_v39 = vpop.permute.xlu1 %74 }
  0x8a   :  { %v70_v41 = vpop.permute.xlu0 %69  ;;  %105 = vadd.xlane.f32.xlu1 %v104_v37  ;;  %114 = vadd.xlane.f32.xlu0 %v113_v38  ;;  %v624_v44 = vmul.f32 %v75_v39, %v613_v40 }
  0x8b   :  { %v616_v42 = vmul.f32 %v70_v41, %v601_v35 }
  0x8c   :  { %v119_v54 = vsel %vm97_vm0, %v624_v44, 0.0 }
  0x8d   :  { %v116_v45 = vsel %vm97_vm0, %v616_v42, 0.0  ;;  %v85_v47 = vpop.permute.xlu1 %84 }
  0x8e   :  { %v80_v49 = vpop.permute.xlu0 %79  ;;  %117 = vadd.xlane.f32.xlu1 %v116_v45  ;;  %108 = vadd.xlane.f32.xlu0 %v107_v46  ;;  %v642_v52 = vmul.f32 %v85_v47, %v633_v48 }
  0x8f   :  { %v636_v50 = vmul.f32 %v80_v49, %v621_v43 }
  0x90   :  { %v125_v58 = vsel %vm97_vm0, %v642_v52, 0.0 }
  0x91   :  { %v122_v53 = vsel %vm97_vm0, %v636_v50, 0.0 }
  0x92   :  { %123 = vadd.xlane.f32.xlu1 %v122_v53  ;;  %120 = vadd.xlane.f32.xlu0 %v119_v54 }
  0x96   :  { %151 = vadd.xlane.f32.xlu1 %v150_v55  ;;  %126 = vadd.xlane.f32.xlu0 %v125_v58 }
  0x9a   :  { %145 = vadd.xlane.f32.xlu1 %v144_v59  ;;  %154 = vadd.xlane.f32.xlu0 %v153_v60 }
  0x9e   :  { %157 = vadd.xlane.f32.xlu1 %v156_v63  ;;  %148 = vadd.xlane.f32.xlu0 %v147_v0 }
  0xa2   :  { %163 = vadd.xlane.f32.xlu1 %v162_v3  ;;  %160 = vadd.xlane.f32.xlu0 %v159_v4 }
  0xa6   :  { %166 = vadd.xlane.f32.xlu0 %v165_v6 }
  0xbb   :  { %v143_v7 = vpop.xlane.xlu0 %142 }
  0xbf   :  { %v140_v8 = vpop.xlane.xlu1 %139 }
 0x10b   :  { %v100_v9 = vpop.xlane.xlu0 %99 }
 0x10c   :  { %v168_v13 = vadd.f32 1e-08, %v100_v9 }
 0x10f   :  { %v103_v10 = vpop.xlane.xlu1 %102  ;;  %v112_v11 = vpop.xlane.xlu0 %111 }
 0x110   :  { %v172_v12 = vadd.f32 1e-08, %v112_v11  ;;  %v169_v14 = vadd.f32 1e-08, %v103_v10 }
 0x112   :  { %436 = vrcp.f32 %v172_v12 }
 0x113   :  { %v106_v17 = vpop.xlane.xlu1 %105  ;;  %v115_v18 = vpop.xlane.xlu0 %114  ;;  %438 = vrcp.f32 %v168_v13 }
 0x114   :  { %v170_v22 = vadd.f32 1e-08, %v106_v17  ;;  %v173_v23 = vadd.f32 1e-08, %v115_v18  ;;  %440 = vrcp.f32 %v169_v14 }
 0x116   :  { %442 = vrcp.f32 %v170_v22 }
 0x117   :  { %v118_v25 = vpop.xlane.xlu1 %117  ;;  %v109_v27 = vpop.xlane.xlu0 %108  ;;  %444 = vrcp.f32 %v173_v23 }
 0x118   :  { %v174_v30 = vadd.f32 1e-08, %v118_v25  ;;  %v171_v31 = vadd.f32 1e-08, %v109_v27 }
 0x11a   :  { %446 = vrcp.f32 %v174_v30 }
 0x11b   :  { %448 = vrcp.f32 %v171_v31  ;;  %v124_v33 = vpop.xlane.xlu1 %123  ;;  %v121_v37 = vpop.xlane.xlu0 %120 }
 0x11c   :  { %v176_v38 = vadd.f32 1e-08, %v124_v33  ;;  %v175_v39 = vadd.f32 1e-08, %v121_v37 }
 0x11e   :  { %450 = vrcp.f32 %v176_v38 }
 0x11f   :  { %452 = vrcp.f32 %v175_v39  ;;  %v152_v41 = vpop.xlane.xlu1 %151  ;;  %v127_v45 = vpop.xlane.xlu0 %126 }
 0x120   :  { %v437_v46 = vpop.eup %436  ;;  %v177_v47 = vadd.f32 1e-08, %v127_v45 }
 0x121   :  { %v439_v49 = vpop.eup %438  ;;  %v192_v53 = vmul.f32 %v437_v46, %v152_v41 }
 0x122   :  { %454 = vrcp.f32 %v177_v47  ;;  %v441_v51 = vpop.eup %440  ;;  %v188_v58 = vmul.f32 %v439_v49, %v140_v8 }
 0x123   :  { %v146_v54 = vpop.xlane.xlu1 %145  ;;  %v155_v55 = vpop.xlane.xlu0 %154  ;;  %v189_v59 = vmul.f32 %v441_v51, %v143_v7  ;;  %v680_v61 = vmul.f32 %v192_v53, %v558_v19 }
 0x124   :  { %v443_v56 = vpop.eup %442  ;;  %v683_v5 = vmul.f32 %v188_v58, %v561_v20 }
 0x125   :  { %v445_v57 = vpop.eup %444  ;;  %v190_v62 = vmul.f32 %v443_v56, %v146_v54  ;;  %v686_v6 = vmul.f32 %v189_v59, %v576_v26  ;;  %v241_v7 = vsel %vm97_vm0, %v680_v61, -inf  ;;  %v212_v12 = vsel %vm97_vm0, %v680_v61, inf }
 0x126   :  { %v193_v2 = vmul.f32 %v445_v57, %v155_v55  ;;  %v208_v18 = vsel %vm97_vm0, %v683_v5, inf }
 0x127   :  { %v447_v60 = vpop.eup %446  ;;  %v158_v63 = vpop.xlane.xlu1 %157  ;;  %v691_v19 = vmul.f32 %v190_v62, %v596_v34  ;;  %v237_v34 = vsel %vm97_vm0, %v683_v5, -inf }
 0x128   :  { %v149_v0 = vpop.xlane.xlu0 %148  ;;  %v449_v1 = vpop.eup %448  ;;  %v194_v3 = vmul.f32 %v447_v60, %v158_v63  ;;  %v696_v13 = vmul.f32 %v193_v2, %v586_v29  ;;  %v238_v29 = vsel %vm97_vm0, %v686_v6, -inf  ;;  %v242_v23 = vmax.f32 %v237_v34, %v241_v7 }
 0x129   :  { %v191_v4 = vmul.f32 %v449_v1, %v149_v0  ;;  %v239_v30 = vsel %vm97_vm0, %v691_v19, -inf  ;;  %v210_v31 = vsel %vm97_vm0, %v691_v19, inf }
 0x12a   :  { %v699_v20 = vmul.f32 %v194_v3, %v616_v42  ;;  %v209_v42 = vsel %vm97_vm0, %v686_v6, inf  ;;  %v214_v33 = vsel %vm97_vm0, %v696_v13, inf  ;;  %v243_v37 = vsel %vm97_vm0, %v696_v13, -inf }
 0x12b   :  { %v451_v9 = vpop.eup %450  ;;  %v164_v8 = vpop.xlane.xlu1 %163  ;;  %v702_v14 = vmul.f32 %v191_v4, %v604_v36  ;;  %v244_v54 = vmax.f32 %v238_v29, %v243_v37  ;;  %v215_v56 = vmin.f32 %v209_v42, %v214_v33  ;;  %v372_v37 = vmul.f32 %v621_v43, %v621_v43 }
 0x12c   :  { %v161_v10 = vpop.xlane.xlu0 %160  ;;  %v453_v11 = vpop.eup %452  ;;  %v196_v26 = vmul.f32 %v451_v9, %v164_v8  ;;  %v245_v39 = vsel %vm97_vm0, %v699_v20, -inf  ;;  %v216_v45 = vsel %vm97_vm0, %v699_v20, inf }
 0x12d   :  { %v195_v17 = vmul.f32 %v453_v11, %v161_v10  ;;  %v211_v51 = vsel %vm97_vm0, %v702_v14, inf  ;;  %v246_v58 = vmax.f32 %v239_v30, %v245_v39  ;;  %v217_v60 = vmin.f32 %v210_v31, %v216_v45 }
 0x12e   :  { %v709_v22 = vmul.f32 %v196_v26, %v636_v50  ;;  %v213_v50 = vmin.f32 %v208_v18, %v212_v12  ;;  %v364_v10 = vmul.f32 %v555_v16, %v555_v16  ;;  %v365_v11 = vmul.f32 %v566_v21, %v566_v21 }
 0x12f   :  { %v455_v25 = vpop.eup %454  ;;  %v716_v36 = vmul.f32 %v195_v17, %v624_v44  ;;  %v240_v44 = vsel %vm97_vm0, %v702_v14, -inf  ;;  %v366_v17 = vmul.f32 %v583_v28, %v583_v28  ;;  %v367_v18 = vmul.f32 %v593_v32, %v593_v32 }
 0x130   :  { %v167_v27 = vpop.xlane.xlu0 %166  ;;  %v249_v49 = vsel %vm97_vm0, %v709_v22, -inf  ;;  %v220_v53 = vsel %vm97_vm0, %v709_v22, inf  ;;  %v374_v12 = vsel %vm97_vm0, %v364_v10, 0.0  ;;  %v375_v26 = vsel %vm97_vm0, %v365_v11, 0.0 }
 0x131   :  { %v197_v38 = vmul.f32 %v455_v25, %v167_v27  ;;  %v247_v41 = vsel %vm97_vm0, %v716_v36, -inf  ;;  %v218_v46 = vsel %vm97_vm0, %v716_v36, inf  ;;  %v250_v62 = vmax.f32 %v242_v23, %v249_v49 }
 0x132   :  { %v248_v55 = vmax.f32 %v240_v44, %v247_v41  ;;  %v219_v57 = vmin.f32 %v211_v51, %v218_v46  ;;  %v221_v0 = vmin.f32 %v213_v50, %v220_v53  ;;  %v376_v34 = vadd.f32 %v375_v26, %v374_v12 }
 0x133   :  { %v737_v47 = vmul.f32 %v197_v38, %v642_v52  ;;  %v377_v29 = vsel %vm97_vm0, %v366_v17, 0.0  ;;  %v368_v16 = vmul.f32 %v550_v15, %v550_v15  ;;  %v379_v42 = vsel %vm97_vm0, %v367_v18, 0.0 }
 0x134   :  { %v254_v3 = vmax.f32 %v246_v58, %v248_v55  ;;  %v225_v9 = vmin.f32 %v217_v60, %v219_v57  ;;  %v378_v23 = vadd.f32 %v377_v29, %v376_v34  ;;  %v369_v27 = vmul.f32 %v573_v24, %v573_v24 }
 0x135   :  { %v251_v59 = vsel %vm97_vm0, %v737_v47, -inf  ;;  %v222_v52 = vsel %vm97_vm0, %v737_v47, inf  ;;  %v381_v25 = vsel %vm97_vm0, %v368_v16, 0.0  ;;  %v370_v32 = vmul.f32 %v601_v35, %v601_v35 }
 0x136   :  { %v252_v63 = vmax.f32 %v244_v54, %v251_v59  ;;  %v223_v1 = vmin.f32 %v215_v56, %v222_v52  ;;  %v380_v21 = vadd.f32 %v379_v42, %v378_v23  ;;  %v383_v28 = vsel %vm97_vm0, %v369_v27, 0.0 }
 0x137   :  { %v371_v50 = vmul.f32 %v613_v40, %v613_v40  ;;  %v385_v15 = vsel %vm97_vm0, %v370_v32, 0.0  ;;  %v373_v24 = vmul.f32 %v633_v48, %v633_v48  ;;  %v389_v44 = vsel %vm97_vm0, %v372_v37, 0.0 }
 0x138   :  { %v253_v2 = vmax.f32 %v250_v62, %v252_v63  ;;  %v224_v4 = vmin.f32 %v221_v0, %v223_v1  ;;  %v382_v30 = vadd.f32 %v381_v25, %v380_v21 }
 0x139   :  { %v387_v38 = vsel %vm97_vm0, %v371_v50, 0.0  ;;  %v391_v35 = vsel %vm97_vm0, %v373_v24, 0.0 }
 0x13a   :  { %v255_v7 = vmax.f32 %v253_v2, %v254_v3  ;;  %v226_v8 = vmin.f32 %v224_v4, %v225_v9  ;;  %v384_v31 = vadd.f32 %v383_v28, %v382_v30 }
 0x13c   :  { %256 = vmax.xlane.f32.xlu0 %v255_v7  ;;  %227 = vmin.xlane.f32.xlu1 %v226_v8  ;;  %v386_v33 = vadd.f32 %v385_v15, %v384_v31 }
 0x13e   :  { %v388_v39 = vadd.f32 %v387_v38, %v386_v33 }
 0x140   :  { %v390_v41 = vadd.f32 %v389_v44, %v388_v39 }
 0x142   :  { %v392_v45 = vadd.f32 %v391_v35, %v390_v41 }
 0x144   :  { %393 = vadd.xlane.f32.xlu0 %v392_v45 }
 0x1c5   :  { %v257_v40 = vpop.xlane.xlu0 %256  ;;  %v228_v46 = vpop.xlane.xlu1 %227 }
 0x1c6   :  { %v258_v49 = vrot.slane %v257_v40, 4  ;;  %v229_v51 = vrot.slane %v228_v46, 4 }
 0x1c8   :  { %v259_v53 = vmax.f32 %v257_v40, %v258_v49  ;;  %v230_v54 = vmin.f32 %v228_v46, %v229_v51 }
 0x1ca   :  { %v260_v43 = vrot.slane %v259_v53, 2  ;;  %v231_v55 = vrot.slane %v230_v54, 2 }
 0x1cc   :  { %v232_v56 = vmin.f32 %v230_v54, %v231_v55  ;;  %v261_v57 = vmax.f32 %v259_v53, %v260_v43 }
 0x1ce   :  { %v233_v58 = vrot.slane %v232_v56, 1  ;;  %v262_v48 = vrot.slane %v261_v57, 1 }
 0x1d0   :  { %v234_v59 = vmin.f32 %v232_v56, %v233_v58  ;;  %v263_v60 = vmax.f32 %v261_v57, %v262_v48 }
 0x1d2   :  { %424 = vpush %v234_v59 }
 0x1d3   :  { %426 = vpush %v263_v60 }
 0x203   :  { %s425_s0 = spop %424 }
 0x204   :  { %v236_v52 = vstv %s425_s0  ;;  %s427_s20 = spop %426 }
 0x205   :  { %v265_v62 = vstv %s427_s20  ;;  %v266_v1 = vmul.f32 0.8, %v236_v52  ;;  %v268_v3 = vsub.f32 %v683_v5, %v236_v52  ;;  %v269_v4 = vsub.f32 %v686_v6, %v236_v52 }
 0x206   :  { %v278_v63 = vsub.f32 %v265_v62, %v236_v52  ;;  %v267_v2 = vmul.f32 1.2, %v265_v62  ;;  %v270_v9 = vsub.f32 %v691_v19, %v236_v52  ;;  %v271_v7 = vsub.f32 %v702_v14, %v236_v52 }
 0x207   :  { %v272_v11 = vsub.f32 %v680_v61, %v236_v52  ;;  %v273_v18 = vsub.f32 %v696_v13, %v236_v52  ;;  %v274_v23 = vsub.f32 %v699_v20, %v236_v52  ;;  %v275_v14 = vsub.f32 %v716_v36, %v236_v52 }
 0x208   :  { %v279_v0 = vadd.f32 1e-08, %v278_v63  ;;  %v291_v10 = vsub.f32 %v267_v2, %v266_v1  ;;  %v276_v13 = vsub.f32 %v709_v22, %v236_v52  ;;  %v277_v50 = vsub.f32 %v737_v47, %v236_v52 }
 0x20a   :  { %456 = vrcp.f32 %v279_v0  ;;  %v394_v0 = vpop.xlane.xlu0 %393 }
 0x20b   :  { %v395_v2 = vrot.slane %v394_v0, 4 }
 0x217   :  { %v457_v8 = vpop.eup %456 }
 0x218   :  { %v281_v12 = vmul.f32 %v457_v8, %v268_v3  ;;  %v282_v26 = vmul.f32 %v457_v8, %v269_v4  ;;  %v283_v17 = vmul.f32 %v457_v8, %v270_v9  ;;  %v284_v34 = vmul.f32 %v457_v8, %v271_v7 }
 0x219   :  { %v285_v29 = vmul.f32 %v457_v8, %v272_v11  ;;  %v286_v6 = vmul.f32 %v457_v8, %v273_v18  ;;  %v287_v21 = vmul.f32 %v457_v8, %v274_v23  ;;  %v288_v28 = vmul.f32 %v457_v8, %v275_v14 }
 0x21a   :  { %v292_v5 = vmul.f32 %v291_v10, %v281_v12  ;;  %v293_v16 = vmul.f32 %v291_v10, %v282_v26  ;;  %v294_v42 = vmul.f32 %v291_v10, %v283_v17  ;;  %v295_v19 = vmul.f32 %v291_v10, %v284_v34 }
 0x21b   :  { %v296_v25 = vmul.f32 %v291_v10, %v285_v29  ;;  %v297_v32 = vmul.f32 %v291_v10, %v286_v6  ;;  %v289_v33 = vmul.f32 %v457_v8, %v276_v13  ;;  %v298_v37 = vmul.f32 %v291_v10, %v287_v21 }
 0x21c   :  { %v787_v27 = vadd.f32 %v292_v5, %v266_v1  ;;  %v789_v61 = vadd.f32 %v293_v16, %v266_v1  ;;  %v791_v30 = vadd.f32 %v294_v42, %v266_v1  ;;  %v794_v20 = vadd.f32 %v295_v19, %v266_v1 }
 0x21d   :  { %v801_v38 = vadd.f32 %v296_v25, %v266_v1  ;;  %v290_v39 = vmul.f32 %v457_v8, %v277_v50  ;;  %v299_v44 = vmul.f32 %v291_v10, %v288_v28  ;;  %v805_v35 = vadd.f32 %v297_v32, %v266_v1 }
 0x21e   :  { %v312_v31 = vsel %vm97_vm0, %v787_v27, 0.0  ;;  %v313_v36 = vsel %vm97_vm0, %v789_v61, 0.0  ;;  %v315_v22 = vsel %vm97_vm0, %v791_v30, 0.0  ;;  %v317_v41 = vsel %vm97_vm0, %v794_v20, 0.0 }
 0x21f   :  { %v314_v15 = vadd.f32 %v313_v36, %v312_v31  ;;  %v300_v40 = vmul.f32 %v291_v10, %v289_v33  ;;  %v308_v46 = vadd.f32 %v298_v37, %v266_v1  ;;  %v319_v47 = vsel %vm97_vm0, %v801_v38, 0.0 }
 0x220   :  { %v301_v51 = vmul.f32 %v291_v10, %v290_v39  ;;  %v309_v53 = vadd.f32 %v299_v44, %v266_v1  ;;  %v321_v54 = vsel %vm97_vm0, %v805_v35, 0.0  ;;  %v396_v3 = vadd.f32 %v395_v2, %v394_v0 }
 0x221   :  { %v316_v24 = vadd.f32 %v315_v22, %v314_v15  ;;  %v310_v55 = vadd.f32 %v300_v40, %v266_v1  ;;  %v323_v56 = vsel %vm97_vm0, %v308_v46, 0.0 }
 0x222   :  { %v311_v58 = vadd.f32 %v301_v51, %v266_v1  ;;  %v325_v48 = vsel %vm97_vm0, %v309_v53, 0.0  ;;  %v397_v4 = vrot.slane %v396_v3, 2 }
 0x223   :  { %v318_v45 = vadd.f32 %v317_v41, %v316_v24  ;;  %v327_v60 = vsel %vm97_vm0, %v310_v55, 0.0 }
 0x224   :  { %v329_v62 = vsel %vm97_vm0, %v311_v58, 0.0  ;;  %v398_v8 = vadd.f32 %v397_v4, %v396_v3 }
 0x225   :  { %v320_v49 = vadd.f32 %v319_v47, %v318_v45 }
 0x226   :  { %v399_v1 = vrot.slane %v398_v8, 1 }
 0x227   :  { %v322_v43 = vadd.f32 %v321_v54, %v320_v49 }
 0x228   :  { %v400_v17 = vadd.f32 %v399_v1, %v398_v8 }
 0x229   :  { %v324_v57 = vadd.f32 %v323_v56, %v322_v43 }
 0x22b   :  { %v326_v59 = vadd.f32 %v325_v48, %v324_v57 }
 0x22d   :  { %v328_v52 = vadd.f32 %v327_v60, %v326_v59 }
 0x22f   :  { %v330_v63 = vadd.f32 %v329_v62, %v328_v52 }
 0x231   :  { %331 = vadd.xlane.f32.xlu1 %v330_v63 }
 0x2ba   :  { %v332_v9 = vpop.xlane.xlu1 %331 }
 0x2bb   :  { %v333_v7 = vrot.slane %v332_v9, 4 }
 0x2bd   :  { %v334_v10 = vadd.f32 %v333_v7, %v332_v9 }
 0x2bf   :  { %v335_v11 = vrot.slane %v334_v10, 2 }
 0x2c1   :  { %v336_v12 = vadd.f32 %v335_v11, %v334_v10 }
 0x2c3   :  { %v337_v26 = vrot.slane %v336_v12, 1 }
 0x2c5   :  { %v338_v34 = vadd.f32 %v337_v26, %v336_v12 }
 0x2c7   :  { %428 = vpush %v338_v34 }
 0x2c8   :  { %430 = vpush %v400_v17 }
 0x2f8   :  { %s429_s21 = spop %428 }
 0x2f9   :  { %v340_v18 = vstv %s429_s21  ;;  %s431_s24 = spop %430 }
 0x2fa   :  { %v342_v29 = vmul.f32 0.0001953125, %v340_v18  ;;  %v402_v23 = vstv %s431_s24 }
 0x2fb   :  { %v403_v5 = vmul.f32 0.0001, %v402_v23 }
 0x2fc   :  { %458 = vrcp.f32 %v342_v29 }
 0x2fd   :  { %405 = vst.msk [vmem:[#allocation2] sm:$0x1] %vm404_vm1, %v403_v5 }
 0x2fe   :  { %471 = shalt.err (!%p468_p4)
}
 0x2ff   :  { %417 = dma.vmem_to_hbm [thread:$0]  %s415_s23, 16, %s870_s4, [#allocation3]  }
 0x309   :  { %v459_v16 = vpop.eup %458 }
 0x30a   :  { %v344_v6 = vmul.f32 %v459_v16, %v787_v27  ;;  %v345_v42 = vmul.f32 %v459_v16, %v789_v61  ;;  %v346_v19 = vmul.f32 %v459_v16, %v791_v30  ;;  %v347_v14 = vmul.f32 %v459_v16, %v794_v20 }
 0x30b   :  { %v348_v21 = vmul.f32 %v459_v16, %v801_v38  ;;  %v349_v25 = vmul.f32 %v459_v16, %v805_v35  ;;  %v350_v13 = vmul.f32 %v459_v16, %v308_v46  ;;  %v351_v28 = vmul.f32 %v459_v16, %v309_v53 }
 0x30c   :  { %v352_v32 = vmul.f32 %v459_v16, %v310_v55  ;;  %v353_v31 = vmul.f32 %v459_v16, %v311_v58  ;;  %354 = vst.msk [vmem:[%s869_s3] sm:$0xff] %vm97_vm0, %v344_v6  ;;  %355 = vst.msk [vmem:[%s869_s3 + $0x8] sm:$0xff] %vm97_vm0, %v345_v42 }
 0x30d   :  { %356 = vst.msk [vmem:[%s869_s3 + $0x10] sm:$0xff] %vm97_vm0, %v346_v19  ;;  %357 = vst.msk [vmem:[%s869_s3 + $0x18] sm:$0xff] %vm97_vm0, %v347_v14 }
 0x30e   :  { %358 = vst.msk [vmem:[%s869_s3 + $0x20] sm:$0xff] %vm97_vm0, %v348_v21  ;;  %359 = vst.msk [vmem:[%s869_s3 + $0x28] sm:$0xff] %vm97_vm0, %v349_v25 }
 0x30f   :  { %360 = vst.msk [vmem:[%s869_s3 + $0x30] sm:$0xff] %vm97_vm0, %v350_v13  ;;  %361 = vst.msk [vmem:[%s869_s3 + $0x38] sm:$0xff] %vm97_vm0, %v351_v28 }
 0x310   :  { %362 = vst.msk [vmem:[%s869_s3 + $0x40] sm:$0xff] %vm97_vm0, %v352_v32  ;;  %363 = vst.msk [vmem:[%s869_s3 + $0x48] sm:$0xff] %vm97_vm0, %v353_v31 }
 0x311   :  { %480 = dma.done.wait [#allocation3], 16  }
 0x312   :  { %481 = vsyncadd [#allocation3], 4294967280 }
 0x313   :  { %423 = vsyncpa [#allocation3], 1 }

</bundles_post_ra>
